<compile_context>
chip_gen: v7x
topology: tpu7x:2x2x1
jax: 0.10.0
libtpu: 0.0.40
codegen_flags: <defaults>
</compile_context>

<pallas_src>
import functools

import jax
import jax.numpy as jnp
from jax.experimental import pallas as pl
from jax.experimental.pallas import tpu as pltpu


TILE_M = 256
_VMEM_LIMIT = 32 * 1024 * 1024  # comfortable on v5e/v6e (128 MiB) and v7x (64 MiB)


# ----------------------------------------------------------------------------
# Pallas kernel: fused matmul + bias + activation   out = act(A @ W + b)
#   A: (tile_m, K) bf16,  W: (K, N) bf16,  b: (1, N) f32
# ----------------------------------------------------------------------------
def _mm_bias_act_kernel(a_ref, w_ref, b_ref, o_ref, *, act):
    acc = jnp.dot(a_ref[...], w_ref[...], preferred_element_type=jnp.float32)  # MXU
    acc = acc + b_ref[...]                                                     # VPU
    if act == "relu":
        acc = jnp.maximum(acc, 0.0)
    elif act == "sigmoid":
        # exact, overflow-free sigmoid via tanh (EUP op); result stays in [0, 1]
        acc = 0.5 * (jnp.tanh(0.5 * acc) + 1.0)
    o_ref[...] = acc.astype(o_ref.dtype)


def matmul_bias_act(a, w, b, *, act="none", out_dtype=jnp.bfloat16):
    """act(a @ w + b).  a: (M, K), w: (K, N) bf16 (pre-packed), b: (1, N) f32."""
    M, K = a.shape
    Kw, N = w.shape
    assert K == Kw and b.shape == (1, N)
    tile_m = M if M <= TILE_M else TILE_M          # full-array block is always legal
    grid = (pl.cdiv(M, tile_m),)
    return pl.pallas_call(
        functools.partial(_mm_bias_act_kernel, act=act),
        out_shape=jax.ShapeDtypeStruct((M, N), out_dtype),
        grid=grid,
        in_specs=[
            pl.BlockSpec((tile_m, K), lambda i: (i, 0)),   # A: one M-tile per grid step
            pl.BlockSpec((K, N), lambda i: (0, 0)),        # W: resident across tiles
            pl.BlockSpec((1, N), lambda i: (0, 0)),        # bias: resident
        ],
        out_specs=pl.BlockSpec((tile_m, N), lambda i: (i, 0)),
        compiler_params=pltpu.CompilerParams(
            dimension_semantics=("parallel",),             # v7x: shard M-tiles over 2 TCs
            vmem_limit_bytes=_VMEM_LIMIT,
        ),
    )(a.astype(jnp.bfloat16), w, b)


# ----------------------------------------------------------------------------
# Conv2d (NHWC) via lane-dense im2col + fused Pallas matmul
# ----------------------------------------------------------------------------
def conv2d_nhwc(x, w_packed, b_packed, *, stride=2, pad=1, k=3, act="relu"):
    N, H, W, C = x.shape
    Ho = (H + 2 * pad - k) // stride + 1
    Wo = (W + 2 * pad - k) // stride + 1
    xp = jnp.pad(x, ((0, 0), (pad, pad), (pad, pad), (0, 0)))
    cols = [
        xp[:, di:di + (Ho - 1) * stride + 1:stride,
              dj:dj + (Wo - 1) * stride + 1:stride, :]
        for di in range(k) for dj in range(k)
    ]
    col = jnp.concatenate(cols, axis=-1).reshape(N * Ho * Wo, k * k * C)  # rows (n,ho,wo)
    out = matmul_bias_act(col, w_packed, b_packed, act=act)
    return out.reshape(N, Ho, Wo, -1)


# ----------------------------------------------------------------------------
# ConvTranspose2d(k=3, stride=2, padding=1, output_padding=1) via output-phase
# sub-filters packed into a single matmul:
#   out[2m+py, 2n+px] = b + sum_{dy,dx in {0,1}} x[m+dy, n+dx] . w[:,:,ky(py,dy),kx(px,dx)]
# ----------------------------------------------------------------------------
def conv_transpose2d_nhwc(x, w_packed, b_packed, *, act, out_dtype=jnp.bfloat16):
    N, H, W, C = x.shape
    xp = jnp.pad(x, ((0, 0), (0, 1), (0, 1), (0, 0)))  # zero row/col for the +1 offsets
    cols = [xp[:, dy:dy + H, dx:dx + W, :] for dy in range(2) for dx in range(2)]
    col = jnp.concatenate(cols, axis=-1).reshape(N * H * W, 4 * C)
    out = matmul_bias_act(col, w_packed, b_packed, act=act, out_dtype=out_dtype)
    Cout = out.shape[-1] // 4
    out = out.reshape(N, H, W, 2, 2, Cout).transpose(0, 1, 3, 2, 4, 5)   # interleave phases
    return out.reshape(N, 2 * H, 2 * W, Cout)


# ----------------------------------------------------------------------------
# Parameters: PyTorch-layout raw init + one-time packing to MXU-friendly matrices
# ----------------------------------------------------------------------------
def init_params(key):
    def nrm(k, shape, scale=0.05):
        return scale * jax.random.normal(k, shape, dtype=jnp.float32)

    ks = jax.random.split(key, 16)
    return {
        "c1_w": nrm(ks[0], (32, 1, 3, 3)),   "c1_b": nrm(ks[1], (32,)),
        "c2_w": nrm(ks[2], (64, 32, 3, 3)),  "c2_b": nrm(ks[3], (64,)),
        "c3_w": nrm(ks[4], (128, 64, 3, 3)), "c3_b": nrm(ks[5], (128,)),
        "fc_enc_w": nrm(ks[6], (2, 128 * 4 * 4)), "fc_enc_b": nrm(ks[7], (2,)),
        "fc_dec_w": nrm(ks[8], (128 * 4 * 4, 2)), "fc_dec_b": nrm(ks[9], (128 * 4 * 4,)),
        "d1_w": nrm(ks[10], (128, 64, 3, 3)), "d1_b": nrm(ks[11], (64,)),
        "d2_w": nrm(ks[12], (64, 32, 3, 3)),  "d2_b": nrm(ks[13], (32,)),
        "d3_w": nrm(ks[14], (32, 1, 3, 3)),   "d3_b": nrm(ks[15], (1,)),
    }


def _pack_conv(w, b, cin_pad, cout_pad):
    """Conv2d weight (Cout,Cin,k,k) -> (k*k*cin_pad, cout_pad) bf16; bias -> (1, cout_pad) f32."""
    Cout, Cin, k, _ = w.shape
    w = jnp.pad(w, ((0, cout_pad - Cout), (0, cin_pad - Cin), (0, 0), (0, 0)))
    w2 = w.transpose(2, 3, 1, 0).reshape(k * k * cin_pad, cout_pad)      # rows: (ky, kx, ci)
    b2 = jnp.pad(b, (0, cout_pad - Cout)).reshape(1, cout_pad)
    return w2.astype(jnp.bfloat16), b2.astype(jnp.float32)


# kernel-tap map for the phase decomposition: (phase, input-offset) -> kernel index (or None)
_KMAP = {(0, 0): 1, (0, 1): None, (1, 0): 2, (1, 1): 0}


def _pack_convtranspose(w, b):
    """ConvTranspose2d weight (Cin,Cout,3,3) -> (4*Cin, 4*Cout) bf16; bias -> (1, 4*Cout) f32."""
    Cin, Cout, k, _ = w.shape
    assert k == 3
    wp = jnp.zeros((2, 2, Cin, 2, 2, Cout), jnp.float32)    # (dy, dx, ci, py, px, co)
    for py in range(2):
        for px in range(2):
            for dy in range(2):
                for dx in range(2):
                    ky, kx = _KMAP[(py, dy)], _KMAP[(px, dx)]
                    if ky is None or kx is None:
                        continue
                    wp = wp.at[dy, dx, :, py, px, :].set(w[:, :, ky, kx])
    wp = wp.reshape(4 * Cin, 4 * Cout)
    bp = jnp.broadcast_to(b[None, None, :], (2, 2, Cout)).reshape(1, 4 * Cout)
    return wp.astype(jnp.bfloat16), bp.astype(jnp.float32)


def pack_params(raw):
    """One-time repack: transposes/reshapes/padding/bf16 casts done outside the forward."""
    p = {}
    # encoder convs: pad Cout to 128 so activations flow lane-dense (padded channels are 0)
    p["c1_w"], p["c1_b"] = _pack_conv(raw["c1_w"], raw["c1_b"], cin_pad=1, cout_pad=128)
    p["c2_w"], p["c2_b"] = _pack_conv(raw["c2_w"], raw["c2_b"], cin_pad=128, cout_pad=128)
    p["c3_w"], p["c3_b"] = _pack_conv(raw["c3_w"], raw["c3_b"], cin_pad=128, cout_pad=128)
    # fc_enc: PyTorch flattens NCHW (c,h,w); internal flatten is NHWC (h,w,c) -> permute columns.
    w = raw["fc_enc_w"].reshape(2, 128, 4, 4).transpose(2, 3, 1, 0).reshape(2048, 2)
    p["fc_enc_w"] = jnp.pad(w, ((0, 0), (0, 126))).astype(jnp.bfloat16)       # N: 2 -> 128
    p["fc_enc_b"] = jnp.pad(raw["fc_enc_b"], (0, 126)).reshape(1, 128).astype(jnp.float32)
    # fc_dec: PyTorch unflattens to (c,h,w); emit (h,w,c)-ordered columns directly.
    w = raw["fc_dec_w"].reshape(128, 4, 4, 2).transpose(1, 2, 0, 3).reshape(2048, 2).T
    p["fc_dec_w"] = jnp.pad(w, ((0, 126), (0, 0))).astype(jnp.bfloat16)       # K: 2 -> 128
    p["fc_dec_b"] = (raw["fc_dec_b"].reshape(128, 4, 4).transpose(1, 2, 0)
                     .reshape(1, 2048).astype(jnp.float32))
    # decoder conv-transposes (phase-packed)
    p["d1_w"], p["d1_b"] = _pack_convtranspose(raw["d1_w"], raw["d1_b"])
    p["d2_w"], p["d2_b"] = _pack_convtranspose(raw["d2_w"], raw["d2_b"])
    p["d3_w"], p["d3_b"] = _pack_convtranspose(raw["d3_w"], raw["d3_b"])
    return p


# ----------------------------------------------------------------------------
# Forward pass (matches the PyTorch Autoencoder)
# ----------------------------------------------------------------------------
def autoencoder_forward(p, x):
    """x: (N,1,32,32) NCHW f32 -> (N,1,32,32) NCHW f32."""
    N = x.shape[0]
    h = jnp.transpose(x, (0, 2, 3, 1)).astype(jnp.bfloat16)            # NHWC, bf16
    # encoder
    h = conv2d_nhwc(h, p["c1_w"], p["c1_b"])                           # (N,16,16,128) 32 real ch
    h = conv2d_nhwc(h, p["c2_w"], p["c2_b"])                           # (N, 8, 8,128) 64 real ch
    h = conv2d_nhwc(h, p["c3_w"], p["c3_b"])                           # (N, 4, 4,128)
    h = h.reshape(N, 4 * 4 * 128)                                      # NHWC flatten
    z = matmul_bias_act(h, p["fc_enc_w"], p["fc_enc_b"], act="none")   # (N,128)  2 real cols
    # decoder
    h = matmul_bias_act(z, p["fc_dec_w"], p["fc_dec_b"], act="none")   # (N,2048)
    h = h.reshape(N, 4, 4, 128)
    h = conv_transpose2d_nhwc(h, p["d1_w"], p["d1_b"], act="relu")     # (N, 8, 8, 64)
    h = conv_transpose2d_nhwc(h, p["d2_w"], p["d2_b"], act="relu")     # (N,16,16, 32)
    h = conv_transpose2d_nhwc(h, p["d3_w"], p["d3_b"], act="sigmoid",
                              out_dtype=jnp.float32)                   # (N,32,32,  1)
    return jnp.transpose(h, (0, 3, 1, 2))


if __name__ == "__main__":
    key = jax.random.PRNGKey(0)
    k_x, k_p = jax.random.split(key)
    # Input spatial size 32 is implied by Linear(128*4*4, 2): 32 -> 16 -> 8 -> 4.
    x = jax.random.uniform(k_x, (2, 1, 32, 32), dtype=jnp.float32)
    params = pack_params(init_params(k_p))

    fwd = jax.jit(autoencoder_forward)
    out = jax.block_until_ready(fwd(params, x))

    assert out.shape == (2, 1, 32, 32), out.shape
    assert out.dtype == jnp.float32
    assert bool(jnp.all(jnp.isfinite(out)))
    assert bool(jnp.all((out >= 0.0) & (out <= 1.0)))  # sigmoid output range
    print("KERNEL_OK")
</pallas_src>

<mosaic_0001>
module attributes {stable_mosaic.version = 11 : i64} {
  func.func @_mm_bias_act_kernel(%arg0: i32, %arg1: memref<256x9xbf16, #tpu.memory_space<vmem>>, %arg2: memref<9x128xbf16, #tpu.memory_space<vmem>>, %arg3: memref<1x128xf32, #tpu.memory_space<vmem>>, %arg4: memref<256x128xbf16, #tpu.memory_space<vmem>>) attributes {dimension_semantics = [#tpu.dimension_semantics<parallel>], iteration_bounds = array<i64: 2>, scalar_prefetch = 0 : i64, scratch_operands = 0 : i64, tpu.core_type = #tpu.core_type<tc>, window_params = [{transform_indices = @transform_0, window_bounds = array<i64: 256, 9>}, {pipeline_mode = #tpu.pipeline_mode<synchronous>, transform_indices = @transform_1, window_bounds = array<i64: 9, 128>}, {pipeline_mode = #tpu.pipeline_mode<synchronous>, transform_indices = @transform_2, window_bounds = array<i64: 1, 128>}, {transform_indices = @transform_3, window_bounds = array<i64: 256, 128>}]} {
    %c0 = arith.constant 0 : index
    %c0_0 = arith.constant 0 : index
    %0 = vector.load %arg1[%c0, %c0_0] : memref<256x9xbf16, #tpu.memory_space<vmem>>, vector<256x9xbf16>
    %c0_1 = arith.constant 0 : index
    %c0_2 = arith.constant 0 : index
    %1 = vector.load %arg2[%c0_1, %c0_2] : memref<9x128xbf16, #tpu.memory_space<vmem>>, vector<9x128xbf16>
    %cst = arith.constant dense<0.000000e+00> : vector<256x128xf32>
    %2 = tpu.matmul %0, %1, %cst {dimension_numbers = #tpu.dot_dimension_numbers<[1], [0], [0], [1], [0, 0, 1, 1], [], []>} : vector<256x9xbf16>, vector<9x128xbf16>, vector<256x128xf32> -> vector<256x128xf32>
    %c0_3 = arith.constant 0 : index
    %c0_4 = arith.constant 0 : index
    %3 = vector.load %arg3[%c0_3, %c0_4] : memref<1x128xf32, #tpu.memory_space<vmem>>, vector<1x128xf32>
    %4 = vector.broadcast %3 : vector<1x128xf32> to vector<256x128xf32>
    %5 = arith.addf %2, %4 : vector<256x128xf32>
    %cst_5 = arith.constant 0.000000e+00 : f32
    %6 = vector.broadcast %cst_5 : f32 to vector<256x128xf32>
    %7 = arith.maximumf %5, %6 : vector<256x128xf32>
    %8 = arith.truncf %7 : vector<256x128xf32> to vector<256x128xbf16>
    %c0_6 = arith.constant 0 : index
    %c0_7 = arith.constant 0 : index
    %9 = vector.load %arg4[%c0_6, %c0_7] : memref<256x128xbf16, #tpu.memory_space<vmem>>, vector<256x128xbf16>
    tpu.vector_store %arg4[%c0_6, %c0_7], %8 {strides = array<i32>} : memref<256x128xbf16, #tpu.memory_space<vmem>>, vector<256x128xbf16>,
    return
  }
  func.func @transform_0(%arg0: i32) -> (i32, i32) {
    %c0_i32 = arith.constant 0 : i32
    %c0_i32_0 = arith.constant 0 : i32
    return %arg0, %c0_i32 : i32, i32
  }
  func.func @transform_1(%arg0: i32) -> (i32, i32) {
    %c0_i32 = arith.constant 0 : i32
    %c0_i32_0 = arith.constant 0 : i32
    %c0_i32_1 = arith.constant 0 : i32
    return %c0_i32, %c0_i32_0 : i32, i32
  }
  func.func @transform_2(%arg0: i32) -> (i32, i32) {
    %c0_i32 = arith.constant 0 : i32
    %c0_i32_0 = arith.constant 0 : i32
    %c0_i32_1 = arith.constant 0 : i32
    return %c0_i32, %c0_i32_0 : i32, i32
  }
  func.func @transform_3(%arg0: i32) -> (i32, i32) {
    %c0_i32 = arith.constant 0 : i32
    %c0_i32_0 = arith.constant 0 : i32
    return %arg0, %c0_i32 : i32, i32
  }
}

module attributes {stable_mosaic.version = 11 : i64} {
  func.func @_mm_bias_act_kernel(%arg0: i32, %arg1: memref<128x1152xbf16, #tpu.memory_space<vmem>>, %arg2: memref<1152x128xbf16, #tpu.memory_space<vmem>>, %arg3: memref<1x128xf32, #tpu.memory_space<vmem>>, %arg4: memref<128x128xbf16, #tpu.memory_space<vmem>>) attributes {dimension_semantics = [#tpu.dimension_semantics<parallel>], iteration_bounds = array<i64: 1>, scalar_prefetch = 0 : i64, scratch_operands = 0 : i64, tpu.core_type = #tpu.core_type<tc>, window_params = [{transform_indices = @transform_0, window_bounds = array<i64: 128, 1152>}, {pipeline_mode = #tpu.pipeline_mode<synchronous>, transform_indices = @transform_1, window_bounds = array<i64: 1152, 128>}, {pipeline_mode = #tpu.pipeline_mode<synchronous>, transform_indices = @transform_2, window_bounds = array<i64: 1, 128>}, {transform_indices = @transform_3, window_bounds = array<i64: 128, 128>}]} {
    %c0 = arith.constant 0 : index
    %c0_0 = arith.constant 0 : index
    %0 = vector.load %arg1[%c0, %c0_0] : memref<128x1152xbf16, #tpu.memory_space<vmem>>, vector<128x1152xbf16>
    %c0_1 = arith.constant 0 : index
    %c0_2 = arith.constant 0 : index
    %1 = vector.load %arg2[%c0_1, %c0_2] : memref<1152x128xbf16, #tpu.memory_space<vmem>>, vector<1152x128xbf16>
    %cst = arith.constant dense<0.000000e+00> : vector<128x128xf32>
    %2 = tpu.matmul %0, %1, %cst {dimension_numbers = #tpu.dot_dimension_numbers<[1], [0], [0], [1], [0, 0, 1, 1], [], []>} : vector<128x1152xbf16>, vector<1152x128xbf16>, vector<128x128xf32> -> vector<128x128xf32>
    %c0_3 = arith.constant 0 : index
    %c0_4 = arith.constant 0 : index
    %3 = vector.load %arg3[%c0_3, %c0_4] : memref<1x128xf32, #tpu.memory_space<vmem>>, vector<1x128xf32>
    %4 = vector.broadcast %3 : vector<1x128xf32> to vector<128x128xf32>
    %5 = arith.addf %2, %4 : vector<128x128xf32>
    %cst_5 = arith.constant 0.000000e+00 : f32
    %6 = vector.broadcast %cst_5 : f32 to vector<128x128xf32>
    %7 = arith.maximumf %5, %6 : vector<128x128xf32>
    %8 = arith.truncf %7 : vector<128x128xf32> to vector<128x128xbf16>
    %c0_6 = arith.constant 0 : index
    %c0_7 = arith.constant 0 : index
    %9 = vector.load %arg4[%c0_6, %c0_7] : memref<128x128xbf16, #tpu.memory_space<vmem>>, vector<128x128xbf16>
    tpu.vector_store %arg4[%c0_6, %c0_7], %8 {strides = array<i32>} : memref<128x128xbf16, #tpu.memory_space<vmem>>, vector<128x128xbf16>,
    return
  }
  func.func @transform_0(%arg0: i32) -> (i32, i32) {
    %c0_i32 = arith.constant 0 : i32
    %c0_i32_0 = arith.constant 0 : i32
    return %arg0, %c0_i32 : i32, i32
  }
  func.func @transform_1(%arg0: i32) -> (i32, i32) {
    %c0_i32 = arith.constant 0 : i32
    %c0_i32_0 = arith.constant 0 : i32
    %c0_i32_1 = arith.constant 0 : i32
    return %c0_i32, %c0_i32_0 : i32, i32
  }
  func.func @transform_2(%arg0: i32) -> (i32, i32) {
    %c0_i32 = arith.constant 0 : i32
    %c0_i32_0 = arith.constant 0 : i32
    %c0_i32_1 = arith.constant 0 : i32
    return %c0_i32, %c0_i32_0 : i32, i32
  }
  func.func @transform_3(%arg0: i32) -> (i32, i32) {
    %c0_i32 = arith.constant 0 : i32
    %c0_i32_0 = arith.constant 0 : i32
    return %arg0, %c0_i32 : i32, i32
  }
}

module attributes {stable_mosaic.version = 11 : i64} {
  func.func @_mm_bias_act_kernel(%arg0: i32, %arg1: memref<2x2048xbf16, #tpu.memory_space<vmem>>, %arg2: memref<2048x128xbf16, #tpu.memory_space<vmem>>, %arg3: memref<1x128xf32, #tpu.memory_space<vmem>>, %arg4: memref<2x128xbf16, #tpu.memory_space<vmem>>) attributes {dimension_semantics = [#tpu.dimension_semantics<parallel>], iteration_bounds = array<i64: 1>, scalar_prefetch = 0 : i64, scratch_operands = 0 : i64, tpu.core_type = #tpu.core_type<tc>, window_params = [{transform_indices = @transform_0, window_bounds = array<i64: 2, 2048>}, {pipeline_mode = #tpu.pipeline_mode<synchronous>, transform_indices = @transform_1, window_bounds = array<i64: 2048, 128>}, {pipeline_mode = #tpu.pipeline_mode<synchronous>, transform_indices = @transform_2, window_bounds = array<i64: 1, 128>}, {transform_indices = @transform_3, window_bounds = array<i64: 2, 128>}]} {
    %c0 = arith.constant 0 : index
    %c0_0 = arith.constant 0 : index
    %0 = vector.load %arg1[%c0, %c0_0] : memref<2x2048xbf16, #tpu.memory_space<vmem>>, vector<2x2048xbf16>
    %c0_1 = arith.constant 0 : index
    %c0_2 = arith.constant 0 : index
    %1 = vector.load %arg2[%c0_1, %c0_2] : memref<2048x128xbf16, #tpu.memory_space<vmem>>, vector<2048x128xbf16>
    %cst = arith.constant dense<0.000000e+00> : vector<2x128xf32>
    %2 = tpu.matmul %0, %1, %cst {dimension_numbers = #tpu.dot_dimension_numbers<[1], [0], [0], [1], [0, 0, 1, 1], [], []>} : vector<2x2048xbf16>, vector<2048x128xbf16>, vector<2x128xf32> -> vector<2x128xf32>
    %c0_3 = arith.constant 0 : index
    %c0_4 = arith.constant 0 : index
    %3 = vector.load %arg3[%c0_3, %c0_4] : memref<1x128xf32, #tpu.memory_space<vmem>>, vector<1x128xf32>
    %4 = vector.broadcast %3 : vector<1x128xf32> to vector<2x128xf32>
    %5 = arith.addf %2, %4 : vector<2x128xf32>
    %6 = arith.truncf %5 : vector<2x128xf32> to vector<2x128xbf16>
    %c0_5 = arith.constant 0 : index
    %c0_6 = arith.constant 0 : index
    %7 = vector.load %arg4[%c0_5, %c0_6] : memref<2x128xbf16, #tpu.memory_space<vmem>>, vector<2x128xbf16>
    tpu.vector_store %arg4[%c0_5, %c0_6], %6 {strides = array<i32>} : memref<2x128xbf16, #tpu.memory_space<vmem>>, vector<2x128xbf16>,
    return
  }
  func.func @transform_0(%arg0: i32) -> (i32, i32) {
    %c0_i32 = arith.constant 0 : i32
    %c0_i32_0 = arith.constant 0 : i32
    return %arg0, %c0_i32 : i32, i32
  }
  func.func @transform_1(%arg0: i32) -> (i32, i32) {
    %c0_i32 = arith.constant 0 : i32
    %c0_i32_0 = arith.constant 0 : i32
    %c0_i32_1 = arith.constant 0 : i32
    return %c0_i32, %c0_i32_0 : i32, i32
  }
  func.func @transform_2(%arg0: i32) -> (i32, i32) {
    %c0_i32 = arith.constant 0 : i32
    %c0_i32_0 = arith.constant 0 : i32
    %c0_i32_1 = arith.constant 0 : i32
    return %c0_i32, %c0_i32_0 : i32, i32
  }
  func.func @transform_3(%arg0: i32) -> (i32, i32) {
    %c0_i32 = arith.constant 0 : i32
    %c0_i32_0 = arith.constant 0 : i32
    return %arg0, %c0_i32 : i32, i32
  }
}

module attributes {stable_mosaic.version = 11 : i64} {
  func.func @_mm_bias_act_kernel(%arg0: i32, %arg1: memref<32x1152xbf16, #tpu.memory_space<vmem>>, %arg2: memref<1152x128xbf16, #tpu.memory_space<vmem>>, %arg3: memref<1x128xf32, #tpu.memory_space<vmem>>, %arg4: memref<32x128xbf16, #tpu.memory_space<vmem>>) attributes {dimension_semantics = [#tpu.dimension_semantics<parallel>], iteration_bounds = array<i64: 1>, scalar_prefetch = 0 : i64, scratch_operands = 0 : i64, tpu.core_type = #tpu.core_type<tc>, window_params = [{transform_indices = @transform_0, window_bounds = array<i64: 32, 1152>}, {pipeline_mode = #tpu.pipeline_mode<synchronous>, transform_indices = @transform_1, window_bounds = array<i64: 1152, 128>}, {pipeline_mode = #tpu.pipeline_mode<synchronous>, transform_indices = @transform_2, window_bounds = array<i64: 1, 128>}, {transform_indices = @transform_3, window_bounds = array<i64: 32, 128>}]} {
    %c0 = arith.constant 0 : index
    %c0_0 = arith.constant 0 : index
    %0 = vector.load %arg1[%c0, %c0_0] : memref<32x1152xbf16, #tpu.memory_space<vmem>>, vector<32x1152xbf16>
    %c0_1 = arith.constant 0 : index
    %c0_2 = arith.constant 0 : index
    %1 = vector.load %arg2[%c0_1, %c0_2] : memref<1152x128xbf16, #tpu.memory_space<vmem>>, vector<1152x128xbf16>
    %cst = arith.constant dense<0.000000e+00> : vector<32x128xf32>
    %2 = tpu.matmul %0, %1, %cst {dimension_numbers = #tpu.dot_dimension_numbers<[1], [0], [0], [1], [0, 0, 1, 1], [], []>} : vector<32x1152xbf16>, vector<1152x128xbf16>, vector<32x128xf32> -> vector<32x128xf32>
    %c0_3 = arith.constant 0 : index
    %c0_4 = arith.constant 0 : index
    %3 = vector.load %arg3[%c0_3, %c0_4] : memref<1x128xf32, #tpu.memory_space<vmem>>, vector<1x128xf32>
    %4 = vector.broadcast %3 : vector<1x128xf32> to vector<32x128xf32>
    %5 = arith.addf %2, %4 : vector<32x128xf32>
    %cst_5 = arith.constant 0.000000e+00 : f32
    %6 = vector.broadcast %cst_5 : f32 to vector<32x128xf32>
    %7 = arith.maximumf %5, %6 : vector<32x128xf32>
    %8 = arith.truncf %7 : vector<32x128xf32> to vector<32x128xbf16>
    %c0_6 = arith.constant 0 : index
    %c0_7 = arith.constant 0 : index
    %9 = vector.load %arg4[%c0_6, %c0_7] : memref<32x128xbf16, #tpu.memory_space<vmem>>, vector<32x128xbf16>
    tpu.vector_store %arg4[%c0_6, %c0_7], %8 {strides = array<i32>} : memref<32x128xbf16, #tpu.memory_space<vmem>>, vector<32x128xbf16>,
    return
  }
  func.func @transform_0(%arg0: i32) -> (i32, i32) {
    %c0_i32 = arith.constant 0 : i32
    %c0_i32_0 = arith.constant 0 : i32
    return %arg0, %c0_i32 : i32, i32
  }
  func.func @transform_1(%arg0: i32) -> (i32, i32) {
    %c0_i32 = arith.constant 0 : i32
    %c0_i32_0 = arith.constant 0 : i32
    %c0_i32_1 = arith.constant 0 : i32
    return %c0_i32, %c0_i32_0 : i32, i32
  }
  func.func @transform_2(%arg0: i32) -> (i32, i32) {
    %c0_i32 = arith.constant 0 : i32
    %c0_i32_0 = arith.constant 0 : i32
    %c0_i32_1 = arith.constant 0 : i32
    return %c0_i32, %c0_i32_0 : i32, i32
  }
  func.func @transform_3(%arg0: i32) -> (i32, i32) {
    %c0_i32 = arith.constant 0 : i32
    %c0_i32_0 = arith.constant 0 : i32
    return %arg0, %c0_i32 : i32, i32
  }
}

module attributes {stable_mosaic.version = 11 : i64} {
  func.func @_mm_bias_act_kernel(%arg0: i32, %arg1: memref<2x128xbf16, #tpu.memory_space<vmem>>, %arg2: memref<128x2048xbf16, #tpu.memory_space<vmem>>, %arg3: memref<1x2048xf32, #tpu.memory_space<vmem>>, %arg4: memref<2x2048xbf16, #tpu.memory_space<vmem>>) attributes {dimension_semantics = [#tpu.dimension_semantics<parallel>], iteration_bounds = array<i64: 1>, scalar_prefetch = 0 : i64, scratch_operands = 0 : i64, tpu.core_type = #tpu.core_type<tc>, window_params = [{transform_indices = @transform_0, window_bounds = array<i64: 2, 128>}, {pipeline_mode = #tpu.pipeline_mode<synchronous>, transform_indices = @transform_1, window_bounds = array<i64: 128, 2048>}, {pipeline_mode = #tpu.pipeline_mode<synchronous>, transform_indices = @transform_2, window_bounds = array<i64: 1, 2048>}, {transform_indices = @transform_3, window_bounds = array<i64: 2, 2048>}]} {
    %c0 = arith.constant 0 : index
    %c0_0 = arith.constant 0 : index
    %0 = vector.load %arg1[%c0, %c0_0] : memref<2x128xbf16, #tpu.memory_space<vmem>>, vector<2x128xbf16>
    %c0_1 = arith.constant 0 : index
    %c0_2 = arith.constant 0 : index
    %1 = vector.load %arg2[%c0_1, %c0_2] : memref<128x2048xbf16, #tpu.memory_space<vmem>>, vector<128x2048xbf16>
    %cst = arith.constant dense<0.000000e+00> : vector<2x2048xf32>
    %2 = tpu.matmul %0, %1, %cst {dimension_numbers = #tpu.dot_dimension_numbers<[1], [0], [0], [1], [0, 0, 1, 1], [], []>} : vector<2x128xbf16>, vector<128x2048xbf16>, vector<2x2048xf32> -> vector<2x2048xf32>
    %c0_3 = arith.constant 0 : index
    %c0_4 = arith.constant 0 : index
    %3 = vector.load %arg3[%c0_3, %c0_4] : memref<1x2048xf32, #tpu.memory_space<vmem>>, vector<1x2048xf32>
    %4 = vector.broadcast %3 : vector<1x2048xf32> to vector<2x2048xf32>
    %5 = arith.addf %2, %4 : vector<2x2048xf32>
    %6 = arith.truncf %5 : vector<2x2048xf32> to vector<2x2048xbf16>
    %c0_5 = arith.constant 0 : index
    %c0_6 = arith.constant 0 : index
    %7 = vector.load %arg4[%c0_5, %c0_6] : memref<2x2048xbf16, #tpu.memory_space<vmem>>, vector<2x2048xbf16>
    tpu.vector_store %arg4[%c0_5, %c0_6], %6 {strides = array<i32>} : memref<2x2048xbf16, #tpu.memory_space<vmem>>, vector<2x2048xbf16>,
    return
  }
  func.func @transform_0(%arg0: i32) -> (i32, i32) {
    %c0_i32 = arith.constant 0 : i32
    %c0_i32_0 = arith.constant 0 : i32
    return %arg0, %c0_i32 : i32, i32
  }
  func.func @transform_1(%arg0: i32) -> (i32, i32) {
    %c0_i32 = arith.constant 0 : i32
    %c0_i32_0 = arith.constant 0 : i32
    %c0_i32_1 = arith.constant 0 : i32
    return %c0_i32, %c0_i32_0 : i32, i32
  }
  func.func @transform_2(%arg0: i32) -> (i32, i32) {
    %c0_i32 = arith.constant 0 : i32
    %c0_i32_0 = arith.constant 0 : i32
    %c0_i32_1 = arith.constant 0 : i32
    return %c0_i32, %c0_i32_0 : i32, i32
  }
  func.func @transform_3(%arg0: i32) -> (i32, i32) {
    %c0_i32 = arith.constant 0 : i32
    %c0_i32_0 = arith.constant 0 : i32
    return %arg0, %c0_i32 : i32, i32
  }
}

module attributes {stable_mosaic.version = 11 : i64} {
  func.func @_mm_bias_act_kernel(%arg0: i32, %arg1: memref<32x512xbf16, #tpu.memory_space<vmem>>, %arg2: memref<512x256xbf16, #tpu.memory_space<vmem>>, %arg3: memref<1x256xf32, #tpu.memory_space<vmem>>, %arg4: memref<32x256xbf16, #tpu.memory_space<vmem>>) attributes {dimension_semantics = [#tpu.dimension_semantics<parallel>], iteration_bounds = array<i64: 1>, scalar_prefetch = 0 : i64, scratch_operands = 0 : i64, tpu.core_type = #tpu.core_type<tc>, window_params = [{transform_indices = @transform_0, window_bounds = array<i64: 32, 512>}, {pipeline_mode = #tpu.pipeline_mode<synchronous>, transform_indices = @transform_1, window_bounds = array<i64: 512, 256>}, {pipeline_mode = #tpu.pipeline_mode<synchronous>, transform_indices = @transform_2, window_bounds = array<i64: 1, 256>}, {transform_indices = @transform_3, window_bounds = array<i64: 32, 256>}]} {
    %c0 = arith.constant 0 : index
    %c0_0 = arith.constant 0 : index
    %0 = vector.load %arg1[%c0, %c0_0] : memref<32x512xbf16, #tpu.memory_space<vmem>>, vector<32x512xbf16>
    %c0_1 = arith.constant 0 : index
    %c0_2 = arith.constant 0 : index
    %1 = vector.load %arg2[%c0_1, %c0_2] : memref<512x256xbf16, #tpu.memory_space<vmem>>, vector<512x256xbf16>
    %cst = arith.constant dense<0.000000e+00> : vector<32x256xf32>
    %2 = tpu.matmul %0, %1, %cst {dimension_numbers = #tpu.dot_dimension_numbers<[1], [0], [0], [1], [0, 0, 1, 1], [], []>} : vector<32x512xbf16>, vector<512x256xbf16>, vector<32x256xf32> -> vector<32x256xf32>
    %c0_3 = arith.constant 0 : index
    %c0_4 = arith.constant 0 : index
    %3 = vector.load %arg3[%c0_3, %c0_4] : memref<1x256xf32, #tpu.memory_space<vmem>>, vector<1x256xf32>
    %4 = vector.broadcast %3 : vector<1x256xf32> to vector<32x256xf32>
    %5 = arith.addf %2, %4 : vector<32x256xf32>
    %cst_5 = arith.constant 0.000000e+00 : f32
    %6 = vector.broadcast %cst_5 : f32 to vector<32x256xf32>
    %7 = arith.maximumf %5, %6 : vector<32x256xf32>
    %8 = arith.truncf %7 : vector<32x256xf32> to vector<32x256xbf16>
    %c0_6 = arith.constant 0 : index
    %c0_7 = arith.constant 0 : index
    %9 = vector.load %arg4[%c0_6, %c0_7] : memref<32x256xbf16, #tpu.memory_space<vmem>>, vector<32x256xbf16>
    tpu.vector_store %arg4[%c0_6, %c0_7], %8 {strides = array<i32>} : memref<32x256xbf16, #tpu.memory_space<vmem>>, vector<32x256xbf16>,
    return
  }
  func.func @transform_0(%arg0: i32) -> (i32, i32) {
    %c0_i32 = arith.constant 0 : i32
    %c0_i32_0 = arith.constant 0 : i32
    return %arg0, %c0_i32 : i32, i32
  }
  func.func @transform_1(%arg0: i32) -> (i32, i32) {
    %c0_i32 = arith.constant 0 : i32
    %c0_i32_0 = arith.constant 0 : i32
    %c0_i32_1 = arith.constant 0 : i32
    return %c0_i32, %c0_i32_0 : i32, i32
  }
  func.func @transform_2(%arg0: i32) -> (i32, i32) {
    %c0_i32 = arith.constant 0 : i32
    %c0_i32_0 = arith.constant 0 : i32
    %c0_i32_1 = arith.constant 0 : i32
    return %c0_i32, %c0_i32_0 : i32, i32
  }
  func.func @transform_3(%arg0: i32) -> (i32, i32) {
    %c0_i32 = arith.constant 0 : i32
    %c0_i32_0 = arith.constant 0 : i32
    return %arg0, %c0_i32 : i32, i32
  }
}

module attributes {stable_mosaic.version = 11 : i64} {
  func.func @_mm_bias_act_kernel(%arg0: i32, %arg1: memref<128x256xbf16, #tpu.memory_space<vmem>>, %arg2: memref<256x128xbf16, #tpu.memory_space<vmem>>, %arg3: memref<1x128xf32, #tpu.memory_space<vmem>>, %arg4: memref<128x128xbf16, #tpu.memory_space<vmem>>) attributes {dimension_semantics = [#tpu.dimension_semantics<parallel>], iteration_bounds = array<i64: 1>, scalar_prefetch = 0 : i64, scratch_operands = 0 : i64, tpu.core_type = #tpu.core_type<tc>, window_params = [{transform_indices = @transform_0, window_bounds = array<i64: 128, 256>}, {pipeline_mode = #tpu.pipeline_mode<synchronous>, transform_indices = @transform_1, window_bounds = array<i64: 256, 128>}, {pipeline_mode = #tpu.pipeline_mode<synchronous>, transform_indices = @transform_2, window_bounds = array<i64: 1, 128>}, {transform_indices = @transform_3, window_bounds = array<i64: 128, 128>}]} {
    %c0 = arith.constant 0 : index
    %c0_0 = arith.constant 0 : index
    %0 = vector.load %arg1[%c0, %c0_0] : memref<128x256xbf16, #tpu.memory_space<vmem>>, vector<128x256xbf16>
    %c0_1 = arith.constant 0 : index
    %c0_2 = arith.constant 0 : index
    %1 = vector.load %arg2[%c0_1, %c0_2] : memref<256x128xbf16, #tpu.memory_space<vmem>>, vector<256x128xbf16>
    %cst = arith.constant dense<0.000000e+00> : vector<128x128xf32>
    %2 = tpu.matmul %0, %1, %cst {dimension_numbers = #tpu.dot_dimension_numbers<[1], [0], [0], [1], [0, 0, 1, 1], [], []>} : vector<128x256xbf16>, vector<256x128xbf16>, vector<128x128xf32> -> vector<128x128xf32>
    %c0_3 = arith.constant 0 : index
    %c0_4 = arith.constant 0 : index
    %3 = vector.load %arg3[%c0_3, %c0_4] : memref<1x128xf32, #tpu.memory_space<vmem>>, vector<1x128xf32>
    %4 = vector.broadcast %3 : vector<1x128xf32> to vector<128x128xf32>
    %5 = arith.addf %2, %4 : vector<128x128xf32>
    %cst_5 = arith.constant 0.000000e+00 : f32
    %6 = vector.broadcast %cst_5 : f32 to vector<128x128xf32>
    %7 = arith.maximumf %5, %6 : vector<128x128xf32>
    %8 = arith.truncf %7 : vector<128x128xf32> to vector<128x128xbf16>
    %c0_6 = arith.constant 0 : index
    %c0_7 = arith.constant 0 : index
    %9 = vector.load %arg4[%c0_6, %c0_7] : memref<128x128xbf16, #tpu.memory_space<vmem>>, vector<128x128xbf16>
    tpu.vector_store %arg4[%c0_6, %c0_7], %8 {strides = array<i32>} : memref<128x128xbf16, #tpu.memory_space<vmem>>, vector<128x128xbf16>,
    return
  }
  func.func @transform_0(%arg0: i32) -> (i32, i32) {
    %c0_i32 = arith.constant 0 : i32
    %c0_i32_0 = arith.constant 0 : i32
    return %arg0, %c0_i32 : i32, i32
  }
  func.func @transform_1(%arg0: i32) -> (i32, i32) {
    %c0_i32 = arith.constant 0 : i32
    %c0_i32_0 = arith.constant 0 : i32
    %c0_i32_1 = arith.constant 0 : i32
    return %c0_i32, %c0_i32_0 : i32, i32
  }
  func.func @transform_2(%arg0: i32) -> (i32, i32) {
    %c0_i32 = arith.constant 0 : i32
    %c0_i32_0 = arith.constant 0 : i32
    %c0_i32_1 = arith.constant 0 : i32
    return %c0_i32, %c0_i32_0 : i32, i32
  }
  func.func @transform_3(%arg0: i32) -> (i32, i32) {
    %c0_i32 = arith.constant 0 : i32
    %c0_i32_0 = arith.constant 0 : i32
    return %arg0, %c0_i32 : i32, i32
  }
}

module attributes {stable_mosaic.version = 11 : i64} {
  func.func @_mm_bias_act_kernel(%arg0: i32, %arg1: memref<256x128xbf16, #tpu.memory_space<vmem>>, %arg2: memref<128x4xbf16, #tpu.memory_space<vmem>>, %arg3: memref<1x4xf32, #tpu.memory_space<vmem>>, %arg4: memref<256x4xf32, #tpu.memory_space<vmem>>) attributes {dimension_semantics = [#tpu.dimension_semantics<parallel>], iteration_bounds = array<i64: 2>, scalar_prefetch = 0 : i64, scratch_operands = 0 : i64, tpu.core_type = #tpu.core_type<tc>, window_params = [{transform_indices = @transform_0, window_bounds = array<i64: 256, 128>}, {pipeline_mode = #tpu.pipeline_mode<synchronous>, transform_indices = @transform_1, window_bounds = array<i64: 128, 4>}, {pipeline_mode = #tpu.pipeline_mode<synchronous>, transform_indices = @transform_2, window_bounds = array<i64: 1, 4>}, {transform_indices = @transform_3, window_bounds = array<i64: 256, 4>}]} {
    %c0 = arith.constant 0 : index
    %c0_0 = arith.constant 0 : index
    %0 = vector.load %arg1[%c0, %c0_0] : memref<256x128xbf16, #tpu.memory_space<vmem>>, vector<256x128xbf16>
    %c0_1 = arith.constant 0 : index
    %c0_2 = arith.constant 0 : index
    %1 = vector.load %arg2[%c0_1, %c0_2] : memref<128x4xbf16, #tpu.memory_space<vmem>>, vector<128x4xbf16>
    %cst = arith.constant dense<0.000000e+00> : vector<256x4xf32>
    %2 = tpu.matmul %0, %1, %cst {dimension_numbers = #tpu.dot_dimension_numbers<[1], [0], [0], [1], [0, 0, 1, 1], [], []>} : vector<256x128xbf16>, vector<128x4xbf16>, vector<256x4xf32> -> vector<256x4xf32>
    %c0_3 = arith.constant 0 : index
    %c0_4 = arith.constant 0 : index
    %3 = vector.load %arg3[%c0_3, %c0_4] : memref<1x4xf32, #tpu.memory_space<vmem>>, vector<1x4xf32>
    %4 = vector.broadcast %3 : vector<1x4xf32> to vector<256x4xf32>
    %5 = arith.addf %2, %4 : vector<256x4xf32>
    %cst_5 = arith.constant 5.000000e-01 : f32
    %6 = vector.broadcast %cst_5 : f32 to vector<256x4xf32>
    %7 = arith.mulf %6, %5 : vector<256x4xf32>
    %8 = math.tanh %7 : vector<256x4xf32>
    %cst_6 = arith.constant 1.000000e+00 : f32
    %9 = vector.broadcast %cst_6 : f32 to vector<256x4xf32>
    %10 = arith.addf %8, %9 : vector<256x4xf32>
    %cst_7 = arith.constant 5.000000e-01 : f32
    %11 = vector.broadcast %cst_7 : f32 to vector<256x4xf32>
    %12 = arith.mulf %11, %10 : vector<256x4xf32>
    %c0_8 = arith.constant 0 : index
    %c0_9 = arith.constant 0 : index
    %13 = vector.load %arg4[%c0_8, %c0_9] : memref<256x4xf32, #tpu.memory_space<vmem>>, vector<256x4xf32>
    tpu.vector_store %arg4[%c0_8, %c0_9], %12 {strides = array<i32>} : memref<256x4xf32, #tpu.memory_space<vmem>>, vector<256x4xf32>,
    return
  }
  func.func @transform_0(%arg0: i32) -> (i32, i32) {
    %c0_i32 = arith.constant 0 : i32
    %c0_i32_0 = arith.constant 0 : i32
    return %arg0, %c0_i32 : i32, i32
  }
  func.func @transform_1(%arg0: i32) -> (i32, i32) {
    %c0_i32 = arith.constant 0 : i32
    %c0_i32_0 = arith.constant 0 : i32
    %c0_i32_1 = arith.constant 0 : i32
    return %c0_i32, %c0_i32_0 : i32, i32
  }
  func.func @transform_2(%arg0: i32) -> (i32, i32) {
    %c0_i32 = arith.constant 0 : i32
    %c0_i32_0 = arith.constant 0 : i32
    %c0_i32_1 = arith.constant 0 : i32
    return %c0_i32, %c0_i32_0 : i32, i32
  }
  func.func @transform_3(%arg0: i32) -> (i32, i32) {
    %c0_i32 = arith.constant 0 : i32
    %c0_i32_0 = arith.constant 0 : i32
    return %arg0, %c0_i32 : i32, i32
  }
}

</mosaic_0001>

<bundles_post_ra>
// kernel: autoencoder_forward.8
= control target key start
LH: loop header
LB: loop body
LE: loop exit
PB: predicated region body
PF: predicated region fallthrough
CT: control target
= control target key end

     0   :  { %s1078_s12 = smov 0   ;;  %s1194_s0 = inlined_call_operand.vmem [shape: bf16[512,9], index: 0, kind: input, shape index: {}]   ;;  %s1195_s1 = inlined_call_operand.vmem [shape: bf16[9,128], index: 1, kind: input, shape index: {}]   ;;  %s1196_s2 = inlined_call_operand.vmem [shape: f32[1,128], index: 2, kind: input, shape index: {}]   ;;  %s1197_s3 = inlined_call_operand.vmem [shape: bf16[512,128], index: 3, kind: output, shape index: {}]  }
   0x1 LB: > { %s766_s13 = sadd.s32 4294967295, %s1055_s12   ;;  %p770_p0 = scmp.ge.s32.totalorder %s1055_s12, 1  ;;  %s1055_s12 = sphi %s1078_s12, %s13_s12  }
   0x2   : > { %p138_p1 = scmp.lt.s32.totalorder %s1055_s12, 3 }
   0x4   : > { %p139_p2 = pnand %p770_p0, %p138_p1 }
   0x5   : > { %v1032_v0 = vld [vmem:[%s1195_s1] sm:$0x1f] (!%p139_p2)   ;;  %vm350_vm0 = vcmask (!%p139_p2), 1043456   ;;  %vm351_vm1 = vcmask (!%p139_p2), 1044480   ;;  %s771_s16 = sshll.u32 (!%p139_p2), %s766_s13, 5  ;;  %v1057_v1 = vmov (!%p139_p2), 65535  }
   0x6   : > { %142 = sbr.rel (%p139_p2) target bundleno = 265 (0x109), region = 32  ;;  %v352_v2 = vsel (!%p139_p2), %vm350_vm0, 4294967295, %v1057_v1  ;;  %p163_p3 = scmp.lt.s32.totalorder (!%p139_p2), %s771_s16, 63  ;;  %vm301_vm2 = vcmask (!%p139_p2), 72704   ;;  %v1134_v21 = vld [vmem:[%s1196_s2] ss:$0 sm:$0xff] (!%p139_p2) }
   0x7   : > { %v353_v3 = vsel (!%p139_p2), %vm351_vm1, %v352_v2, 0 }
   0x8   : > { %v355_v4 = vand.u32 (!%p139_p2), %v1032_v0, %v353_v3 }
   0xa   : > { %987 = vmatprep.subr.bf16.mxu0 (!%p139_p2), %v355_v4  ;;  %1021 = vmatprep.subr.bf16.mxu1 (!%p139_p2), %v355_v4 }
   0xb   : > { %988 = vmatpush3.bf16.msra.mxu0 (!%p139_p2), %v355_v4  ;;  %1022 = vmatpush3.bf16.msra.mxu1 (!%p139_p2), %v355_v4 }
   0xd   : > { %s1199_s16 = smov (!%p163_p3, %s771_s16), 63 }
   0xe   : > { %s772_s17 = sshll.u32 %s1199_s16, 2 }
   0xf   : > { %s1097_s20 = scalar_lea.vmem %s1194_s0, %s772_s17  ;;  %s1149_s25 = scalar_lea.vmem %s1197_s3, %s772_s17 }
  0x10   : > { %v1033_v5 = vld [vmem:[%s1097_s20] sm:$0xff]   ;;  %v1035_v7 = vld [vmem:[%s1097_s20 + $0x8] sm:$0xff]   ;;  %v1037_v9 = vld [vmem:[%s1097_s20 + $0x10] sm:$0xff]  }
  0x11   : > { %v1034_v6 = vld [vmem:[%s1097_s20 + $0x40] sm:$0xff]   ;;  %989 = vmatprep.mubr.msk.bf16.mxu0 %vm301_vm2, %v1033_v5  ;;  %v1036_v8 = vld [vmem:[%s1097_s20 + $0x48] sm:$0xff]   ;;  %v1038_v10 = vld [vmem:[%s1097_s20 + $0x50] sm:$0xff]  }
  0x12   : > { %1005 = vmatprep.mubr.msk.bf16.mxu1 %vm301_vm2, %v1034_v6  ;;  %990 = vmatmul.mubr.msk.bf16.vlgmr.msra.gmra.mrb[0].mxu0 %vm301_vm2, %v1035_v7  ;;  %v1039_v11 = vld [vmem:[%s1097_s20 + $0x18] sm:$0xff]   ;;  %v1041_v13 = vld [vmem:[%s1097_s20 + $0x20] sm:$0xff]   ;;  %v1043_v15 = vld [vmem:[%s1097_s20 + $0x28] sm:$0xff]  }
  0x13   : > { %1006 = vmatmul.mubr.msk.bf16.vlgmr.msra.gmra.mrb[0].mxu1 %vm301_vm2, %v1036_v8  ;;  %993 = vmatprep.mubr.msk.bf16.mxu0 %vm301_vm2, %v1037_v9  ;;  %v1040_v12 = vld [vmem:[%s1097_s20 + $0x58] sm:$0xff]   ;;  %v1042_v14 = vld [vmem:[%s1097_s20 + $0x60] sm:$0xff]   ;;  %v1044_v16 = vld [vmem:[%s1097_s20 + $0x68] sm:$0xff]  }
  0x14   : > { %1009 = vmatprep.mubr.msk.bf16.mxu1 %vm301_vm2, %v1038_v10  ;;  %v1045_v17 = vld [vmem:[%s1097_s20 + $0x30] sm:$0xff]   ;;  %v1047_v19 = vld [vmem:[%s1097_s20 + $0x38] sm:$0xff]  }
  0x15   : > { %v1046_v18 = vld [vmem:[%s1097_s20 + $0x70] sm:$0xff]   ;;  %v1048_v20 = vld [vmem:[%s1097_s20 + $0x78] sm:$0xff]  }
  0x1a   : > { %994 = vmatmul.mubr.msk.bf16.gmra.mrb[4].mxu0 %vm301_vm2, %v1039_v11 }
  0x1b   : > { %1010 = vmatmul.mubr.msk.bf16.gmra.mrb[4].mxu1 %vm301_vm2, %v1040_v12  ;;  %997 = vmatprep.mubr.msk.bf16.mxu0 %vm301_vm2, %v1041_v13 }
  0x1c   : > { %1013 = vmatprep.mubr.msk.bf16.mxu1 %vm301_vm2, %v1042_v14 }
  0x22   : > { %998 = vmatmul.mubr.msk.bf16.gmra.mrb[8].mxu0 %vm301_vm2, %v1043_v15 }
  0x23   : > { %1014 = vmatmul.mubr.msk.bf16.gmra.mrb[8].mxu1 %vm301_vm2, %v1044_v16  ;;  %1001 = vmatprep.mubr.msk.bf16.mxu0 %vm301_vm2, %v1045_v17 }
  0x24   : > { %1017 = vmatprep.mubr.msk.bf16.mxu1 %vm301_vm2, %v1046_v18 }
  0x2a   : > { %1002 = vmatmul.mubr.msk.bf16.gmra.mrb[12].mxu0 %vm301_vm2, %v1047_v19 }
  0x2b   : > { %1018 = vmatmul.mubr.msk.bf16.gmra.mrb[12].mxu1 %vm301_vm2, %v1048_v20 }
  0xe5   : > { %v991_v22 = vpop.f32.mrb[0].mxu0 }
  0xe6   : > { %v400_v23 = vadd.f32 %v991_v22, %v1134_v21  ;;  %v1007_v24 = vpop.f32.mrb[0].mxu1  ;;  %v391_v25 = vpop.f32.mrb[1].mxu0 }
  0xe7   : > { %v464_v26 = vadd.f32 %v1007_v24, %v1134_v21  ;;  %v392_v27 = vadd.f32 %v1134_v21, %v391_v25  ;;  %v455_v28 = vpop.f32.mrb[1].mxu1  ;;  %v992_v29 = vpop.f32.mrb[2].mxu0 }
  0xe8   : > { %v456_v30 = vadd.f32 %v1134_v21, %v455_v28  ;;  %v403_v31 = vadd.f32 %v992_v29, %v1134_v21  ;;  %v1008_v32 = vpop.f32.mrb[2].mxu1  ;;  %v394_v33 = vpop.f32.mrb[3].mxu0  ;;  %v520_v37 = vmax.f32 %v400_v23, 0.0 }
  0xe9   : > { %v467_v34 = vadd.f32 %v1008_v32, %v1134_v21  ;;  %v395_v35 = vadd.f32 %v1134_v21, %v394_v33  ;;  %v458_v36 = vpop.f32.mrb[3].mxu1  ;;  %v536_v40 = vmax.f32 %v464_v26, 0.0  ;;  %v518_v41 = vmax.f32 %v392_v27, 0.0 }
  0xea   : > { %v521_v38 = vmax.f32 %v403_v31, 0.0  ;;  %v459_v39 = vadd.f32 %v1134_v21, %v458_v36  ;;  %v534_v44 = vmax.f32 %v456_v30, 0.0 }
  0xeb   : > { %v537_v42 = vmax.f32 %v467_v34, 0.0  ;;  %v519_v43 = vmax.f32 %v395_v35, 0.0 }
  0xec   : > { %v883_v45 = vpack.c.bf16 %v521_v38, %v520_v37  ;;  %v535_v46 = vmax.f32 %v459_v39, 0.0 }
  0xed   : > { %v923_v47 = vpack.c.bf16 %v537_v42, %v536_v40  ;;  %v878_v48 = vpack.c.bf16 %v519_v43, %v518_v41  ;;  %v995_v49 = vpop.f32.mrb[4].mxu0 }
  0xee   : > { %955 = vst [vmem:[%s1149_s25 + $0x8] sm:$0xff] %v883_v45   ;;  %v918_v50 = vpack.c.bf16 %v535_v46, %v534_v44  ;;  %v416_v51 = vadd.f32 %v995_v49, %v1134_v21  ;;  %v1011_v52 = vpop.f32.mrb[4].mxu1  ;;  %v407_v53 = vpop.f32.mrb[5].mxu0 }
  0xef   : > { %963 = vst [vmem:[%s1149_s25 + $0x48] sm:$0xff] %v923_v47   ;;  %879 = vst [vmem:[%s1149_s25] sm:$0xff] %v878_v48   ;;  %v480_v54 = vadd.f32 %v1011_v52, %v1134_v21  ;;  %v408_v55 = vadd.f32 %v1134_v21, %v407_v53  ;;  %v471_v56 = vpop.f32.mrb[5].mxu1  ;;  %v996_v57 = vpop.f32.mrb[6].mxu0 }
  0xf0   : > { %962 = vst [vmem:[%s1149_s25 + $0x40] sm:$0xff] %v918_v50   ;;  %v472_v58 = vadd.f32 %v1134_v21, %v471_v56  ;;  %v419_v59 = vadd.f32 %v996_v57, %v1134_v21  ;;  %v1012_v60 = vpop.f32.mrb[6].mxu1  ;;  %v410_v61 = vpop.f32.mrb[7].mxu0  ;;  %v524_v1 = vmax.f32 %v416_v51, 0.0 }
  0xf1   : > { %v483_v62 = vadd.f32 %v1012_v60, %v1134_v21  ;;  %v411_v63 = vadd.f32 %v1134_v21, %v410_v61  ;;  %v474_v0 = vpop.f32.mrb[7].mxu1  ;;  %v540_v4 = vmax.f32 %v480_v54, 0.0  ;;  %v522_v5 = vmax.f32 %v408_v55, 0.0 }
  0xf2   : > { %v525_v2 = vmax.f32 %v419_v59, 0.0  ;;  %v475_v3 = vadd.f32 %v1134_v21, %v474_v0  ;;  %v538_v8 = vmax.f32 %v472_v58, 0.0 }
  0xf3   : > { %v541_v6 = vmax.f32 %v483_v62, 0.0  ;;  %v523_v7 = vmax.f32 %v411_v63, 0.0 }
  0xf4   : > { %v893_v9 = vpack.c.bf16 %v525_v2, %v524_v1  ;;  %v539_v10 = vmax.f32 %v475_v3, 0.0 }
  0xf5   : > { %v933_v11 = vpack.c.bf16 %v541_v6, %v540_v4  ;;  %v888_v12 = vpack.c.bf16 %v523_v7, %v522_v5  ;;  %v999_v13 = vpop.f32.mrb[8].mxu0 }
  0xf6   : > { %957 = vst [vmem:[%s1149_s25 + $0x18] sm:$0xff] %v893_v9   ;;  %v928_v14 = vpack.c.bf16 %v539_v10, %v538_v8  ;;  %v432_v15 = vadd.f32 %v999_v13, %v1134_v21  ;;  %v1015_v16 = vpop.f32.mrb[8].mxu1  ;;  %v423_v17 = vpop.f32.mrb[9].mxu0 }
  0xf7   : > { %965 = vst [vmem:[%s1149_s25 + $0x58] sm:$0xff] %v933_v11   ;;  %956 = vst [vmem:[%s1149_s25 + $0x10] sm:$0xff] %v888_v12   ;;  %v496_v18 = vadd.f32 %v1015_v16, %v1134_v21  ;;  %v424_v19 = vadd.f32 %v1134_v21, %v423_v17  ;;  %v487_v20 = vpop.f32.mrb[9].mxu1  ;;  %v1000_v22 = vpop.f32.mrb[10].mxu0 }
  0xf8   : > { %964 = vst [vmem:[%s1149_s25 + $0x50] sm:$0xff] %v928_v14   ;;  %v488_v23 = vadd.f32 %v1134_v21, %v487_v20  ;;  %v435_v24 = vadd.f32 %v1000_v22, %v1134_v21  ;;  %v1016_v25 = vpop.f32.mrb[10].mxu1  ;;  %v426_v26 = vpop.f32.mrb[11].mxu0  ;;  %v528_v30 = vmax.f32 %v432_v15, 0.0 }
  0xf9   : > { %v499_v27 = vadd.f32 %v1016_v25, %v1134_v21  ;;  %v427_v28 = vadd.f32 %v1134_v21, %v426_v26  ;;  %v490_v29 = vpop.f32.mrb[11].mxu1  ;;  %v544_v33 = vmax.f32 %v496_v18, 0.0  ;;  %v526_v34 = vmax.f32 %v424_v19, 0.0 }
  0xfa   : > { %v529_v31 = vmax.f32 %v435_v24, 0.0  ;;  %v491_v32 = vadd.f32 %v1134_v21, %v490_v29  ;;  %v542_v37 = vmax.f32 %v488_v23, 0.0 }
  0xfb   : > { %v545_v35 = vmax.f32 %v499_v27, 0.0  ;;  %v527_v36 = vmax.f32 %v427_v28, 0.0 }
  0xfc   : > { %v903_v38 = vpack.c.bf16 %v529_v31, %v528_v30  ;;  %v543_v39 = vmax.f32 %v491_v32, 0.0 }
  0xfd   : > { %v943_v40 = vpack.c.bf16 %v545_v35, %v544_v33  ;;  %v898_v41 = vpack.c.bf16 %v527_v36, %v526_v34  ;;  %v1003_v42 = vpop.f32.mrb[12].mxu0 }
  0xfe   : > { %959 = vst [vmem:[%s1149_s25 + $0x28] sm:$0xff] %v903_v38   ;;  %v938_v43 = vpack.c.bf16 %v543_v39, %v542_v37  ;;  %v448_v44 = vadd.f32 %v1003_v42, %v1134_v21  ;;  %v1019_v45 = vpop.f32.mrb[12].mxu1  ;;  %v439_v46 = vpop.f32.mrb[13].mxu0 }
  0xff   : > { %967 = vst [vmem:[%s1149_s25 + $0x68] sm:$0xff] %v943_v40   ;;  %958 = vst [vmem:[%s1149_s25 + $0x20] sm:$0xff] %v898_v41   ;;  %v512_v47 = vadd.f32 %v1019_v45, %v1134_v21  ;;  %v440_v48 = vadd.f32 %v1134_v21, %v439_v46  ;;  %v503_v49 = vpop.f32.mrb[13].mxu1  ;;  %v1004_v50 = vpop.f32.mrb[14].mxu0 }
 0x100   : > { %966 = vst [vmem:[%s1149_s25 + $0x60] sm:$0xff] %v938_v43   ;;  %v504_v51 = vadd.f32 %v1134_v21, %v503_v49  ;;  %v451_v52 = vadd.f32 %v1004_v50, %v1134_v21  ;;  %v1020_v53 = vpop.f32.mrb[14].mxu1  ;;  %v442_v54 = vpop.f32.mrb[15].mxu0  ;;  %v532_v58 = vmax.f32 %v448_v44, 0.0 }
 0x101   : > { %v515_v55 = vadd.f32 %v1020_v53, %v1134_v21  ;;  %v443_v56 = vadd.f32 %v1134_v21, %v442_v54  ;;  %v506_v57 = vpop.f32.mrb[15].mxu1  ;;  %v548_v61 = vmax.f32 %v512_v47, 0.0  ;;  %v530_v62 = vmax.f32 %v440_v48, 0.0 }
 0x102   : > { %v533_v59 = vmax.f32 %v451_v52, 0.0  ;;  %v507_v60 = vadd.f32 %v1134_v21, %v506_v57  ;;  %v546_v1 = vmax.f32 %v504_v51, 0.0 }
 0x103   : > { %v549_v63 = vmax.f32 %v515_v55, 0.0  ;;  %v531_v0 = vmax.f32 %v443_v56, 0.0 }
 0x104   : > { %v913_v2 = vpack.c.bf16 %v533_v59, %v532_v58  ;;  %v547_v3 = vmax.f32 %v507_v60, 0.0 }
 0x105   : > { %v953_v4 = vpack.c.bf16 %v549_v63, %v548_v61  ;;  %v908_v5 = vpack.c.bf16 %v531_v0, %v530_v62 }
 0x106   : > { %961 = vst [vmem:[%s1149_s25 + $0x38] sm:$0xff] %v913_v2   ;;  %v948_v6 = vpack.c.bf16 %v547_v3, %v546_v1 }
 0x107   : > { %969 = vst [vmem:[%s1149_s25 + $0x78] sm:$0xff] %v953_v4   ;;  %960 = vst [vmem:[%s1149_s25 + $0x30] sm:$0xff] %v908_v5  }
 0x108   : > { %968 = vst [vmem:[%s1149_s25 + $0x70] sm:$0xff] %v948_v6  }
 0x109 PF: > { %s13_s12 = sadd.s32 1, %s1055_s12  }
 0x10a   : > { %p10_p4 = scmp.ge.s32.totalorder %s13_s12, 4  }
 0x10c   :  { %12 = sbr.rel (!%p10_p4) target bundleno = 1 (0x1), region = 62 }

// kernel: autoencoder_forward.9
= control target key start
LH: loop header
LB: loop body
LE: loop exit
PB: predicated region body
PF: predicated region fallthrough
CT: control target
= control target key end

     0   :  { %s2926_s1 = inlined_call_operand.vmem [shape: bf16[1152,128], index: 1, kind: input, shape index: {}]   ;;  %s2927_s0 = inlined_call_operand.vmem [shape: bf16[128,1152], index: 0, kind: input, shape index: {}]   ;;  %s2928_s2 = inlined_call_operand.vmem [shape: f32[1,128], index: 2, kind: input, shape index: {}]   ;;  %s2929_s3 = inlined_call_operand.vmem [shape: bf16[128,128], index: 3, kind: output, shape index: {}]  }
   0x1   :  { %v2175_v0 = vld [vmem:[%s2926_s1 + $0x40] sm:$0xff]   ;;  %v2179_v4 = vld [vmem:[%s2926_s1 + $0x48] sm:$0xff]   ;;  %v2183_v8 = vld [vmem:[%s2926_s1 + $0x50] sm:$0xff]  }
   0x2   :  { %v2176_v1 = vld [vmem:[%s2926_s1 + $0xc0] sm:$0xff]   ;;  %1855 = vmatprep.subr.bf16.mxu0 %v2175_v0  ;;  %v2180_v5 = vld [vmem:[%s2926_s1 + $0xc8] sm:$0xff]   ;;  %v2184_v9 = vld [vmem:[%s2926_s1 + $0xd0] sm:$0xff]  }
   0x3   :  { %v2177_v2 = vld [vmem:[%s2926_s1] sm:$0xff]   ;;  %1919 = vmatprep.subr.bf16.mxu1 %v2176_v1  ;;  %v2181_v6 = vld [vmem:[%s2926_s1 + $0x8] sm:$0xff]   ;;  %v2185_v10 = vld [vmem:[%s2926_s1 + $0x10] sm:$0xff]  }
   0x4   :  { %v2178_v3 = vld [vmem:[%s2926_s1 + $0x80] sm:$0xff]   ;;  %1856 = vmatpush3.bf16.msra.mxu0 %v2177_v2  ;;  %v2182_v7 = vld [vmem:[%s2926_s1 + $0x88] sm:$0xff]   ;;  %v2186_v11 = vld [vmem:[%s2926_s1 + $0x90] sm:$0xff]  }
   0x5   :  { %1920 = vmatpush3.bf16.msra.mxu1 %v2178_v3  ;;  %1857 = vmatprep.subr.bf16.mxu0 %v2179_v4  ;;  %v2187_v12 = vld [vmem:[%s2926_s1 + $0x58] sm:$0xff]   ;;  %v2191_v16 = vld [vmem:[%s2926_s1 + $0x60] sm:$0xff]   ;;  %v2195_v20 = vld [vmem:[%s2926_s1 + $0x68] sm:$0xff]  }
   0x6   :  { %1921 = vmatprep.subr.bf16.mxu1 %v2180_v5  ;;  %v2188_v13 = vld [vmem:[%s2926_s1 + $0xd8] sm:$0xff]   ;;  %v2192_v17 = vld [vmem:[%s2926_s1 + $0xe0] sm:$0xff]   ;;  %v2196_v21 = vld [vmem:[%s2926_s1 + $0xe8] sm:$0xff]  }
   0x7   :  { %v2189_v14 = vld [vmem:[%s2926_s1 + $0x18] sm:$0xff]   ;;  %v2193_v18 = vld [vmem:[%s2926_s1 + $0x20] sm:$0xff]   ;;  %v2197_v22 = vld [vmem:[%s2926_s1 + $0x28] sm:$0xff]  }
   0x8   :  { %1858 = vmatpush3.bf16.msra.mxu0 %v2181_v6  ;;  %v2190_v15 = vld [vmem:[%s2926_s1 + $0x98] sm:$0xff]   ;;  %v2194_v19 = vld [vmem:[%s2926_s1 + $0xa0] sm:$0xff]   ;;  %v2198_v23 = vld [vmem:[%s2926_s1 + $0xa8] sm:$0xff]  }
   0x9   :  { %1922 = vmatpush3.bf16.msra.mxu1 %v2182_v7  ;;  %1859 = vmatprep.subr.bf16.mxu0 %v2183_v8  ;;  %v2199_v24 = vld [vmem:[%s2926_s1 + $0x70] sm:$0xff]   ;;  %v2203_v28 = vld [vmem:[%s2926_s1 + $0x78] sm:$0xff]   ;;  %v2207_v32 = vld [vmem:[%s2927_s0] ss:$36 sps:$4 sm:$0xff]  }
   0xa   :  { %1923 = vmatprep.subr.bf16.mxu1 %v2184_v9  ;;  %v2200_v25 = vld [vmem:[%s2926_s1 + $0xf0] sm:$0xff]   ;;  %v2204_v29 = vld [vmem:[%s2926_s1 + $0xf8] sm:$0xff]   ;;  %v2209_v33 = vld [vmem:[%s2927_s0 + $0x4] ss:$36 sps:$4 sm:$0xff]  }
   0xb   :  { %v2201_v26 = vld [vmem:[%s2926_s1 + $0x30] sm:$0xff]   ;;  %v2205_v30 = vld [vmem:[%s2926_s1 + $0x38] sm:$0xff]   ;;  %v2210_v34 = vld [vmem:[%s2927_s0 + $0x8] ss:$36 sps:$4 sm:$0xff]   ;;  %1078 = vmatprep.mubr.bf16.mxu0 %v2209_v33 }
   0xc   :  { %1860 = vmatpush3.bf16.msra.mxu0 %v2185_v10  ;;  %v2202_v27 = vld [vmem:[%s2926_s1 + $0xb0] sm:$0xff]   ;;  %v2206_v31 = vld [vmem:[%s2926_s1 + $0xb8] sm:$0xff]   ;;  %v2213_v36 = vld [vmem:[%s2926_s1 + $0x140] sm:$0xff]  }
   0xd   :  { %1924 = vmatpush3.bf16.msra.mxu1 %v2186_v11  ;;  %1861 = vmatprep.subr.bf16.mxu0 %v2187_v12  ;;  %v2212_v35 = vld [vmem:[%s2927_s0 + $0xc] ss:$36 sps:$4 sm:$0xff]   ;;  %v2214_v37 = vld [vmem:[%s2926_s1 + $0x1c0] sm:$0xff]   ;;  %v2219_v41 = vld [vmem:[%s2927_s0 + $0x54] ss:$36 sps:$4 sm:$0xff]  }
   0xe   :  { %1925 = vmatprep.subr.bf16.mxu1 %v2188_v13  ;;  %1175 = vmatprep.mubr.bf16.mxu1 %v2212_v35  ;;  %v2215_v38 = vld [vmem:[%s2926_s1 + $0x100] sm:$0xff]   ;;  %v2217_v40 = vld [vmem:[%s2927_s0 + $0x4c] ss:$36 sps:$4 sm:$0xff]   ;;  %v2227_v48 = vld [vmem:[%s2927_s0 + $0x94] ss:$36 sps:$4 sm:$0xff]  }
   0xf   :  { %v2216_v39 = vld [vmem:[%s2926_s1 + $0x180] sm:$0xff]   ;;  %v2221_v42 = vld [vmem:[%s2927_s0 + $0x48] ss:$36 sps:$4 sm:$0xff]   ;;  %v2222_v43 = vld [vmem:[%s2927_s0 + $0x50] ss:$36 sps:$4 sm:$0xff]  }
  0x10   :  { %1862 = vmatpush3.bf16.msra.mxu0 %v2189_v14  ;;  %v2223_v44 = vld [vmem:[%s2926_s1 + $0x148] sm:$0xff]   ;;  %v2229_v49 = vld [vmem:[%s2927_s0 + $0x9c] ss:$36 sps:$4 sm:$0xff]   ;;  %v2231_v50 = vld [vmem:[%s2927_s0 + $0x90] ss:$36 sps:$4 sm:$0xff]  }
  0x11   :  { %1926 = vmatpush3.bf16.msra.mxu1 %v2190_v15  ;;  %1863 = vmatprep.subr.bf16.mxu0 %v2191_v16  ;;  %v2224_v45 = vld [vmem:[%s2926_s1 + $0x1c8] sm:$0xff]   ;;  %v2232_v51 = vld [vmem:[%s2927_s0 + $0x98] ss:$36 sps:$4 sm:$0xff]   ;;  %v2233_v52 = vld [vmem:[%s2926_s1 + $0x150] sm:$0xff]  }
  0x12   :  { %1927 = vmatprep.subr.bf16.mxu1 %v2192_v17  ;;  %v2225_v46 = vld [vmem:[%s2926_s1 + $0x108] sm:$0xff]   ;;  %v2234_v53 = vld [vmem:[%s2926_s1 + $0x1d0] sm:$0xff]   ;;  %v2237_v56 = vld [vmem:[%s2927_s0 + $0xdc] ss:$36 sps:$4 sm:$0xff]  }
  0x13   :  { %v2226_v47 = vld [vmem:[%s2926_s1 + $0x188] sm:$0xff]   ;;  %v2235_v54 = vld [vmem:[%s2926_s1 + $0x110] sm:$0xff]   ;;  %v2241_v58 = vld [vmem:[%s2927_s0 + $0xd8] ss:$36 sps:$4 sm:$0xff]  }
  0x14   :  { %1864 = vmatpush3.bf16.msra.mxu0 %v2193_v18  ;;  %v2236_v55 = vld [vmem:[%s2926_s1 + $0x190] sm:$0xff]   ;;  %v2239_v57 = vld [vmem:[%s2927_s0 + $0xe4] ss:$36 sps:$4 sm:$0xff]   ;;  %v2243_v60 = vld [vmem:[%s2926_s1 + $0x158] sm:$0xff]  }
  0x15   :  { %1928 = vmatpush3.bf16.msra.mxu1 %v2194_v19  ;;  %1865 = vmatprep.subr.bf16.mxu0 %v2195_v20  ;;  %v2242_v59 = vld [vmem:[%s2927_s0 + $0xe0] ss:$36 sps:$4 sm:$0xff]   ;;  %v2244_v61 = vld [vmem:[%s2926_s1 + $0x1d8] sm:$0xff]   ;;  %v2249_v1 = vld [vmem:[%s2927_s0 + $0x12c] ss:$36 sps:$4 sm:$0xff]  }
  0x16   :  { %1929 = vmatprep.subr.bf16.mxu1 %v2196_v21  ;;  %v2245_v62 = vld [vmem:[%s2926_s1 + $0x118] sm:$0xff]   ;;  %v2247_v0 = vld [vmem:[%s2927_s0 + $0x124] ss:$36 sps:$4 sm:$0xff]   ;;  %v2257_v8 = vld [vmem:[%s2927_s0 + $0x16c] ss:$36 sps:$4 sm:$0xff]  }
  0x17   :  { %v2246_v63 = vld [vmem:[%s2926_s1 + $0x198] sm:$0xff]   ;;  %v2251_v2 = vld [vmem:[%s2927_s0 + $0x120] ss:$36 sps:$4 sm:$0xff]   ;;  %v2252_v4 = vld [vmem:[%s2927_s0 + $0x128] ss:$36 sps:$4 sm:$0xff]  }
  0x18   :  { %1866 = vmatpush3.bf16.msra.mxu0 %v2197_v22  ;;  %v2253_v3 = vld [vmem:[%s2926_s1 + $0x160] sm:$0xff]   ;;  %v2259_v9 = vld [vmem:[%s2927_s0 + $0x174] ss:$36 sps:$4 sm:$0xff]   ;;  %v2263_v10 = vld [vmem:[%s2926_s1 + $0x168] sm:$0xff]  }
  0x19   :  { %1930 = vmatpush3.bf16.msra.mxu1 %v2198_v23  ;;  %1867 = vmatprep.subr.bf16.mxu0 %v2199_v24  ;;  %v2254_v5 = vld [vmem:[%s2926_s1 + $0x1e0] sm:$0xff]   ;;  %v2264_v11 = vld [vmem:[%s2926_s1 + $0x1e8] sm:$0xff]   ;;  %v2262_v15 = vld [vmem:[%s2927_s0 + $0x170] ss:$36 sps:$4 sm:$0xff]  }
  0x1a   :  { %1931 = vmatprep.subr.bf16.mxu1 %v2200_v25  ;;  %v2255_v6 = vld [vmem:[%s2926_s1 + $0x120] sm:$0xff]   ;;  %v2261_v12 = vld [vmem:[%s2927_s0 + $0x168] ss:$36 sps:$4 sm:$0xff]   ;;  %v2267_v16 = vld [vmem:[%s2927_s0 + $0x1b4] ss:$36 sps:$4 sm:$0xff]  }
  0x1b   :  { %v2256_v7 = vld [vmem:[%s2926_s1 + $0x1a0] sm:$0xff]   ;;  %v2265_v13 = vld [vmem:[%s2926_s1 + $0x128] sm:$0xff]   ;;  %v2273_v18 = vld [vmem:[%s2926_s1 + $0x170] sm:$0xff]  }
  0x1c   :  { %1868 = vmatpush3.bf16.msra.mxu0 %v2201_v26  ;;  %v2266_v14 = vld [vmem:[%s2926_s1 + $0x1a8] sm:$0xff]   ;;  %v2269_v17 = vld [vmem:[%s2927_s0 + $0x1bc] ss:$36 sps:$4 sm:$0xff]   ;;  %v2274_v19 = vld [vmem:[%s2926_s1 + $0x1f0] sm:$0xff]  }
  0x1d   :  { %1932 = vmatpush3.bf16.msra.mxu1 %v2202_v27  ;;  %1869 = vmatprep.subr.bf16.mxu0 %v2203_v28  ;;  %v2275_v20 = vld [vmem:[%s2926_s1 + $0x130] sm:$0xff]   ;;  %v2272_v23 = vld [vmem:[%s2927_s0 + $0x1b8] ss:$36 sps:$4 sm:$0xff]   ;;  %v2279_v25 = vld [vmem:[%s2927_s0 + $0x204] ss:$36 sps:$4 sm:$0xff]  }
  0x1e   :  { %1933 = vmatprep.subr.bf16.mxu1 %v2204_v29  ;;  %v2276_v21 = vld [vmem:[%s2926_s1 + $0x1b0] sm:$0xff]   ;;  %v2277_v24 = vld [vmem:[%s2927_s0 + $0x1fc] ss:$36 sps:$4 sm:$0xff]  }
  0x1f   :  { %v2271_v22 = vld [vmem:[%s2927_s0 + $0x1b0] ss:$36 sps:$4 sm:$0xff]   ;;  %v2283_v26 = vld [vmem:[%s2926_s1 + $0x178] sm:$0xff]  }
  0x20   :  { %1870 = vmatpush3.bf16.msra.mxu0 %v2205_v30  ;;  %v2284_v27 = vld [vmem:[%s2926_s1 + $0x1f8] sm:$0xff]   ;;  %v2287_v35 = vld [vmem:[%s2927_s0 + $0x10] ss:$36 sps:$4 sm:$0xff]  }
  0x21   :  { %1934 = vmatpush3.bf16.msra.mxu1 %v2206_v31  ;;  %1983 = vmatprep.subr.bf16.mxu0 %v2213_v36  ;;  %v2285_v28 = vld [vmem:[%s2926_s1 + $0x138] sm:$0xff]   ;;  %v2282_v31 = vld [vmem:[%s2927_s0 + $0x200] ss:$36 sps:$4 sm:$0xff]  }
  0x22   :  { %2047 = vmatprep.subr.bf16.mxu1 %v2214_v37  ;;  %v2286_v29 = vld [vmem:[%s2926_s1 + $0x1b8] sm:$0xff]  }
  0x23   :  { %1079 = vmatmul.mubr.bf16.vlgmr.msra.gmra.mrb[0].mxu0 %v2207_v32  ;;  %v2281_v30 = vld [vmem:[%s2927_s0 + $0x1f8] ss:$36 sps:$4 sm:$0xff]   ;;  %v2293_v32 = vld [vmem:[%s2926_s1 + $0x200] sm:$0xff]  }
  0x24   :  { %1176 = vmatmul.mubr.bf16.vlgmr.msra.gmra.mrb[0].mxu1 %v2210_v34  ;;  %1984 = vmatpush3.bf16.msra.mxu0 %v2215_v38  ;;  %v2289_v33 = vld [vmem:[%s2927_s0 + $0x14] ss:$36 sps:$4 sm:$0xff]   ;;  %v2292_v34 = vld [vmem:[%s2927_s0 + $0x1c] ss:$36 sps:$4 sm:$0xff]   ;;  %v2296_v38 = vld [vmem:[%s2927_s0 + $0x64] ss:$36 sps:$4 sm:$0xff]  }
  0x25   :  { %2048 = vmatpush3.bf16.msra.mxu1 %v2216_v39  ;;  %1086 = vmatprep.mubr.bf16.mxu0 %v2217_v40  ;;  %v2290_v36 = vld [vmem:[%s2927_s0 + $0x18] ss:$36 sps:$4 sm:$0xff]   ;;  %v2300_v39 = vld [vmem:[%s2926_s1 + $0x208] sm:$0xff]   ;;  %v2307_v40 = vld [vmem:[%s2926_s1 + $0x210] sm:$0xff]  }
  0x26   :  { %1183 = vmatprep.mubr.bf16.mxu1 %v2219_v41  ;;  %1985 = vmatprep.subr.bf16.mxu0 %v2223_v44  ;;  %v2294_v37 = vld [vmem:[%s2927_s0 + $0x5c] ss:$36 sps:$4 sm:$0xff]   ;;  %v2303_v44 = vld [vmem:[%s2927_s0 + $0xac] ss:$36 sps:$4 sm:$0xff]  }
  0x27   :  { %2049 = vmatprep.subr.bf16.mxu1 %v2224_v45  ;;  %v2298_v41 = vld [vmem:[%s2927_s0 + $0x58] ss:$36 sps:$4 sm:$0xff]  }
  0x28   :  { %1986 = vmatpush3.bf16.msra.mxu0 %v2225_v46  ;;  %v2314_v45 = vld [vmem:[%s2926_s1 + $0x218] sm:$0xff]   ;;  %v2321_v46 = vld [vmem:[%s2926_s1 + $0x220] sm:$0xff]  }
  0x29   :  { %2050 = vmatpush3.bf16.msra.mxu1 %v2226_v47  ;;  %1987 = vmatprep.subr.bf16.mxu0 %v2233_v52  ;;  %v2305_v47 = vld [vmem:[%s2927_s0 + $0xa0] ss:$36 sps:$4 sm:$0xff]   ;;  %v2312_v52 = vld [vmem:[%s2927_s0 + $0xe8] ss:$36 sps:$4 sm:$0xff]  }
  0x2a   :  { %2051 = vmatprep.subr.bf16.mxu1 %v2234_v53  ;;  %v2335_v53 = vld [vmem:[%s2926_s1 + $0x230] sm:$0xff]  }
  0x2b   :  { %1087 = vmatmul.mubr.bf16.gmra.mrb[4].mxu0 %v2221_v42  ;;  %v2299_v42 = vld [vmem:[%s2927_s0 + $0x60] ss:$36 sps:$4 sm:$0xff]  }
  0x2c   :  { %1184 = vmatmul.mubr.bf16.gmra.mrb[4].mxu1 %v2222_v43  ;;  %1094 = vmatprep.mubr.bf16.mxu0 %v2227_v48  ;;  %v2301_v43 = vld [vmem:[%s2927_s0 + $0xa4] ss:$36 sps:$4 sm:$0xff]  }
  0x2d   :  { %1191 = vmatprep.mubr.bf16.mxu1 %v2229_v49  ;;  %1988 = vmatpush3.bf16.msra.mxu0 %v2235_v54  ;;  %v2306_v48 = vld [vmem:[%s2927_s0 + $0xa8] ss:$36 sps:$4 sm:$0xff]   ;;  %v2313_v54 = vld [vmem:[%s2927_s0 + $0xf0] ss:$36 sps:$4 sm:$0xff]  }
  0x2e   :  { %2052 = vmatpush3.bf16.msra.mxu1 %v2236_v55  ;;  %1989 = vmatprep.subr.bf16.mxu0 %v2243_v60  ;;  %v2308_v49 = vld [vmem:[%s2927_s0 + $0xec] ss:$36 sps:$4 sm:$0xff]   ;;  %v2315_v55 = vld [vmem:[%s2927_s0 + $0x134] ss:$36 sps:$4 sm:$0xff]   ;;  %v2322_v60 = vld [vmem:[%s2927_s0 + $0x17c] ss:$36 sps:$4 sm:$0xff]  }
  0x2f   :  { %2053 = vmatprep.subr.bf16.mxu1 %v2244_v61  ;;  %v2324_v61 = vld [vmem:[%s2927_s0 + $0x184] ss:$36 sps:$4 sm:$0xff]  }
  0x31   :  { %1990 = vmatpush3.bf16.msra.mxu0 %v2245_v62  ;;  %v2326_v62 = vld [vmem:[%s2927_s0 + $0x178] ss:$36 sps:$4 sm:$0xff]  }
  0x32   :  { %2054 = vmatpush3.bf16.msra.mxu1 %v2246_v63  ;;  %1991 = vmatprep.subr.bf16.mxu0 %v2253_v3  ;;  %v2327_v63 = vld [vmem:[%s2927_s0 + $0x180] ss:$36 sps:$4 sm:$0xff]   ;;  %v2334_v3 = vld [vmem:[%s2927_s0 + $0x1c8] ss:$36 sps:$4 sm:$0xff]  }
  0x33   :  { %1095 = vmatmul.mubr.bf16.gmra.mrb[8].mxu0 %v2231_v50  ;;  %2055 = vmatprep.subr.bf16.mxu1 %v2254_v5  ;;  %v2310_v50 = vld [vmem:[%s2927_s0 + $0xf4] ss:$36 sps:$4 sm:$0xff]  }
  0x34   :  { %1192 = vmatmul.mubr.bf16.gmra.mrb[8].mxu1 %v2232_v51  ;;  %1102 = vmatprep.mubr.bf16.mxu0 %v2237_v56  ;;  %v2328_v51 = vld [vmem:[%s2926_s1 + $0x228] sm:$0xff]   ;;  %v2317_v56 = vld [vmem:[%s2927_s0 + $0x13c] ss:$36 sps:$4 sm:$0xff]   ;;  %v2338_v5 = vld [vmem:[%s2927_s0 + $0x214] ss:$36 sps:$4 sm:$0xff]  }
  0x35   :  { %1199 = vmatprep.mubr.bf16.mxu1 %v2239_v57  ;;  %1992 = vmatpush3.bf16.msra.mxu0 %v2255_v6  ;;  %v2342_v57 = vld [vmem:[%s2926_s1 + $0x238] sm:$0xff]   ;;  %v2340_v6 = vld [vmem:[%s2927_s0 + $0x208] ss:$36 sps:$4 sm:$0xff]  }
  0x36   :  { %2056 = vmatpush3.bf16.msra.mxu1 %v2256_v7  ;;  %1993 = vmatprep.subr.bf16.mxu0 %v2263_v10  ;;  %v2341_v7 = vld [vmem:[%s2927_s0 + $0x210] ss:$36 sps:$4 sm:$0xff]   ;;  %v2345_v10 = vld [vmem:[%s2927_s0 + $0x68] ss:$36 sps:$4 sm:$0xff]  }
  0x37   :  { %2057 = vmatprep.subr.bf16.mxu1 %v2264_v11  ;;  %v2346_v11 = vld [vmem:[%s2927_s0 + $0x188] ss:$36 sps:$4 sm:$0xff]  }
  0x39   :  { %1994 = vmatpush3.bf16.msra.mxu0 %v2265_v13  ;;  %v2348_v13 = vld [vmem:[%s2927_s0 + $0x1d0] ss:$36 sps:$4 sm:$0xff]  }
  0x3a   :  { %2058 = vmatpush3.bf16.msra.mxu1 %v2266_v14  ;;  %1995 = vmatprep.subr.bf16.mxu0 %v2273_v18  ;;  %v2349_v14 = vld [vmem:[%s2927_s0 + $0xf8] ss:$36 sps:$4 sm:$0xff]   ;;  %v2806_v18 = vld [vmem:[%s2928_s2] ss:$0 sm:$0xff] }
  0x3b   :  { %1103 = vmatmul.mubr.bf16.gmra.mrb[12].mxu0 %v2241_v58  ;;  %2059 = vmatprep.subr.bf16.mxu1 %v2274_v19  ;;  %v2319_v58 = vld [vmem:[%s2927_s0 + $0x130] ss:$36 sps:$4 sm:$0xff]  }
  0x3c   :  { %1200 = vmatmul.mubr.bf16.gmra.mrb[12].mxu1 %v2242_v59  ;;  %1110 = vmatprep.mubr.bf16.mxu0 %v2247_v0  ;;  %v2320_v59 = vld [vmem:[%s2927_s0 + $0x138] ss:$36 sps:$4 sm:$0xff]   ;;  %v2329_v0 = vld [vmem:[%s2927_s0 + $0x1c4] ss:$36 sps:$4 sm:$0xff]  }
  0x3d   :  { %1207 = vmatprep.mubr.bf16.mxu1 %v2249_v1  ;;  %1996 = vmatpush3.bf16.msra.mxu0 %v2275_v20  ;;  %v2331_v1 = vld [vmem:[%s2927_s0 + $0x1cc] ss:$36 sps:$4 sm:$0xff]  }
  0x3e   :  { %2060 = vmatpush3.bf16.msra.mxu1 %v2276_v21  ;;  %1997 = vmatprep.subr.bf16.mxu0 %v2283_v26 }
  0x3f   :  { %2061 = vmatprep.subr.bf16.mxu1 %v2284_v27 }
  0x41   :  { %1998 = vmatpush3.bf16.msra.mxu0 %v2285_v28 }
  0x42   :  { %2062 = vmatpush3.bf16.msra.mxu1 %v2286_v29  ;;  %2127 = vmatprep.subr.bf16.mxu0 %v2293_v32 }
  0x43   :  { %1111 = vmatmul.mubr.bf16.gmra.mrb[16].mxu0 %v2251_v2  ;;  %2159 = vmatprep.subr.bf16.mxu1 %v2293_v32  ;;  %v2333_v2 = vld [vmem:[%s2927_s0 + $0x1c0] ss:$36 sps:$4 sm:$0xff]  }
  0x44   :  { %1208 = vmatmul.mubr.bf16.gmra.mrb[16].mxu1 %v2252_v4  ;;  %1118 = vmatprep.mubr.bf16.mxu0 %v2257_v8  ;;  %v2336_v4 = vld [vmem:[%s2927_s0 + $0x20c] ss:$36 sps:$4 sm:$0xff]   ;;  %v2343_v8 = vld [vmem:[%s2927_s0 + $0x20] ss:$36 sps:$4 sm:$0xff]  }
  0x45   :  { %1215 = vmatprep.mubr.bf16.mxu1 %v2259_v9  ;;  %v2344_v9 = vld [vmem:[%s2927_s0 + $0x140] ss:$36 sps:$4 sm:$0xff]  }
  0x4b   :  { %1119 = vmatmul.mubr.bf16.gmra.mrb[20].mxu0 %v2261_v12  ;;  %v2347_v12 = vld [vmem:[%s2927_s0 + $0xb0] ss:$36 sps:$4 sm:$0xff]  }
  0x4c   :  { %1216 = vmatmul.mubr.bf16.gmra.mrb[20].mxu1 %v2262_v15  ;;  %1126 = vmatprep.mubr.bf16.mxu0 %v2267_v16  ;;  %v2350_v15 = vld [vmem:[%s2927_s0 + $0x218] ss:$36 sps:$4 sm:$0xff]  }
  0x4d   :  { %1223 = vmatprep.mubr.bf16.mxu1 %v2269_v17 }
  0x53   :  { %1127 = vmatmul.mubr.bf16.gmra.mrb[24].mxu0 %v2271_v22 }
  0x54   :  { %1224 = vmatmul.mubr.bf16.gmra.mrb[24].mxu1 %v2272_v23  ;;  %1134 = vmatprep.mubr.bf16.mxu0 %v2277_v24 }
  0x55   :  { %1231 = vmatprep.mubr.bf16.mxu1 %v2279_v25 }
  0x5b   :  { %1135 = vmatmul.mubr.bf16.gmra.mrb[28].mxu0 %v2281_v30 }
  0x5c   :  { %1232 = vmatmul.mubr.bf16.gmra.mrb[28].mxu1 %v2282_v31  ;;  %1272 = vmatprep.mubr.bf16.mxu0 %v2289_v33 }
  0x5d   :  { %1369 = vmatprep.mubr.bf16.mxu1 %v2292_v34 }
  0x63   :  { %1273 = vmatmul.mubr.bf16.vlgmr.msra.gmra.mrb[32].mxu0 %v2287_v35 }
  0x64   :  { %1370 = vmatmul.mubr.bf16.vlgmr.msra.gmra.mrb[32].mxu1 %v2290_v36  ;;  %2128 = vmatpush3.bf16.msra.mxu0 %v2293_v32 }
  0x65   :  { %2167 = vmatpush3.bf16.msra.mxu1 %v2293_v32  ;;  %1280 = vmatprep.mubr.bf16.mxu0 %v2294_v37 }
  0x66   :  { %1377 = vmatprep.mubr.bf16.mxu1 %v2296_v38  ;;  %2129 = vmatprep.subr.bf16.mxu0 %v2300_v39 }
  0x67   :  { %2160 = vmatprep.subr.bf16.mxu1 %v2300_v39 }
  0x68   :  { %2130 = vmatpush3.bf16.msra.mxu0 %v2300_v39 }
  0x69   :  { %2168 = vmatpush3.bf16.msra.mxu1 %v2300_v39  ;;  %2131 = vmatprep.subr.bf16.mxu0 %v2307_v40 }
  0x6a   :  { %2161 = vmatprep.subr.bf16.mxu1 %v2307_v40 }
  0x6b   :  { %1281 = vmatmul.mubr.bf16.gmra.mrb[36].mxu0 %v2298_v41 }
  0x6c   :  { %1378 = vmatmul.mubr.bf16.gmra.mrb[36].mxu1 %v2299_v42  ;;  %1288 = vmatprep.mubr.bf16.mxu0 %v2301_v43 }
  0x6d   :  { %1385 = vmatprep.mubr.bf16.mxu1 %v2303_v44  ;;  %2132 = vmatpush3.bf16.msra.mxu0 %v2307_v40 }
  0x6e   :  { %2169 = vmatpush3.bf16.msra.mxu1 %v2307_v40  ;;  %2133 = vmatprep.subr.bf16.mxu0 %v2314_v45 }
  0x6f   :  { %2162 = vmatprep.subr.bf16.mxu1 %v2314_v45 }
  0x71   :  { %2134 = vmatpush3.bf16.msra.mxu0 %v2314_v45 }
  0x72   :  { %2170 = vmatpush3.bf16.msra.mxu1 %v2314_v45  ;;  %2135 = vmatprep.subr.bf16.mxu0 %v2321_v46 }
  0x73   :  { %1289 = vmatmul.mubr.bf16.gmra.mrb[40].mxu0 %v2305_v47  ;;  %2163 = vmatprep.subr.bf16.mxu1 %v2321_v46 }
  0x74   :  { %1386 = vmatmul.mubr.bf16.gmra.mrb[40].mxu1 %v2306_v48  ;;  %1296 = vmatprep.mubr.bf16.mxu0 %v2308_v49 }
  0x75   :  { %1393 = vmatprep.mubr.bf16.mxu1 %v2310_v50  ;;  %2136 = vmatpush3.bf16.msra.mxu0 %v2321_v46 }
  0x76   :  { %2171 = vmatpush3.bf16.msra.mxu1 %v2321_v46  ;;  %2137 = vmatprep.subr.bf16.mxu0 %v2328_v51 }
  0x77   :  { %2164 = vmatprep.subr.bf16.mxu1 %v2328_v51 }
  0x79   :  { %2138 = vmatpush3.bf16.msra.mxu0 %v2328_v51 }
  0x7a   :  { %2172 = vmatpush3.bf16.msra.mxu1 %v2328_v51  ;;  %2139 = vmatprep.subr.bf16.mxu0 %v2335_v53 }
  0x7b   :  { %1297 = vmatmul.mubr.bf16.gmra.mrb[44].mxu0 %v2312_v52  ;;  %2165 = vmatprep.subr.bf16.mxu1 %v2335_v53 }
  0x7c   :  { %1394 = vmatmul.mubr.bf16.gmra.mrb[44].mxu1 %v2313_v54  ;;  %1304 = vmatprep.mubr.bf16.mxu0 %v2315_v55 }
  0x7d   :  { %1401 = vmatprep.mubr.bf16.mxu1 %v2317_v56  ;;  %2140 = vmatpush3.bf16.msra.mxu0 %v2335_v53 }
  0x7e   :  { %2173 = vmatpush3.bf16.msra.mxu1 %v2335_v53  ;;  %2141 = vmatprep.subr.bf16.mxu0 %v2342_v57 }
  0x7f   :  { %2166 = vmatprep.subr.bf16.mxu1 %v2342_v57 }
  0x81   :  { %2142 = vmatpush3.bf16.msra.mxu0 %v2342_v57 }
  0x82   :  { %2174 = vmatpush3.bf16.msra.mxu1 %v2342_v57 }
  0x83   :  { %1305 = vmatmul.mubr.bf16.gmra.mrb[48].mxu0 %v2319_v58 }
  0x84   :  { %1402 = vmatmul.mubr.bf16.gmra.mrb[48].mxu1 %v2320_v59  ;;  %1312 = vmatprep.mubr.bf16.mxu0 %v2322_v60 }
  0x85   :  { %1409 = vmatprep.mubr.bf16.mxu1 %v2324_v61 }
  0x8b   :  { %1313 = vmatmul.mubr.bf16.gmra.mrb[52].mxu0 %v2326_v62 }
  0x8c   :  { %1410 = vmatmul.mubr.bf16.gmra.mrb[52].mxu1 %v2327_v63  ;;  %1320 = vmatprep.mubr.bf16.mxu0 %v2329_v0 }
  0x8d   :  { %1417 = vmatprep.mubr.bf16.mxu1 %v2331_v1 }
  0x93   :  { %1321 = vmatmul.mubr.bf16.gmra.mrb[56].mxu0 %v2333_v2 }
  0x94   :  { %1418 = vmatmul.mubr.bf16.gmra.mrb[56].mxu1 %v2334_v3  ;;  %1328 = vmatprep.mubr.bf16.mxu0 %v2336_v4 }
  0x95   :  { %1425 = vmatprep.mubr.bf16.mxu1 %v2338_v5 }
  0x9b   :  { %1329 = vmatmul.mubr.bf16.gmra.mrb[60].mxu0 %v2340_v6 }
  0x9c   :  { %1426 = vmatmul.mubr.bf16.gmra.mrb[60].mxu1 %v2341_v7  ;;  %2143 = vmatprep.mubr.bf16.mxu0 %v2343_v8 }
  0x9d   :  { %2151 = vmatprep.mubr.bf16.mxu1 %v2344_v9 }
  0xa3   :  { %2144 = vmatmul.mubr.bf16.vlgmr.msra.gmra.mrb[64].mxu0 %v2345_v10 }
  0xa4   :  { %2152 = vmatmul.mubr.bf16.vlgmr.msra.gmra.mrb[64].mxu1 %v2346_v11  ;;  %2147 = vmatprep.mubr.bf16.mxu0 %v2347_v12 }
  0xa5   :  { %2155 = vmatprep.mubr.bf16.mxu1 %v2348_v13 }
  0xab   :  { %2148 = vmatmul.mubr.bf16.gmra.mrb[68].mxu0 %v2349_v14 }
  0xac   :  { %2156 = vmatmul.mubr.bf16.gmra.mrb[68].mxu1 %v2350_v15 }
  0xf6   :  { %v1871_v16 = vpop.f32.mrb[0].mxu0 }
  0xf7   :  { %v1935_v17 = vpop.f32.mrb[0].mxu1  ;;  %v1872_v19 = vpop.f32.mrb[1].mxu0 }
  0xf8   :  { %v1873_v20 = vadd.f32 %v1872_v19, %v1871_v16  ;;  %v1936_v21 = vpop.f32.mrb[1].mxu1  ;;  %v1874_v22 = vpop.f32.mrb[2].mxu0 }
  0xf9   :  { %v1937_v23 = vadd.f32 %v1936_v21, %v1935_v17  ;;  %v1938_v24 = vpop.f32.mrb[2].mxu1  ;;  %v1875_v25 = vpop.f32.mrb[3].mxu0 }
  0xfa   :  { %v1081_v26 = vadd.f32 %v1873_v20, %v2806_v18  ;;  %v1876_v27 = vadd.f32 %v1875_v25, %v1874_v22  ;;  %v1939_v28 = vpop.f32.mrb[3].mxu1 }
  0xfb   :  { %v1940_v29 = vadd.f32 %v1939_v28, %v1938_v24 }
  0xfc   :  { %v2809_v30 = vadd.f32 %v1937_v23, %v1081_v26  ;;  %v1084_v31 = vadd.f32 %v1876_v27, %v2806_v18 }
  0xfe   :  { %v2812_v32 = vadd.f32 %v1940_v29, %v1084_v31  ;;  %v1877_v33 = vpop.f32.mrb[4].mxu0 }
  0xff   :  { %v1941_v34 = vpop.f32.mrb[4].mxu1  ;;  %v1878_v35 = vpop.f32.mrb[5].mxu0 }
 0x100   :  { %v1879_v36 = vadd.f32 %v1878_v35, %v1877_v33  ;;  %v1942_v37 = vpop.f32.mrb[5].mxu1  ;;  %v1880_v38 = vpop.f32.mrb[6].mxu0 }
 0x101   :  { %v1943_v39 = vadd.f32 %v1942_v37, %v1941_v34  ;;  %v1944_v40 = vpop.f32.mrb[6].mxu1  ;;  %v1881_v41 = vpop.f32.mrb[7].mxu0 }
 0x102   :  { %v1089_v42 = vadd.f32 %v1879_v36, %v2806_v18  ;;  %v1882_v43 = vadd.f32 %v1881_v41, %v1880_v38  ;;  %v1945_v44 = vpop.f32.mrb[7].mxu1 }
 0x103   :  { %v1946_v45 = vadd.f32 %v1945_v44, %v1944_v40 }
 0x104   :  { %v2815_v46 = vadd.f32 %v1943_v39, %v1089_v42  ;;  %v1092_v47 = vadd.f32 %v1882_v43, %v2806_v18 }
 0x106   :  { %v2818_v48 = vadd.f32 %v1946_v45, %v1092_v47  ;;  %v1883_v49 = vpop.f32.mrb[8].mxu0 }
 0x107   :  { %v1947_v50 = vpop.f32.mrb[8].mxu1  ;;  %v1884_v51 = vpop.f32.mrb[9].mxu0 }
 0x108   :  { %v1885_v52 = vadd.f32 %v1884_v51, %v1883_v49  ;;  %v1948_v53 = vpop.f32.mrb[9].mxu1  ;;  %v1886_v54 = vpop.f32.mrb[10].mxu0 }
 0x109   :  { %v1949_v55 = vadd.f32 %v1948_v53, %v1947_v50  ;;  %v1950_v56 = vpop.f32.mrb[10].mxu1  ;;  %v1887_v57 = vpop.f32.mrb[11].mxu0 }
 0x10a   :  { %v1097_v58 = vadd.f32 %v1885_v52, %v2806_v18  ;;  %v1888_v59 = vadd.f32 %v1887_v57, %v1886_v54  ;;  %v1951_v60 = vpop.f32.mrb[11].mxu1 }
 0x10b   :  { %v1952_v61 = vadd.f32 %v1951_v60, %v1950_v56 }
 0x10c   :  { %v2821_v62 = vadd.f32 %v1949_v55, %v1097_v58  ;;  %v1100_v63 = vadd.f32 %v1888_v59, %v2806_v18 }
 0x10e   :  { %v2824_v0 = vadd.f32 %v1952_v61, %v1100_v63  ;;  %v1889_v1 = vpop.f32.mrb[12].mxu0 }
 0x10f   :  { %v1953_v2 = vpop.f32.mrb[12].mxu1  ;;  %v1890_v3 = vpop.f32.mrb[13].mxu0 }
 0x110   :  { %v1891_v4 = vadd.f32 %v1890_v3, %v1889_v1  ;;  %v1954_v5 = vpop.f32.mrb[13].mxu1  ;;  %v1892_v6 = vpop.f32.mrb[14].mxu0 }
 0x111   :  { %v1955_v7 = vadd.f32 %v1954_v5, %v1953_v2  ;;  %v1956_v8 = vpop.f32.mrb[14].mxu1  ;;  %v1893_v9 = vpop.f32.mrb[15].mxu0 }
 0x112   :  { %v1105_v10 = vadd.f32 %v1891_v4, %v2806_v18  ;;  %v1894_v11 = vadd.f32 %v1893_v9, %v1892_v6  ;;  %v1957_v12 = vpop.f32.mrb[15].mxu1 }
 0x113   :  { %v1958_v13 = vadd.f32 %v1957_v12, %v1956_v8 }
 0x114   :  { %v2827_v14 = vadd.f32 %v1955_v7, %v1105_v10  ;;  %v1108_v15 = vadd.f32 %v1894_v11, %v2806_v18 }
 0x116   :  { %v2830_v16 = vadd.f32 %v1958_v13, %v1108_v15  ;;  %v1895_v17 = vpop.f32.mrb[16].mxu0 }
 0x117   :  { %v1959_v19 = vpop.f32.mrb[16].mxu1  ;;  %v1896_v20 = vpop.f32.mrb[17].mxu0 }
 0x118   :  { %v1897_v21 = vadd.f32 %v1896_v20, %v1895_v17  ;;  %v1960_v22 = vpop.f32.mrb[17].mxu1  ;;  %v1898_v23 = vpop.f32.mrb[18].mxu0 }
 0x119   :  { %v1961_v24 = vadd.f32 %v1960_v22, %v1959_v19  ;;  %v1962_v25 = vpop.f32.mrb[18].mxu1  ;;  %v1899_v26 = vpop.f32.mrb[19].mxu0 }
 0x11a   :  { %v1113_v27 = vadd.f32 %v1897_v21, %v2806_v18  ;;  %v1900_v28 = vadd.f32 %v1899_v26, %v1898_v23  ;;  %v1963_v29 = vpop.f32.mrb[19].mxu1 }
 0x11b   :  { %v1964_v31 = vadd.f32 %v1963_v29, %v1962_v25 }
 0x11c   :  { %v2833_v33 = vadd.f32 %v1961_v24, %v1113_v27  ;;  %v1116_v34 = vadd.f32 %v1900_v28, %v2806_v18 }
 0x11e   :  { %v2836_v35 = vadd.f32 %v1964_v31, %v1116_v34  ;;  %v1901_v36 = vpop.f32.mrb[20].mxu0 }
 0x11f   :  { %v1965_v37 = vpop.f32.mrb[20].mxu1  ;;  %v1902_v38 = vpop.f32.mrb[21].mxu0 }
 0x120   :  { %v1903_v39 = vadd.f32 %v1902_v38, %v1901_v36  ;;  %v1966_v40 = vpop.f32.mrb[21].mxu1  ;;  %v1904_v41 = vpop.f32.mrb[22].mxu0 }
 0x121   :  { %v1967_v42 = vadd.f32 %v1966_v40, %v1965_v37  ;;  %v1968_v43 = vpop.f32.mrb[22].mxu1  ;;  %v1905_v44 = vpop.f32.mrb[23].mxu0 }
 0x122   :  { %v1121_v45 = vadd.f32 %v1903_v39, %v2806_v18  ;;  %v1906_v47 = vadd.f32 %v1905_v44, %v1904_v41  ;;  %v1969_v49 = vpop.f32.mrb[23].mxu1 }
 0x123   :  { %v1970_v50 = vadd.f32 %v1969_v49, %v1968_v43 }
 0x124   :  { %v2839_v51 = vadd.f32 %v1967_v42, %v1121_v45  ;;  %v1124_v52 = vadd.f32 %v1906_v47, %v2806_v18 }
 0x126   :  { %v2842_v53 = vadd.f32 %v1970_v50, %v1124_v52  ;;  %v1907_v54 = vpop.f32.mrb[24].mxu0 }
 0x127   :  { %v1971_v55 = vpop.f32.mrb[24].mxu1  ;;  %v1908_v56 = vpop.f32.mrb[25].mxu0 }
 0x128   :  { %v1909_v57 = vadd.f32 %v1908_v56, %v1907_v54  ;;  %v1972_v58 = vpop.f32.mrb[25].mxu1  ;;  %v1910_v59 = vpop.f32.mrb[26].mxu0 }
 0x129   :  { %v1973_v60 = vadd.f32 %v1972_v58, %v1971_v55  ;;  %v1974_v61 = vpop.f32.mrb[26].mxu1  ;;  %v1911_v63 = vpop.f32.mrb[27].mxu0 }
 0x12a   :  { %v1129_v1 = vadd.f32 %v1909_v57, %v2806_v18  ;;  %v1912_v2 = vadd.f32 %v1911_v63, %v1910_v59  ;;  %v1975_v3 = vpop.f32.mrb[27].mxu1 }
 0x12b   :  { %v1976_v4 = vadd.f32 %v1975_v3, %v1974_v61 }
 0x12c   :  { %v2845_v5 = vadd.f32 %v1973_v60, %v1129_v1  ;;  %v1132_v6 = vadd.f32 %v1912_v2, %v2806_v18 }
 0x12e   :  { %v2848_v7 = vadd.f32 %v1976_v4, %v1132_v6  ;;  %v1913_v8 = vpop.f32.mrb[28].mxu0 }
 0x12f   :  { %v1977_v9 = vpop.f32.mrb[28].mxu1  ;;  %v1914_v10 = vpop.f32.mrb[29].mxu0 }
 0x130   :  { %v1915_v11 = vadd.f32 %v1914_v10, %v1913_v8  ;;  %v1978_v12 = vpop.f32.mrb[29].mxu1  ;;  %v1916_v13 = vpop.f32.mrb[30].mxu0 }
 0x131   :  { %v1979_v15 = vadd.f32 %v1978_v12, %v1977_v9  ;;  %v1980_v17 = vpop.f32.mrb[30].mxu1  ;;  %v1917_v19 = vpop.f32.mrb[31].mxu0 }
 0x132   :  { %v1137_v20 = vadd.f32 %v1915_v11, %v2806_v18  ;;  %v1918_v21 = vadd.f32 %v1917_v19, %v1916_v13  ;;  %v1981_v22 = vpop.f32.mrb[31].mxu1 }
 0x133   :  { %v1982_v23 = vadd.f32 %v1981_v22, %v1980_v17 }
 0x134   :  { %v2851_v24 = vadd.f32 %v1979_v15, %v1137_v20  ;;  %v1140_v25 = vadd.f32 %v1918_v21, %v2806_v18 }
 0x136   :  { %v2854_v26 = vadd.f32 %v1982_v23, %v1140_v25  ;;  %v1999_v27 = vpop.f32.mrb[32].mxu0 }
 0x137   :  { %v2063_v28 = vpop.f32.mrb[32].mxu1  ;;  %v2000_v29 = vpop.f32.mrb[33].mxu0 }
 0x138   :  { %v2001_v31 = vadd.f32 %v2000_v29, %v1999_v27  ;;  %v2064_v34 = vpop.f32.mrb[33].mxu1  ;;  %v2002_v36 = vpop.f32.mrb[34].mxu0 }
 0x139   :  { %v2065_v37 = vadd.f32 %v2064_v34, %v2063_v28  ;;  %v2066_v38 = vpop.f32.mrb[34].mxu1  ;;  %v2003_v39 = vpop.f32.mrb[35].mxu0 }
 0x13a   :  { %v1275_v40 = vadd.f32 %v2001_v31, %v2809_v30  ;;  %v2004_v41 = vadd.f32 %v2003_v39, %v2002_v36  ;;  %v2067_v42 = vpop.f32.mrb[35].mxu1 }
 0x13b   :  { %v2068_v43 = vadd.f32 %v2067_v42, %v2066_v38 }
 0x13c   :  { %v1278_v44 = vadd.f32 %v2004_v41, %v2812_v32  ;;  %v2858_v45 = vadd.f32 %v2065_v37, %v1275_v40 }
 0x13e   :  { %v2005_v18 = vpop.f32.mrb[36].mxu0  ;;  %v2860_v47 = vadd.f32 %v2068_v43, %v1278_v44 }
 0x13f   :  { %v2069_v49 = vpop.f32.mrb[36].mxu1  ;;  %v2006_v50 = vpop.f32.mrb[37].mxu0 }
 0x140   :  { %v2007_v52 = vadd.f32 %v2006_v50, %v2005_v18  ;;  %v2070_v54 = vpop.f32.mrb[37].mxu1  ;;  %v2008_v55 = vpop.f32.mrb[38].mxu0 }
 0x141   :  { %v2071_v56 = vadd.f32 %v2070_v54, %v2069_v49  ;;  %v2072_v57 = vpop.f32.mrb[38].mxu1  ;;  %v2009_v58 = vpop.f32.mrb[39].mxu0 }
 0x142   :  { %v1283_v30 = vadd.f32 %v2007_v52, %v2815_v46  ;;  %v2010_v59 = vadd.f32 %v2009_v58, %v2008_v55  ;;  %v2073_v60 = vpop.f32.mrb[39].mxu1 }
 0x143   :  { %v2074_v61 = vadd.f32 %v2073_v60, %v2072_v57 }
 0x144   :  { %v1286_v32 = vadd.f32 %v2010_v59, %v2818_v48  ;;  %v2864_v63 = vadd.f32 %v2071_v56, %v1283_v30 }
 0x146   :  { %v2011_v1 = vpop.f32.mrb[40].mxu0  ;;  %v2866_v2 = vadd.f32 %v2074_v61, %v1286_v32 }
 0x147   :  { %v2075_v3 = vpop.f32.mrb[40].mxu1  ;;  %v2012_v4 = vpop.f32.mrb[41].mxu0 }
 0x148   :  { %v2013_v6 = vadd.f32 %v2012_v4, %v2011_v1  ;;  %v2076_v8 = vpop.f32.mrb[41].mxu1  ;;  %v2014_v9 = vpop.f32.mrb[42].mxu0 }
 0x149   :  { %v2077_v10 = vadd.f32 %v2076_v8, %v2075_v3  ;;  %v2078_v11 = vpop.f32.mrb[42].mxu1  ;;  %v2015_v12 = vpop.f32.mrb[43].mxu0 }
 0x14a   :  { %v1291_v46 = vadd.f32 %v2013_v6, %v2821_v62  ;;  %v2016_v13 = vadd.f32 %v2015_v12, %v2014_v9  ;;  %v2079_v15 = vpop.f32.mrb[43].mxu1 }
 0x14b   :  { %v2080_v17 = vadd.f32 %v2079_v15, %v2078_v11 }
 0x14c   :  { %v1294_v48 = vadd.f32 %v2016_v13, %v2824_v0  ;;  %v2870_v19 = vadd.f32 %v2077_v10, %v1291_v46 }
 0x14e   :  { %v2017_v20 = vpop.f32.mrb[44].mxu0  ;;  %v2872_v21 = vadd.f32 %v2080_v17, %v1294_v48 }
 0x14f   :  { %v2081_v22 = vpop.f32.mrb[44].mxu1  ;;  %v2018_v23 = vpop.f32.mrb[45].mxu0 }
 0x150   :  { %v2019_v25 = vadd.f32 %v2018_v23, %v2017_v20  ;;  %v2082_v27 = vpop.f32.mrb[45].mxu1  ;;  %v2020_v28 = vpop.f32.mrb[46].mxu0 }
 0x151   :  { %v2083_v29 = vadd.f32 %v2082_v27, %v2081_v22  ;;  %v2084_v31 = vpop.f32.mrb[46].mxu1  ;;  %v2021_v34 = vpop.f32.mrb[47].mxu0 }
 0x152   :  { %v1299_v62 = vadd.f32 %v2019_v25, %v2827_v14  ;;  %v2022_v36 = vadd.f32 %v2021_v34, %v2020_v28  ;;  %v2085_v37 = vpop.f32.mrb[47].mxu1 }
 0x153   :  { %v2086_v38 = vadd.f32 %v2085_v37, %v2084_v31 }
 0x154   :  { %v1302_v0 = vadd.f32 %v2022_v36, %v2830_v16  ;;  %v2876_v39 = vadd.f32 %v2083_v29, %v1299_v62 }
 0x156   :  { %v2023_v40 = vpop.f32.mrb[48].mxu0  ;;  %v2878_v41 = vadd.f32 %v2086_v38, %v1302_v0 }
 0x157   :  { %v2087_v42 = vpop.f32.mrb[48].mxu1  ;;  %v2024_v43 = vpop.f32.mrb[49].mxu0 }
 0x158   :  { %v2025_v44 = vadd.f32 %v2024_v43, %v2023_v40  ;;  %v2088_v18 = vpop.f32.mrb[49].mxu1  ;;  %v2026_v49 = vpop.f32.mrb[50].mxu0 }
 0x159   :  { %v2089_v50 = vadd.f32 %v2088_v18, %v2087_v42  ;;  %v2090_v52 = vpop.f32.mrb[50].mxu1  ;;  %v2027_v54 = vpop.f32.mrb[51].mxu0 }
 0x15a   :  { %v1307_v14 = vadd.f32 %v2025_v44, %v2833_v33  ;;  %v2028_v55 = vadd.f32 %v2027_v54, %v2026_v49  ;;  %v2091_v56 = vpop.f32.mrb[51].mxu1 }
 0x15b   :  { %v2092_v57 = vadd.f32 %v2091_v56, %v2090_v52 }
 0x15c   :  { %v1310_v16 = vadd.f32 %v2028_v55, %v2836_v35  ;;  %v1404_v58 = vadd.f32 %v2089_v50, %v1307_v14 }
 0x15e   :  { %v2029_v30 = vpop.f32.mrb[52].mxu0  ;;  %v2882_v59 = vadd.f32 %v2092_v57, %v1310_v16 }
 0x15f   :  { %v2093_v60 = vpop.f32.mrb[52].mxu1  ;;  %v2030_v61 = vpop.f32.mrb[53].mxu0 }
 0x160   :  { %v2031_v32 = vadd.f32 %v2030_v61, %v2029_v30  ;;  %v2094_v1 = vpop.f32.mrb[53].mxu1  ;;  %v2032_v3 = vpop.f32.mrb[54].mxu0 }
 0x161   :  { %v2095_v4 = vadd.f32 %v2094_v1, %v2093_v60  ;;  %v2096_v6 = vpop.f32.mrb[54].mxu1  ;;  %v2033_v8 = vpop.f32.mrb[55].mxu0 }
 0x162   :  { %v1315_v9 = vadd.f32 %v2031_v32, %v2839_v51  ;;  %v2034_v33 = vadd.f32 %v2033_v8, %v2032_v3  ;;  %v2097_v10 = vpop.f32.mrb[55].mxu1 }
 0x163   :  { %v2098_v11 = vadd.f32 %v2097_v10, %v2096_v6 }
 0x164   :  { %v1318_v12 = vadd.f32 %v2034_v33, %v2842_v53  ;;  %v1412_v35 = vadd.f32 %v2095_v4, %v1315_v9 }
 0x166   :  { %v2035_v46 = vpop.f32.mrb[56].mxu0  ;;  %v1415_v13 = vadd.f32 %v2098_v11, %v1318_v12 }
 0x167   :  { %v2099_v15 = vpop.f32.mrb[56].mxu1  ;;  %v2036_v17 = vpop.f32.mrb[57].mxu0 }
 0x168   :  { %v2037_v48 = vadd.f32 %v2036_v17, %v2035_v46  ;;  %v2100_v20 = vpop.f32.mrb[57].mxu1  ;;  %v2038_v22 = vpop.f32.mrb[58].mxu0 }
 0x169   :  { %v2101_v23 = vadd.f32 %v2100_v20, %v2099_v15  ;;  %v2102_v25 = vpop.f32.mrb[58].mxu1  ;;  %v2039_v27 = vpop.f32.mrb[59].mxu0 }
 0x16a   :  { %v1323_v28 = vadd.f32 %v2037_v48, %v2845_v5  ;;  %v2040_v29 = vadd.f32 %v2039_v27, %v2038_v22  ;;  %v2103_v51 = vpop.f32.mrb[59].mxu1 }
 0x16b   :  { %v2104_v31 = vadd.f32 %v2103_v51, %v2102_v25 }
 0x16c   :  { %v1326_v34 = vadd.f32 %v2040_v29, %v2848_v7  ;;  %v1420_v62 = vadd.f32 %v2101_v23, %v1323_v28 }
 0x16e   :  { %v2041_v53 = vpop.f32.mrb[60].mxu0  ;;  %v2888_v36 = vadd.f32 %v2104_v31, %v1326_v34 }
 0x16f   :  { %v2105_v37 = vpop.f32.mrb[60].mxu1  ;;  %v2042_v38 = vpop.f32.mrb[61].mxu0 }
 0x170   :  { %v2043_v0 = vadd.f32 %v2042_v38, %v2041_v53  ;;  %v2106_v40 = vpop.f32.mrb[61].mxu1  ;;  %v2044_v42 = vpop.f32.mrb[62].mxu0 }
 0x171   :  { %v2107_v43 = vadd.f32 %v2106_v40, %v2105_v37  ;;  %v2108_v44 = vpop.f32.mrb[62].mxu1  ;;  %v2045_v18 = vpop.f32.mrb[63].mxu0 }
 0x172   :  { %v1331_v49 = vadd.f32 %v2043_v0, %v2851_v24  ;;  %v2046_v5 = vadd.f32 %v2045_v18, %v2044_v42  ;;  %v2109_v50 = vpop.f32.mrb[63].mxu1 }
 0x173   :  { %v2110_v52 = vadd.f32 %v2109_v50, %v2108_v44 }
 0x174   :  { %v1334_v54 = vadd.f32 %v2046_v5, %v2854_v26  ;;  %v1428_v7 = vadd.f32 %v2107_v43, %v1331_v49 }
 0x176   :  { %v2145_v14 = vpop.f32.mrb[64].mxu0  ;;  %v1431_v55 = vadd.f32 %v2110_v52, %v1334_v54 }
 0x177   :  { %v1477_v56 = vadd.f32 %v2145_v14, %v2864_v63  ;;  %v2153_v57 = vpop.f32.mrb[64].mxu1  ;;  %v1468_v16 = vpop.f32.mrb[65].mxu0 }
 0x178   :  { %v1509_v30 = vadd.f32 %v2153_v57, %v1412_v35  ;;  %v1469_v60 = vadd.f32 %v1468_v16, %v2858_v45  ;;  %v1500_v61 = vpop.f32.mrb[65].mxu1  ;;  %v2146_v32 = vpop.f32.mrb[66].mxu0 }
 0x179   :  { %v1501_v1 = vadd.f32 %v1500_v61, %v1404_v58  ;;  %v1480_v24 = vadd.f32 %v2146_v32, %v2866_v2  ;;  %v2154_v3 = vpop.f32.mrb[66].mxu1  ;;  %v1471_v4 = vpop.f32.mrb[67].mxu0  ;;  %v1533_v9 = vmax.f32 %v1477_v56, 0.0 }
 0x17a   :  { %v1512_v6 = vadd.f32 %v2154_v3, %v1415_v13  ;;  %v1472_v26 = vadd.f32 %v1471_v4, %v2860_v47  ;;  %v1503_v8 = vpop.f32.mrb[67].mxu1  ;;  %v1541_v10 = vmax.f32 %v1509_v30, 0.0  ;;  %v1531_v11 = vmax.f32 %v1469_v60, 0.0 }
 0x17b   :  { %v1534_v33 = vmax.f32 %v1480_v24, 0.0  ;;  %v1504_v63 = vadd.f32 %v1503_v8, %v2882_v59  ;;  %v1539_v45 = vmax.f32 %v1501_v1, 0.0 }
 0x17c   :  { %v1542_v12 = vmax.f32 %v1512_v6, 0.0  ;;  %v1532_v35 = vmax.f32 %v1472_v26, 0.0 }
 0x17d   :  { %v1816_v46 = vpack.c.bf16 %v1534_v33, %v1533_v9  ;;  %v1540_v15 = vmax.f32 %v1504_v63, 0.0 }
 0x17e   :  { %v1836_v58 = vpack.c.bf16 %v1542_v12, %v1541_v10  ;;  %v1811_v17 = vpack.c.bf16 %v1532_v35, %v1531_v11  ;;  %v2149_v2 = vpop.f32.mrb[68].mxu0 }
 0x17f   :  { %1848 = vst [vmem:[%s2929_s3 + $0x8] sm:$0xff] %v1816_v46   ;;  %v1831_v47 = vpack.c.bf16 %v1540_v15, %v1539_v45  ;;  %v1493_v13 = vadd.f32 %v2149_v2, %v2876_v39  ;;  %v2157_v48 = vpop.f32.mrb[68].mxu1  ;;  %v1484_v20 = vpop.f32.mrb[69].mxu0 }
 0x180   :  { %1852 = vst [vmem:[%s2929_s3 + $0x28] sm:$0xff] %v1836_v58   ;;  %1812 = vst [vmem:[%s2929_s3] sm:$0xff] %v1811_v17   ;;  %v1525_v59 = vadd.f32 %v2157_v48, %v1428_v7  ;;  %v1485_v22 = vadd.f32 %v1484_v20, %v2870_v19  ;;  %v1516_v23 = vpop.f32.mrb[69].mxu1  ;;  %v2150_v25 = vpop.f32.mrb[70].mxu0 }
 0x181   :  { %1851 = vst [vmem:[%s2929_s3 + $0x20] sm:$0xff] %v1831_v47   ;;  %v1517_v39 = vadd.f32 %v1516_v23, %v1420_v62  ;;  %v1496_v27 = vadd.f32 %v2150_v25, %v2878_v41  ;;  %v2158_v28 = vpop.f32.mrb[70].mxu1  ;;  %v1487_v29 = vpop.f32.mrb[71].mxu0  ;;  %v1537_v53 = vmax.f32 %v1493_v13, 0.0 }
 0x182   :  { %v1528_v51 = vadd.f32 %v2158_v28, %v1431_v55  ;;  %v1488_v31 = vadd.f32 %v1487_v29, %v2872_v21  ;;  %v1519_v34 = vpop.f32.mrb[71].mxu1  ;;  %v1545_v19 = vmax.f32 %v1525_v59, 0.0  ;;  %v1535_v0 = vmax.f32 %v1485_v22, 0.0 }
 0x183   :  { %v1538_v37 = vmax.f32 %v1496_v27, 0.0  ;;  %v1520_v38 = vadd.f32 %v1519_v34, %v2888_v36  ;;  %v1543_v43 = vmax.f32 %v1517_v39, 0.0 }
 0x184   :  { %v1546_v40 = vmax.f32 %v1528_v51, 0.0  ;;  %v1536_v42 = vmax.f32 %v1488_v31, 0.0 }
 0x185   :  { %v1826_v44 = vpack.c.bf16 %v1538_v37, %v1537_v53  ;;  %v1544_v18 = vmax.f32 %v1520_v38, 0.0 }
 0x186   :  { %v1846_v62 = vpack.c.bf16 %v1546_v40, %v1545_v19  ;;  %v1821_v49 = vpack.c.bf16 %v1536_v42, %v1535_v0 }
 0x187   :  { %1850 = vst [vmem:[%s2929_s3 + $0x18] sm:$0xff] %v1826_v44   ;;  %v1841_v41 = vpack.c.bf16 %v1544_v18, %v1543_v43 }
 0x188   :  { %1854 = vst [vmem:[%s2929_s3 + $0x38] sm:$0xff] %v1846_v62   ;;  %1849 = vst [vmem:[%s2929_s3 + $0x10] sm:$0xff] %v1821_v49  }
 0x189   :  { %1853 = vst [vmem:[%s2929_s3 + $0x30] sm:$0xff] %v1841_v41  }

// kernel: autoencoder_forward.10
= control target key start
LH: loop header
LB: loop body
LE: loop exit
PB: predicated region body
PF: predicated region fallthrough
CT: control target
= control target key end

     0   :  { %s1632_s1 = inlined_call_operand.vmem [shape: bf16[1152,128], index: 1, kind: input, shape index: {}]   ;;  %s1633_s0 = inlined_call_operand.vmem [shape: bf16[32,1152], index: 0, kind: input, shape index: {}]   ;;  %s1634_s2 = inlined_call_operand.vmem [shape: f32[1,128], index: 2, kind: input, shape index: {}]   ;;  %s1635_s3 = inlined_call_operand.vmem [shape: bf16[32,128], index: 3, kind: output, shape index: {}]  }
   0x1   :  { %v1235_v0 = vld [vmem:[%s1632_s1 + $0x40] sm:$0xff]   ;;  %v1239_v4 = vld [vmem:[%s1632_s1 + $0x48] sm:$0xff]   ;;  %v1243_v8 = vld [vmem:[%s1632_s1 + $0x50] sm:$0xff]  }
   0x2   :  { %v1236_v1 = vld [vmem:[%s1632_s1] sm:$0xff]   ;;  %1093 = vmatprep.subr.bf16.mxu0 %v1235_v0  ;;  %v1240_v5 = vld [vmem:[%s1632_s1 + $0x8] sm:$0xff]   ;;  %v1244_v9 = vld [vmem:[%s1632_s1 + $0x10] sm:$0xff]  }
   0x3   :  { %v1237_v2 = vld [vmem:[%s1632_s1 + $0xc0] sm:$0xff]   ;;  %1094 = vmatpush3.bf16.msra.mxu0 %v1236_v1  ;;  %v1241_v6 = vld [vmem:[%s1632_s1 + $0xc8] sm:$0xff]   ;;  %v1245_v10 = vld [vmem:[%s1632_s1 + $0xd0] sm:$0xff]  }
   0x4   :  { %v1238_v3 = vld [vmem:[%s1632_s1 + $0x80] sm:$0xff]   ;;  %1121 = vmatprep.subr.bf16.mxu1 %v1237_v2  ;;  %1095 = vmatprep.subr.bf16.mxu0 %v1239_v4  ;;  %v1242_v7 = vld [vmem:[%s1632_s1 + $0x88] sm:$0xff]   ;;  %v1246_v11 = vld [vmem:[%s1632_s1 + $0x90] sm:$0xff]  }
   0x5   :  { %1122 = vmatpush3.bf16.msra.mxu1 %v1238_v3  ;;  %v1247_v12 = vld [vmem:[%s1632_s1 + $0x58] sm:$0xff]   ;;  %v1251_v16 = vld [vmem:[%s1632_s1 + $0x60] sm:$0xff]   ;;  %v1255_v20 = vld [vmem:[%s1632_s1 + $0x68] sm:$0xff]  }
   0x6   :  { %1123 = vmatprep.subr.bf16.mxu1 %v1241_v6  ;;  %v1248_v13 = vld [vmem:[%s1632_s1 + $0x18] sm:$0xff]   ;;  %v1252_v17 = vld [vmem:[%s1632_s1 + $0x20] sm:$0xff]   ;;  %v1256_v21 = vld [vmem:[%s1632_s1 + $0x28] sm:$0xff]  }
   0x7   :  { %1096 = vmatpush3.bf16.msra.mxu0 %v1240_v5  ;;  %v1249_v14 = vld [vmem:[%s1632_s1 + $0xd8] sm:$0xff]   ;;  %v1253_v18 = vld [vmem:[%s1632_s1 + $0xe0] sm:$0xff]   ;;  %v1257_v22 = vld [vmem:[%s1632_s1 + $0xe8] sm:$0xff]  }
   0x8   :  { %1097 = vmatprep.subr.bf16.mxu0 %v1243_v8  ;;  %v1250_v15 = vld [vmem:[%s1632_s1 + $0x98] sm:$0xff]   ;;  %v1254_v19 = vld [vmem:[%s1632_s1 + $0xa0] sm:$0xff]   ;;  %v1258_v23 = vld [vmem:[%s1632_s1 + $0xa8] sm:$0xff]  }
   0x9   :  { %1124 = vmatpush3.bf16.msra.mxu1 %v1242_v7  ;;  %v1259_v24 = vld [vmem:[%s1632_s1 + $0x70] sm:$0xff]   ;;  %v1263_v28 = vld [vmem:[%s1632_s1 + $0x78] sm:$0xff]   ;;  %v1266_v31 = vld [vmem:[%s1633_s0] ss:$36 sps:$4 sm:$0xff]  }
   0xa   :  { %1125 = vmatprep.subr.bf16.mxu1 %v1245_v10  ;;  %v1260_v25 = vld [vmem:[%s1632_s1 + $0x30] sm:$0xff]   ;;  %v1264_v29 = vld [vmem:[%s1632_s1 + $0x38] sm:$0xff]   ;;  %v1268_v32 = vld [vmem:[%s1633_s0 + $0x4] ss:$36 sps:$4 sm:$0xff]  }
   0xb   :  { %1098 = vmatpush3.bf16.msra.mxu0 %v1244_v9  ;;  %v1261_v26 = vld [vmem:[%s1632_s1 + $0xf0] sm:$0xff]   ;;  %v1265_v30 = vld [vmem:[%s1632_s1 + $0xf8] sm:$0xff]   ;;  %742 = vmatprep.mubr.bf16.mxu0 %v1268_v32  ;;  %v1270_v34 = vld [vmem:[%s1632_s1 + $0x140] sm:$0xff]  }
   0xc   :  { %1099 = vmatprep.subr.bf16.mxu0 %v1247_v12  ;;  %v1262_v27 = vld [vmem:[%s1632_s1 + $0xb0] sm:$0xff]   ;;  %v1269_v33 = vld [vmem:[%s1632_s1 + $0xb8] sm:$0xff]   ;;  %v1271_v35 = vld [vmem:[%s1633_s0 + $0x8] ss:$36 sps:$4 sm:$0xff]  }
   0xd   :  { %1126 = vmatpush3.bf16.msra.mxu1 %v1246_v11  ;;  %v1273_v36 = vld [vmem:[%s1633_s0 + $0xc] ss:$36 sps:$4 sm:$0xff]   ;;  %v1274_v37 = vld [vmem:[%s1632_s1 + $0x100] sm:$0xff]   ;;  %v1285_v48 = vld [vmem:[%s1632_s1 + $0x158] sm:$0xff]  }
   0xe   :  { %1127 = vmatprep.subr.bf16.mxu1 %v1249_v14  ;;  %791 = vmatprep.mubr.bf16.mxu1 %v1273_v36  ;;  %v1275_v38 = vld [vmem:[%s1632_s1 + $0x1c0] sm:$0xff]   ;;  %v1277_v40 = vld [vmem:[%s1632_s1 + $0x148] sm:$0xff]   ;;  %v1281_v44 = vld [vmem:[%s1632_s1 + $0x150] sm:$0xff]  }
   0xf   :  { %1100 = vmatpush3.bf16.msra.mxu0 %v1248_v13  ;;  %v1276_v39 = vld [vmem:[%s1632_s1 + $0x180] sm:$0xff]   ;;  %v1278_v41 = vld [vmem:[%s1632_s1 + $0x108] sm:$0xff]   ;;  %v1282_v45 = vld [vmem:[%s1632_s1 + $0x110] sm:$0xff]  }
  0x10   :  { %1101 = vmatprep.subr.bf16.mxu0 %v1251_v16  ;;  %v1279_v42 = vld [vmem:[%s1632_s1 + $0x1c8] sm:$0xff]   ;;  %v1283_v46 = vld [vmem:[%s1632_s1 + $0x1d0] sm:$0xff]   ;;  %v1286_v49 = vld [vmem:[%s1632_s1 + $0x118] sm:$0xff]  }
  0x11   :  { %1128 = vmatpush3.bf16.msra.mxu1 %v1250_v15  ;;  %v1280_v43 = vld [vmem:[%s1632_s1 + $0x188] sm:$0xff]   ;;  %v1284_v47 = vld [vmem:[%s1632_s1 + $0x190] sm:$0xff]   ;;  %v1287_v50 = vld [vmem:[%s1632_s1 + $0x1d8] sm:$0xff]  }
  0x12   :  { %1129 = vmatprep.subr.bf16.mxu1 %v1253_v18  ;;  %v1288_v51 = vld [vmem:[%s1632_s1 + $0x198] sm:$0xff]   ;;  %v1289_v52 = vld [vmem:[%s1632_s1 + $0x160] sm:$0xff]   ;;  %v1293_v56 = vld [vmem:[%s1632_s1 + $0x168] sm:$0xff]  }
  0x13   :  { %1102 = vmatpush3.bf16.msra.mxu0 %v1252_v17  ;;  %v1290_v53 = vld [vmem:[%s1632_s1 + $0x120] sm:$0xff]   ;;  %v1294_v57 = vld [vmem:[%s1633_s0 + $0x4c] ss:$36 sps:$4 sm:$0xff]   ;;  %v1299_v61 = vld [vmem:[%s1633_s0 + $0x54] ss:$36 sps:$4 sm:$0xff]  }
  0x14   :  { %1103 = vmatprep.subr.bf16.mxu0 %v1255_v20  ;;  %v1291_v54 = vld [vmem:[%s1632_s1 + $0x1e0] sm:$0xff]   ;;  %v1296_v58 = vld [vmem:[%s1632_s1 + $0x128] sm:$0xff]   ;;  %v1302_v63 = vld [vmem:[%s1633_s0 + $0x50] ss:$36 sps:$4 sm:$0xff]  }
  0x15   :  { %1130 = vmatpush3.bf16.msra.mxu1 %v1254_v19  ;;  %v1292_v55 = vld [vmem:[%s1632_s1 + $0x1a0] sm:$0xff]   ;;  %v1297_v59 = vld [vmem:[%s1633_s0 + $0x48] ss:$36 sps:$4 sm:$0xff]   ;;  %v1303_v0 = vld [vmem:[%s1632_s1 + $0x170] sm:$0xff]  }
  0x16   :  { %1131 = vmatprep.subr.bf16.mxu1 %v1257_v22  ;;  %v1298_v60 = vld [vmem:[%s1632_s1 + $0x1e8] sm:$0xff]   ;;  %v1304_v1 = vld [vmem:[%s1632_s1 + $0x130] sm:$0xff]   ;;  %v1307_v4 = vld [vmem:[%s1632_s1 + $0x178] sm:$0xff]  }
  0x17   :  { %1104 = vmatpush3.bf16.msra.mxu0 %v1256_v21  ;;  %v1301_v62 = vld [vmem:[%s1632_s1 + $0x1a8] sm:$0xff]   ;;  %v1305_v2 = vld [vmem:[%s1632_s1 + $0x1f0] sm:$0xff]   ;;  %v1308_v5 = vld [vmem:[%s1632_s1 + $0x138] sm:$0xff]  }
  0x18   :  { %1105 = vmatprep.subr.bf16.mxu0 %v1259_v24  ;;  %v1306_v3 = vld [vmem:[%s1632_s1 + $0x1b0] sm:$0xff]   ;;  %v1309_v6 = vld [vmem:[%s1632_s1 + $0x1f8] sm:$0xff]   ;;  %v1314_v10 = vld [vmem:[%s1632_s1 + $0x200] sm:$0xff]  }
  0x19   :  { %1132 = vmatpush3.bf16.msra.mxu1 %v1258_v23  ;;  %v1310_v7 = vld [vmem:[%s1633_s0 + $0x10] ss:$36 sps:$4 sm:$0xff]   ;;  %v1313_v9 = vld [vmem:[%s1632_s1 + $0x1b8] sm:$0xff]   ;;  %v1318_v13 = vld [vmem:[%s1632_s1 + $0x208] sm:$0xff]  }
  0x1a   :  { %1133 = vmatprep.subr.bf16.mxu1 %v1261_v26  ;;  %v1312_v8 = vld [vmem:[%s1633_s0 + $0x14] ss:$36 sps:$4 sm:$0xff]   ;;  %v1317_v12 = vld [vmem:[%s1633_s0 + $0x1c] ss:$36 sps:$4 sm:$0xff]   ;;  %v1323_v17 = vld [vmem:[%s1633_s0 + $0x64] ss:$36 sps:$4 sm:$0xff]  }
  0x1b   :  { %1106 = vmatpush3.bf16.msra.mxu0 %v1260_v25  ;;  %v1315_v11 = vld [vmem:[%s1633_s0 + $0x18] ss:$36 sps:$4 sm:$0xff]   ;;  %v1322_v16 = vld [vmem:[%s1632_s1 + $0x210] sm:$0xff]   ;;  %v1325_v18 = vld [vmem:[%s1633_s0 + $0x60] ss:$36 sps:$4 sm:$0xff]  }
  0x1c   :  { %1107 = vmatprep.subr.bf16.mxu0 %v1263_v28  ;;  %v1319_v14 = vld [vmem:[%s1633_s0 + $0x5c] ss:$36 sps:$4 sm:$0xff]   ;;  %v1328_v22 = vld [vmem:[%s1632_s1 + $0x228] sm:$0xff]   ;;  %v1329_v23 = vld [vmem:[%s1632_s1 + $0x230] sm:$0xff]  }
  0x1d   :  { %1134 = vmatpush3.bf16.msra.mxu1 %v1262_v27  ;;  %v1321_v15 = vld [vmem:[%s1633_s0 + $0x58] ss:$36 sps:$4 sm:$0xff]   ;;  %v1327_v20 = vld [vmem:[%s1632_s1 + $0x220] sm:$0xff]   ;;  %v1332_v25 = vld [vmem:[%s1633_s0 + $0x68] ss:$36 sps:$4 sm:$0xff]  }
  0x1e   :  { %1135 = vmatprep.subr.bf16.mxu1 %v1265_v30  ;;  %v1326_v19 = vld [vmem:[%s1632_s1 + $0x218] sm:$0xff]   ;;  %v1331_v21 = vld [vmem:[%s1633_s0 + $0x20] ss:$36 sps:$4 sm:$0xff]  }
  0x1f   :  { %1108 = vmatpush3.bf16.msra.mxu0 %v1264_v29  ;;  %v1330_v24 = vld [vmem:[%s1632_s1 + $0x238] sm:$0xff]   ;;  %v983_v27 = vld [vmem:[%s1634_s2] ss:$0 sm:$0xff] }
  0x20   :  { %1149 = vmatprep.subr.bf16.mxu0 %v1270_v34 }
  0x21   :  { %1136 = vmatpush3.bf16.msra.mxu1 %v1269_v33 }
  0x22   :  { %743 = vmatmul.mubr.bf16.vlgmr.msra.gmra.mrb[0].mxu0 %v1266_v31  ;;  %1177 = vmatprep.subr.bf16.mxu1 %v1275_v38 }
  0x23   :  { %1150 = vmatpush3.bf16.msra.mxu0 %v1274_v37  ;;  %750 = vmatprep.mubr.bf16.mxu0 %v1294_v57 }
  0x24   :  { %792 = vmatmul.mubr.bf16.vlgmr.msra.gmra.mrb[0].mxu1 %v1271_v35  ;;  %1151 = vmatprep.subr.bf16.mxu0 %v1277_v40 }
  0x25   :  { %1178 = vmatpush3.bf16.msra.mxu1 %v1276_v39  ;;  %799 = vmatprep.mubr.bf16.mxu1 %v1299_v61 }
  0x26   :  { %1179 = vmatprep.subr.bf16.mxu1 %v1279_v42 }
  0x27   :  { %1152 = vmatpush3.bf16.msra.mxu0 %v1278_v41 }
  0x28   :  { %1153 = vmatprep.subr.bf16.mxu0 %v1281_v44 }
  0x29   :  { %1180 = vmatpush3.bf16.msra.mxu1 %v1280_v43 }
  0x2a   :  { %1181 = vmatprep.subr.bf16.mxu1 %v1283_v46  ;;  %751 = vmatmul.mubr.bf16.gmra.mrb[4].mxu0 %v1297_v59 }
  0x2b   :  { %1154 = vmatpush3.bf16.msra.mxu0 %v1282_v45  ;;  %840 = vmatprep.mubr.bf16.mxu0 %v1312_v8 }
  0x2c   :  { %1155 = vmatprep.subr.bf16.mxu0 %v1285_v48  ;;  %800 = vmatmul.mubr.bf16.gmra.mrb[4].mxu1 %v1302_v63 }
  0x2d   :  { %1182 = vmatpush3.bf16.msra.mxu1 %v1284_v47  ;;  %889 = vmatprep.mubr.bf16.mxu1 %v1317_v12 }
  0x2e   :  { %1183 = vmatprep.subr.bf16.mxu1 %v1287_v50 }
  0x2f   :  { %1156 = vmatpush3.bf16.msra.mxu0 %v1286_v49 }
  0x30   :  { %1157 = vmatprep.subr.bf16.mxu0 %v1289_v52 }
  0x31   :  { %1184 = vmatpush3.bf16.msra.mxu1 %v1288_v51 }
  0x32   :  { %1185 = vmatprep.subr.bf16.mxu1 %v1291_v54 }
  0x33   :  { %1158 = vmatpush3.bf16.msra.mxu0 %v1290_v53 }
  0x34   :  { %1159 = vmatprep.subr.bf16.mxu0 %v1293_v56 }
  0x35   :  { %1186 = vmatpush3.bf16.msra.mxu1 %v1292_v55 }
  0x36   :  { %1187 = vmatprep.subr.bf16.mxu1 %v1298_v60 }
  0x37   :  { %1160 = vmatpush3.bf16.msra.mxu0 %v1296_v58 }
  0x38   :  { %1161 = vmatprep.subr.bf16.mxu0 %v1303_v0 }
  0x39   :  { %1188 = vmatpush3.bf16.msra.mxu1 %v1301_v62 }
  0x3a   :  { %1189 = vmatprep.subr.bf16.mxu1 %v1305_v2 }
  0x3b   :  { %1162 = vmatpush3.bf16.msra.mxu0 %v1304_v1 }
  0x3c   :  { %1163 = vmatprep.subr.bf16.mxu0 %v1307_v4 }
  0x3d   :  { %1190 = vmatpush3.bf16.msra.mxu1 %v1306_v3 }
  0x3e   :  { %1191 = vmatprep.subr.bf16.mxu1 %v1309_v6 }
  0x3f   :  { %1164 = vmatpush3.bf16.msra.mxu0 %v1308_v5 }
  0x40   :  { %1215 = vmatprep.subr.bf16.mxu0 %v1314_v10 }
  0x41   :  { %1192 = vmatpush3.bf16.msra.mxu1 %v1313_v9 }
  0x42   :  { %841 = vmatmul.mubr.bf16.vlgmr.msra.gmra.mrb[8].mxu0 %v1310_v7 }
  0x43   :  { %1216 = vmatpush3.bf16.msra.mxu0 %v1314_v10  ;;  %848 = vmatprep.mubr.bf16.mxu0 %v1319_v14 }
  0x44   :  { %890 = vmatmul.mubr.bf16.vlgmr.msra.gmra.mrb[8].mxu1 %v1315_v11  ;;  %1217 = vmatprep.subr.bf16.mxu0 %v1318_v13 }
  0x45   :  { %897 = vmatprep.mubr.bf16.mxu1 %v1323_v17 }
  0x47   :  { %1218 = vmatpush3.bf16.msra.mxu0 %v1318_v13 }
  0x48   :  { %1219 = vmatprep.subr.bf16.mxu0 %v1322_v16 }
  0x4a   :  { %849 = vmatmul.mubr.bf16.gmra.mrb[12].mxu0 %v1321_v15 }
  0x4b   :  { %1220 = vmatpush3.bf16.msra.mxu0 %v1322_v16  ;;  %1231 = vmatprep.mubr.bf16.mxu0 %v1331_v21 }
  0x4c   :  { %898 = vmatmul.mubr.bf16.gmra.mrb[12].mxu1 %v1325_v18  ;;  %1221 = vmatprep.subr.bf16.mxu0 %v1326_v19 }
  0x4f   :  { %1222 = vmatpush3.bf16.msra.mxu0 %v1326_v19 }
  0x50   :  { %1223 = vmatprep.subr.bf16.mxu0 %v1327_v20 }
  0x53   :  { %1224 = vmatpush3.bf16.msra.mxu0 %v1327_v20 }
  0x54   :  { %1225 = vmatprep.subr.bf16.mxu0 %v1328_v22 }
  0x57   :  { %1226 = vmatpush3.bf16.msra.mxu0 %v1328_v22 }
  0x58   :  { %1227 = vmatprep.subr.bf16.mxu0 %v1329_v23 }
  0x5b   :  { %1228 = vmatpush3.bf16.msra.mxu0 %v1329_v23 }
  0x5c   :  { %1229 = vmatprep.subr.bf16.mxu0 %v1330_v24 }
  0x5f   :  { %1230 = vmatpush3.bf16.msra.mxu0 %v1330_v24 }
  0x62   :  { %1232 = vmatmul.mubr.bf16.vlgmr.msra.gmra.mrb[16].mxu0 %v1332_v25 }
  0xf5   :  { %v1109_v26 = vpop.f32.mrb[0].mxu0 }
  0xf6   :  { %v1110_v28 = vpop.f32.mrb[1].mxu0 }
  0xf7   :  { %v1111_v29 = vadd.f32 %v1110_v28, %v1109_v26  ;;  %v1112_v30 = vpop.f32.mrb[2].mxu0  ;;  %v1137_v31 = vpop.f32.mrb[0].mxu1 }
  0xf8   :  { %v1113_v32 = vpop.f32.mrb[3].mxu0  ;;  %v1138_v35 = vpop.f32.mrb[1].mxu1 }
  0xf9   :  { %v745_v33 = vadd.f32 %v1111_v29, %v983_v27  ;;  %v1114_v34 = vadd.f32 %v1113_v32, %v1112_v30  ;;  %v1139_v36 = vadd.f32 %v1138_v35, %v1137_v31  ;;  %v1140_v37 = vpop.f32.mrb[2].mxu1 }
  0xfa   :  { %v1141_v39 = vpop.f32.mrb[3].mxu1 }
  0xfb   :  { %v748_v38 = vadd.f32 %v1114_v34, %v983_v27  ;;  %v794_v40 = vadd.f32 %v1139_v36, %v745_v33  ;;  %v1142_v41 = vadd.f32 %v1141_v39, %v1140_v37 }
  0xfd   :  { %v797_v42 = vadd.f32 %v1142_v41, %v748_v38  ;;  %v1115_v43 = vpop.f32.mrb[4].mxu0 }
  0xfe   :  { %v1116_v44 = vpop.f32.mrb[5].mxu0 }
  0xff   :  { %v1117_v45 = vadd.f32 %v1116_v44, %v1115_v43  ;;  %v1118_v46 = vpop.f32.mrb[6].mxu0  ;;  %v1143_v47 = vpop.f32.mrb[4].mxu1 }
 0x100   :  { %v1119_v48 = vpop.f32.mrb[7].mxu0  ;;  %v1144_v51 = vpop.f32.mrb[5].mxu1 }
 0x101   :  { %v753_v49 = vadd.f32 %v1117_v45, %v983_v27  ;;  %v1120_v50 = vadd.f32 %v1119_v48, %v1118_v46  ;;  %v1145_v52 = vadd.f32 %v1144_v51, %v1143_v47  ;;  %v1146_v53 = vpop.f32.mrb[6].mxu1 }
 0x102   :  { %v1147_v55 = vpop.f32.mrb[7].mxu1 }
 0x103   :  { %v756_v54 = vadd.f32 %v1120_v50, %v983_v27  ;;  %v802_v56 = vadd.f32 %v1145_v52, %v753_v49  ;;  %v1148_v57 = vadd.f32 %v1147_v55, %v1146_v53 }
 0x105   :  { %v805_v58 = vadd.f32 %v1148_v57, %v756_v54 }
 0x115   :  { %v1165_v59 = vpop.f32.mrb[8].mxu0 }
 0x116   :  { %v1166_v60 = vpop.f32.mrb[9].mxu0 }
 0x117   :  { %v1167_v61 = vadd.f32 %v1166_v60, %v1165_v59  ;;  %v1168_v62 = vpop.f32.mrb[10].mxu0  ;;  %v1193_v63 = vpop.f32.mrb[8].mxu1 }
 0x118   :  { %v1169_v0 = vpop.f32.mrb[11].mxu0  ;;  %v1194_v3 = vpop.f32.mrb[9].mxu1 }
 0x119   :  { %v843_v1 = vadd.f32 %v1167_v61, %v794_v40  ;;  %v1170_v2 = vadd.f32 %v1169_v0, %v1168_v62  ;;  %v1195_v4 = vadd.f32 %v1194_v3, %v1193_v63  ;;  %v1196_v5 = vpop.f32.mrb[10].mxu1 }
 0x11a   :  { %v1197_v7 = vpop.f32.mrb[11].mxu1 }
 0x11b   :  { %v846_v6 = vadd.f32 %v1170_v2, %v797_v42  ;;  %v1198_v8 = vadd.f32 %v1197_v7, %v1196_v5  ;;  %v892_v9 = vadd.f32 %v1195_v4, %v843_v1 }
 0x11d   :  { %v1171_v10 = vpop.f32.mrb[12].mxu0  ;;  %v895_v12 = vadd.f32 %v1198_v8, %v846_v6 }
 0x11e   :  { %v1172_v11 = vpop.f32.mrb[13].mxu0 }
 0x11f   :  { %v1173_v13 = vadd.f32 %v1172_v11, %v1171_v10  ;;  %v1174_v14 = vpop.f32.mrb[14].mxu0  ;;  %v1199_v15 = vpop.f32.mrb[12].mxu1 }
 0x120   :  { %v1175_v16 = vpop.f32.mrb[15].mxu0  ;;  %v1200_v19 = vpop.f32.mrb[13].mxu1 }
 0x121   :  { %v851_v17 = vadd.f32 %v1173_v13, %v802_v56  ;;  %v1176_v18 = vadd.f32 %v1175_v16, %v1174_v14  ;;  %v1201_v20 = vadd.f32 %v1200_v19, %v1199_v15  ;;  %v1202_v21 = vpop.f32.mrb[14].mxu1 }
 0x122   :  { %v1203_v23 = vpop.f32.mrb[15].mxu1 }
 0x123   :  { %v854_v22 = vadd.f32 %v1176_v18, %v805_v58  ;;  %v1204_v24 = vadd.f32 %v1203_v23, %v1202_v21  ;;  %v900_v25 = vadd.f32 %v1201_v20, %v851_v17 }
 0x125   :  { %v903_v26 = vadd.f32 %v1204_v24, %v854_v22 }
 0x135   :  { %v1233_v27 = vpop.f32.mrb[16].mxu0 }
 0x136   :  { %v949_v28 = vadd.f32 %v1233_v27, %v900_v25  ;;  %v940_v29 = vpop.f32.mrb[17].mxu0 }
 0x137   :  { %v941_v30 = vadd.f32 %v940_v29, %v892_v9  ;;  %v1234_v31 = vpop.f32.mrb[18].mxu0 }
 0x138   :  { %v952_v32 = vadd.f32 %v1234_v31, %v903_v26  ;;  %v943_v33 = vpop.f32.mrb[19].mxu0  ;;  %v957_v35 = vmax.f32 %v949_v28, 0.0 }
 0x139   :  { %v944_v34 = vadd.f32 %v943_v33, %v895_v12  ;;  %v955_v37 = vmax.f32 %v941_v30, 0.0 }
 0x13a   :  { %v958_v36 = vmax.f32 %v952_v32, 0.0 }
 0x13b   :  { %v956_v38 = vmax.f32 %v944_v34, 0.0 }
 0x13c   :  { %v1090_v39 = vpack.c.bf16 %v958_v36, %v957_v35 }
 0x13d   :  { %v1085_v40 = vpack.c.bf16 %v956_v38, %v955_v37 }
 0x13e   :  { %1092 = vst [vmem:[%s1635_s3 + $0x8] sm:$0xff] %v1090_v39  }
 0x13f   :  { %1086 = vst [vmem:[%s1635_s3] sm:$0xff] %v1085_v40  }

// kernel: autoencoder_forward.11
= control target key start
LH: loop header
LB: loop body
LE: loop exit
PB: predicated region body
PF: predicated region fallthrough
CT: control target
= control target key end

     0   :  { %v1926_v22 = vmov 1966171168   ;;  %v286_v24 = vlaneseq  ;;  %s2377_s1 = inlined_call_operand.vmem [shape: bf16[2048,128], index: 1, kind: input, shape index: {}]   ;;  %s2378_s0 = inlined_call_operand.vmem [shape: bf16[2,2048], index: 0, kind: input, shape index: {}]   ;;  %s2379_s2 = inlined_call_operand.vmem [shape: f32[1,128], index: 2, kind: input, shape index: {}]   ;;  %s2380_s3 = inlined_call_operand.vmem [shape: bf16[2,128], index: 3, kind: output, shape index: {}]  }
   0x1   :  { %v1796_v0 = vld [vmem:[%s2377_s1 + $0x40] sm:$0xff]   ;;  %v1800_v4 = vld [vmem:[%s2377_s1 + $0x48] sm:$0xff]   ;;  %v1804_v8 = vld [vmem:[%s2377_s1 + $0x50] sm:$0xff]   ;;  %v284_v23 = vunpack.c.l.s4 %v1926_v22 }
   0x2   :  { %v1797_v1 = vld [vmem:[%s2377_s1 + $0xc0] sm:$0xff]   ;;  %1619 = vmatprep.subr.bf16.mxu0 %v1796_v0  ;;  %v1801_v5 = vld [vmem:[%s2377_s1 + $0xc8] sm:$0xff]   ;;  %v1805_v9 = vld [vmem:[%s2377_s1 + $0xd0] sm:$0xff]   ;;  %v287_v30 = vshrl.u32 %v286_v24, 7 }
   0x3   :  { %v1798_v2 = vld [vmem:[%s2377_s1] sm:$0xff]   ;;  %1641 = vmatprep.subr.bf16.mxu1 %v1797_v1  ;;  %v1802_v6 = vld [vmem:[%s2377_s1 + $0x8] sm:$0xff]   ;;  %v1806_v10 = vld [vmem:[%s2377_s1 + $0x10] sm:$0xff]   ;;  %v285_v29 = vunpack.c.0.s8 %v284_v23 }
   0x4   :  { %v1799_v3 = vld [vmem:[%s2377_s1 + $0x80] sm:$0xff]   ;;  %1620 = vmatpush3.bf16.msra.mxu0 %v1798_v2  ;;  %v1803_v7 = vld [vmem:[%s2377_s1 + $0x88] sm:$0xff]   ;;  %v1807_v11 = vld [vmem:[%s2377_s1 + $0x90] sm:$0xff]  }
   0x5   :  { %1642 = vmatpush3.bf16.msra.mxu1 %v1799_v3  ;;  %1621 = vmatprep.subr.bf16.mxu0 %v1800_v4  ;;  %v1808_v12 = vld [vmem:[%s2377_s1 + $0x58] sm:$0xff]   ;;  %v1812_v16 = vld [vmem:[%s2377_s1 + $0x60] sm:$0xff]   ;;  %v1816_v20 = vld [vmem:[%s2377_s1 + $0x68] sm:$0xff]   ;;  %v2037_v35 = vsub.s32 %v285_v29, %v287_v30 }
   0x6   :  { %1643 = vmatprep.subr.bf16.mxu1 %v1801_v5  ;;  %v1809_v13 = vld [vmem:[%s2377_s1 + $0xd8] sm:$0xff]   ;;  %v1813_v17 = vld [vmem:[%s2377_s1 + $0xe0] sm:$0xff]   ;;  %v1817_v21 = vld [vmem:[%s2377_s1 + $0xe8] sm:$0xff]  }
   0x7   :  { %v1810_v14 = vld [vmem:[%s2377_s1 + $0x18] sm:$0xff]   ;;  %v1814_v18 = vld [vmem:[%s2377_s1 + $0x20] sm:$0xff]   ;;  %v1818_v25 = vld [vmem:[%s2377_s1 + $0x28] sm:$0xff]  }
   0x8   :  { %1622 = vmatpush3.bf16.msra.mxu0 %v1802_v6  ;;  %v1811_v15 = vld [vmem:[%s2377_s1 + $0x98] sm:$0xff]   ;;  %v1815_v19 = vld [vmem:[%s2377_s1 + $0xa0] sm:$0xff]   ;;  %v1819_v26 = vld [vmem:[%s2377_s1 + $0xa8] sm:$0xff]  }
   0x9   :  { %1644 = vmatpush3.bf16.msra.mxu1 %v1803_v7  ;;  %1623 = vmatprep.subr.bf16.mxu0 %v1804_v8  ;;  %v1820_v27 = vld [vmem:[%s2377_s1 + $0x70] sm:$0xff]   ;;  %v1824_v33 = vld [vmem:[%s2377_s1 + $0x78] sm:$0xff]   ;;  %v15_v38 = vld [vmem:[%s2378_s0] sm:$0xff] }
   0xa   :  { %1645 = vmatprep.subr.bf16.mxu1 %v1805_v9  ;;  %v1821_v28 = vld [vmem:[%s2377_s1 + $0xf0] sm:$0xff]   ;;  %v1825_v34 = vld [vmem:[%s2377_s1 + $0xf8] sm:$0xff]   ;;  %v282_v39 = vcombine.high %v15_v38, %v15_v38  ;;  %v289_v40 = vrot.slane %v15_v38, %v2037_v35  ;;  %v1830_v41 = vld [vmem:[%s2377_s1 + $0x140] sm:$0xff]  }
   0xb   :  { %v1822_v31 = vld [vmem:[%s2377_s1 + $0x30] sm:$0xff]   ;;  %v1826_v36 = vld [vmem:[%s2377_s1 + $0x38] sm:$0xff]   ;;  %v1831_v42 = vld [vmem:[%s2377_s1 + $0x1c0] sm:$0xff]  }
   0xc   :  { %1624 = vmatpush3.bf16.msra.mxu0 %v1806_v10  ;;  %v1823_v32 = vld [vmem:[%s2377_s1 + $0xb0] sm:$0xff]   ;;  %v1827_v37 = vld [vmem:[%s2377_s1 + $0xb8] sm:$0xff]   ;;  %v297_v43 = vcombine.high %v289_v40, %v289_v40  ;;  %v305_v44 = vrot.slane %v289_v40, %v2037_v35  ;;  %v2057_v45 = vrot.slane %v282_v39, %v2037_v35  ;;  %v1832_v47 = vld [vmem:[%s2377_s1 + $0x100] sm:$0xff]  }
   0xd   :  { %1646 = vmatpush3.bf16.msra.mxu1 %v1807_v11  ;;  %1625 = vmatprep.subr.bf16.mxu0 %v1808_v12  ;;  %v1834_v50 = vld [vmem:[%s2377_s1 + $0x148] sm:$0xff]   ;;  %v1833_v52 = vld [vmem:[%s2377_s1 + $0x180] sm:$0xff]   ;;  %v1838_v57 = vld [vmem:[%s2377_s1 + $0x150] sm:$0xff]  }
   0xe   :  { %1647 = vmatprep.subr.bf16.mxu1 %v1809_v13  ;;  %v319_v46 = vrot.slane %v297_v43, %v2037_v35  ;;  %v298_v48 = vcombine.high %v2057_v45, %v2057_v45  ;;  %v327_v49 = vcombine.high %v305_v44, %v305_v44  ;;  %v1835_v54 = vld [vmem:[%s2377_s1 + $0x1c8] sm:$0xff]   ;;  %v1839_v59 = vld [vmem:[%s2377_s1 + $0x1d0] sm:$0xff]   ;;  %v1842_v61 = vld [vmem:[%s2377_s1 + $0x158] sm:$0xff]  }
   0xf   :  { %v1836_v55 = vld [vmem:[%s2377_s1 + $0x108] sm:$0xff]   ;;  %v1840_v60 = vld [vmem:[%s2377_s1 + $0x110] sm:$0xff]   ;;  %v1843_v63 = vld [vmem:[%s2377_s1 + $0x1d8] sm:$0xff]  }
  0x10   :  { %1626 = vmatpush3.bf16.msra.mxu0 %v1810_v14  ;;  %1196 = vmatprep.mubr.bf16.mxu0 %v319_v46  ;;  %v329_v51 = vcombine.high %v319_v46, %v319_v46  ;;  %v326_v53 = vrot.slane %v298_v48, %v2037_v35  ;;  %v1837_v58 = vld [vmem:[%s2377_s1 + $0x188] sm:$0xff]   ;;  %v1841_v62 = vld [vmem:[%s2377_s1 + $0x190] sm:$0xff]   ;;  %v1844_v0 = vld [vmem:[%s2377_s1 + $0x118] sm:$0xff]  }
  0x11   :  { %1648 = vmatpush3.bf16.msra.mxu1 %v1811_v15  ;;  %1627 = vmatprep.subr.bf16.mxu0 %v1812_v16  ;;  %v1846_v1 = vld [vmem:[%s2377_s1 + $0x160] sm:$0xff]   ;;  %v1845_v2 = vld [vmem:[%s2377_s1 + $0x198] sm:$0xff]   ;;  %v2117_v5 = vld [vmem:[%s2378_s0 + $0x8] sm:$0xff] }
  0x12   :  { %1649 = vmatprep.subr.bf16.mxu1 %v1813_v17  ;;  %1236 = vmatprep.mubr.bf16.mxu1 %v329_v51  ;;  %v330_v56 = vcombine.high %v326_v53, %v326_v53  ;;  %v1847_v3 = vld [vmem:[%s2377_s1 + $0x1e0] sm:$0xff]   ;;  %v1850_v6 = vld [vmem:[%s2377_s1 + $0x168] sm:$0xff]   ;;  %v1854_v10 = vld [vmem:[%s2377_s1 + $0x170] sm:$0xff]   ;;  %v2139_v12 = vrot.slane %v2117_v5, %v2037_v35  ;;  %v331_v46 = vcombine.high %v2117_v5, %v2117_v5 }
  0x13   :  { %v1848_v4 = vld [vmem:[%s2377_s1 + $0x120] sm:$0xff]   ;;  %v1851_v8 = vld [vmem:[%s2377_s1 + $0x1e8] sm:$0xff]   ;;  %v1855_v13 = vld [vmem:[%s2377_s1 + $0x1f0] sm:$0xff]  }
  0x14   :  { %1628 = vmatpush3.bf16.msra.mxu0 %v1814_v18  ;;  %v1849_v7 = vld [vmem:[%s2377_s1 + $0x1a0] sm:$0xff]   ;;  %v1852_v9 = vld [vmem:[%s2377_s1 + $0x128] sm:$0xff]   ;;  %v1856_v14 = vld [vmem:[%s2377_s1 + $0x130] sm:$0xff]   ;;  %v346_v17 = vcombine.high %v2139_v12, %v2139_v12 }
  0x15   :  { %1650 = vmatpush3.bf16.msra.mxu1 %v1815_v19  ;;  %1629 = vmatprep.subr.bf16.mxu0 %v1816_v20  ;;  %v1853_v11 = vld [vmem:[%s2377_s1 + $0x1a8] sm:$0xff]   ;;  %v1858_v15 = vld [vmem:[%s2377_s1 + $0x178] sm:$0xff]   ;;  %v1857_v16 = vld [vmem:[%s2377_s1 + $0x1b0] sm:$0xff]   ;;  %v312_v20 = vrot.slane %v2057_v45, %v2037_v35 }
  0x16   :  { %1651 = vmatprep.subr.bf16.mxu1 %v1817_v21  ;;  %v1859_v18 = vld [vmem:[%s2377_s1 + $0x1f8] sm:$0xff]   ;;  %v1862_v21 = vld [vmem:[%s2377_s1 + $0x240] sm:$0xff]   ;;  %v368_v23 = vrot.slane %v346_v17, %v2037_v35  ;;  %v1867_v30 = vld [vmem:[%s2377_s1 + $0x2c8] sm:$0xff]  }
  0x17   :  { %v1860_v19 = vld [vmem:[%s2377_s1 + $0x138] sm:$0xff]   ;;  %v1863_v24 = vld [vmem:[%s2377_s1 + $0x2c0] sm:$0xff]   ;;  %v1873_v38 = vld [vmem:[%s2377_s1 + $0x290] sm:$0xff]  }
  0x18   :  { %1630 = vmatpush3.bf16.msra.mxu0 %v1818_v25  ;;  %v1861_v22 = vld [vmem:[%s2377_s1 + $0x1b8] sm:$0xff]   ;;  %v1864_v25 = vld [vmem:[%s2377_s1 + $0x200] sm:$0xff]   ;;  %v378_v29 = vcombine.high %v368_v23, %v368_v23  ;;  %v1882_v45 = vld [vmem:[%s2377_s1 + $0x268] sm:$0xff]  }
  0x19   :  { %1652 = vmatpush3.bf16.msra.mxu1 %v1819_v26  ;;  %1631 = vmatprep.subr.bf16.mxu0 %v1820_v27  ;;  %v328_v26 = vcombine.high %v312_v20, %v312_v20  ;;  %v1866_v27 = vld [vmem:[%s2377_s1 + $0x248] sm:$0xff]   ;;  %v1875_v39 = vld [vmem:[%s2377_s1 + $0x2d8] sm:$0xff]   ;;  %v1879_v43 = vld [vmem:[%s2377_s1 + $0x2e0] sm:$0xff]  }
  0x1a   :  { %1653 = vmatprep.subr.bf16.mxu1 %v1821_v28  ;;  %v1865_v28 = vld [vmem:[%s2377_s1 + $0x280] sm:$0xff]   ;;  %v1876_v40 = vld [vmem:[%s2377_s1 + $0x218] sm:$0xff]   ;;  %v1883_v48 = vld [vmem:[%s2377_s1 + $0x2e8] sm:$0xff]  }
  0x1b   :  { %v1885_v51 = vld [vmem:[%s2377_s1 + $0x2a8] sm:$0xff]   ;;  %v1909_v17 = vld [vmem:[%s2377_s1 + $0x398] sm:$0xff]  }
  0x1c   :  { %1632 = vmatpush3.bf16.msra.mxu0 %v1822_v31  ;;  %v1868_v31 = vld [vmem:[%s2377_s1 + $0x208] sm:$0xff]  }
  0x1d   :  { %1654 = vmatpush3.bf16.msra.mxu1 %v1823_v32  ;;  %1633 = vmatprep.subr.bf16.mxu0 %v1824_v33  ;;  %v1870_v32 = vld [vmem:[%s2377_s1 + $0x250] sm:$0xff]   ;;  %v1869_v33 = vld [vmem:[%s2377_s1 + $0x288] sm:$0xff]  }
  0x1e   :  { %1655 = vmatprep.subr.bf16.mxu1 %v1825_v34  ;;  %v1871_v34 = vld [vmem:[%s2377_s1 + $0x2d0] sm:$0xff]  }
  0x20   :  { %1634 = vmatpush3.bf16.msra.mxu0 %v1826_v36  ;;  %v1872_v36 = vld [vmem:[%s2377_s1 + $0x210] sm:$0xff]  }
  0x21   :  { %1656 = vmatpush3.bf16.msra.mxu1 %v1827_v37  ;;  %1663 = vmatprep.subr.bf16.mxu0 %v1830_v41  ;;  %v1874_v37 = vld [vmem:[%s2377_s1 + $0x258] sm:$0xff]   ;;  %v1878_v41 = vld [vmem:[%s2377_s1 + $0x260] sm:$0xff]  }
  0x22   :  { %1685 = vmatprep.subr.bf16.mxu1 %v1831_v42  ;;  %v1877_v42 = vld [vmem:[%s2377_s1 + $0x298] sm:$0xff]  }
  0x23   :  { %1197 = vmatmul.mubr.bf16.vlgmr.msra.gmra.mrb[0].mxu0 %v305_v44  ;;  %v1880_v44 = vld [vmem:[%s2377_s1 + $0x220] sm:$0xff]  }
  0x24   :  { %1664 = vmatpush3.bf16.msra.mxu0 %v1832_v47  ;;  %1237 = vmatmul.mubr.bf16.vlgmr.msra.gmra.mrb[0].mxu1 %v327_v49  ;;  %v1881_v47 = vld [vmem:[%s2377_s1 + $0x2a0] sm:$0xff]   ;;  %v1884_v49 = vld [vmem:[%s2377_s1 + $0x228] sm:$0xff]  }
  0x25   :  { %1665 = vmatprep.subr.bf16.mxu0 %v1834_v50  ;;  %1686 = vmatpush3.bf16.msra.mxu1 %v1833_v52  ;;  %v1886_v50 = vld [vmem:[%s2377_s1 + $0x270] sm:$0xff]   ;;  %v2245_v52 = vrot.slane %v331_v46, %v2037_v35 }
  0x26   :  { %1276 = vmatprep.mubr.bf16.mxu0 %v326_v53  ;;  %1687 = vmatprep.subr.bf16.mxu1 %v1835_v54  ;;  %v1887_v53 = vld [vmem:[%s2377_s1 + $0x2f0] sm:$0xff]  }
  0x27   :  { %1316 = vmatprep.mubr.bf16.mxu1 %v330_v56  ;;  %v1888_v54 = vld [vmem:[%s2377_s1 + $0x230] sm:$0xff]  }
  0x28   :  { %1666 = vmatpush3.bf16.msra.mxu0 %v1836_v55  ;;  %v1890_v55 = vld [vmem:[%s2377_s1 + $0x278] sm:$0xff]   ;;  %v1889_v56 = vld [vmem:[%s2377_s1 + $0x2b0] sm:$0xff]  }
  0x29   :  { %1667 = vmatprep.subr.bf16.mxu0 %v1838_v57  ;;  %1688 = vmatpush3.bf16.msra.mxu1 %v1837_v58  ;;  %v347_v57 = vcombine.high %v2245_v52, %v2245_v52  ;;  %v1891_v58 = vld [vmem:[%s2377_s1 + $0x2f8] sm:$0xff]  }
  0x2a   :  { %1689 = vmatprep.subr.bf16.mxu1 %v1839_v59  ;;  %v1892_v59 = vld [vmem:[%s2377_s1 + $0x238] sm:$0xff]  }
  0x2c   :  { %1668 = vmatpush3.bf16.msra.mxu0 %v1840_v60  ;;  %v354_v60 = vrot.slane %v2139_v12, %v2037_v35  ;;  %v1906_v12 = vld [vmem:[%s2377_s1 + $0x358] sm:$0xff]  }
  0x2d   :  { %1669 = vmatprep.subr.bf16.mxu0 %v1842_v61  ;;  %1690 = vmatpush3.bf16.msra.mxu1 %v1841_v62  ;;  %v1894_v61 = vld [vmem:[%s2377_s1 + $0x340] sm:$0xff]   ;;  %v1893_v62 = vld [vmem:[%s2377_s1 + $0x2b8] sm:$0xff]  }
  0x2e   :  { %1691 = vmatprep.subr.bf16.mxu1 %v1843_v63  ;;  %v375_v63 = vrot.slane %v347_v57, %v2037_v35 }
  0x30   :  { %1670 = vmatpush3.bf16.msra.mxu0 %v1844_v0  ;;  %v1895_v0 = vld [vmem:[%s2377_s1 + $0x3c0] sm:$0xff]   ;;  %v379_v5 = vcombine.high %v375_v63, %v375_v63 }
  0x31   :  { %1671 = vmatprep.subr.bf16.mxu0 %v1846_v1  ;;  %1692 = vmatpush3.bf16.msra.mxu1 %v1845_v2  ;;  %v1896_v1 = vld [vmem:[%s2377_s1 + $0x300] sm:$0xff]   ;;  %v376_v2 = vcombine.high %v354_v60, %v354_v60 }
  0x32   :  { %1693 = vmatprep.subr.bf16.mxu1 %v1847_v3  ;;  %v1898_v3 = vld [vmem:[%s2377_s1 + $0x348] sm:$0xff]  }
  0x34   :  { %1672 = vmatpush3.bf16.msra.mxu0 %v1848_v4  ;;  %v1897_v4 = vld [vmem:[%s2377_s1 + $0x380] sm:$0xff]  }
  0x35   :  { %1673 = vmatprep.subr.bf16.mxu0 %v1850_v6  ;;  %1694 = vmatpush3.bf16.msra.mxu1 %v1849_v7  ;;  %v1899_v6 = vld [vmem:[%s2377_s1 + $0x3c8] sm:$0xff]  }
  0x36   :  { %1695 = vmatprep.subr.bf16.mxu1 %v1851_v8  ;;  %v1900_v7 = vld [vmem:[%s2377_s1 + $0x308] sm:$0xff]   ;;  %v1902_v8 = vld [vmem:[%s2377_s1 + $0x350] sm:$0xff]  }
  0x38   :  { %1674 = vmatpush3.bf16.msra.mxu0 %v1852_v9  ;;  %v1901_v9 = vld [vmem:[%s2377_s1 + $0x388] sm:$0xff]  }
  0x39   :  { %1675 = vmatprep.subr.bf16.mxu0 %v1854_v10  ;;  %1696 = vmatpush3.bf16.msra.mxu1 %v1853_v11  ;;  %v1903_v10 = vld [vmem:[%s2377_s1 + $0x3d0] sm:$0xff]  }
  0x3a   :  { %1697 = vmatprep.subr.bf16.mxu1 %v1855_v13  ;;  %v1904_v11 = vld [vmem:[%s2377_s1 + $0x310] sm:$0xff]  }
  0x3b   :  { %v1905_v13 = vld [vmem:[%s2377_s1 + $0x390] sm:$0xff]  }
  0x3c   :  { %1676 = vmatpush3.bf16.msra.mxu0 %v1856_v14  ;;  %v1907_v14 = vld [vmem:[%s2377_s1 + $0x3d8] sm:$0xff]  }
  0x3d   :  { %1677 = vmatprep.subr.bf16.mxu0 %v1858_v15  ;;  %1698 = vmatpush3.bf16.msra.mxu1 %v1857_v16  ;;  %v1908_v15 = vld [vmem:[%s2377_s1 + $0x318] sm:$0xff]   ;;  %v1910_v16 = vld [vmem:[%s2377_s1 + $0x360] sm:$0xff]  }
  0x3e   :  { %1699 = vmatprep.subr.bf16.mxu1 %v1859_v18  ;;  %v1911_v18 = vld [vmem:[%s2377_s1 + $0x3e0] sm:$0xff]  }
  0x40   :  { %1678 = vmatpush3.bf16.msra.mxu0 %v1860_v19  ;;  %v1912_v19 = vld [vmem:[%s2377_s1 + $0x320] sm:$0xff]  }
  0x41   :  { %1707 = vmatprep.subr.bf16.mxu0 %v1862_v21  ;;  %1700 = vmatpush3.bf16.msra.mxu1 %v1861_v22  ;;  %v1913_v21 = vld [vmem:[%s2377_s1 + $0x3a0] sm:$0xff]   ;;  %v1915_v22 = vld [vmem:[%s2377_s1 + $0x3e8] sm:$0xff]  }
  0x42   :  { %1729 = vmatprep.subr.bf16.mxu1 %v1863_v24  ;;  %v1918_v24 = vld [vmem:[%s2377_s1 + $0x370] sm:$0xff]  }
  0x43   :  { %1277 = vmatmul.mubr.bf16.vlgmr.msra.gmra.mrb[4].mxu0 %v312_v20  ;;  %v1914_v20 = vld [vmem:[%s2377_s1 + $0x368] sm:$0xff]  }
  0x44   :  { %1708 = vmatpush3.bf16.msra.mxu0 %v1864_v25  ;;  %1356 = vmatprep.mubr.bf16.mxu0 %v368_v23  ;;  %v1916_v23 = vld [vmem:[%s2377_s1 + $0x328] sm:$0xff]  }
  0x45   :  { %1317 = vmatmul.mubr.bf16.vlgmr.msra.gmra.mrb[4].mxu1 %v328_v26  ;;  %1709 = vmatprep.subr.bf16.mxu0 %v1866_v27  ;;  %v1917_v25 = vld [vmem:[%s2377_s1 + $0x3a8] sm:$0xff]   ;;  %v1919_v26 = vld [vmem:[%s2377_s1 + $0x3f0] sm:$0xff]  }
  0x46   :  { %1730 = vmatpush3.bf16.msra.mxu1 %v1865_v28  ;;  %1396 = vmatprep.mubr.bf16.mxu1 %v378_v29  ;;  %v1920_v27 = vld [vmem:[%s2377_s1 + $0x330] sm:$0xff]   ;;  %v1922_v28 = vld [vmem:[%s2377_s1 + $0x378] sm:$0xff]  }
  0x47   :  { %1731 = vmatprep.subr.bf16.mxu1 %v1867_v30  ;;  %v1921_v29 = vld [vmem:[%s2377_s1 + $0x3b0] sm:$0xff]   ;;  %v1923_v30 = vld [vmem:[%s2377_s1 + $0x3f8] sm:$0xff]  }
  0x48   :  { %1710 = vmatpush3.bf16.msra.mxu0 %v1868_v31  ;;  %v1924_v31 = vld [vmem:[%s2377_s1 + $0x338] sm:$0xff]  }
  0x49   :  { %1711 = vmatprep.subr.bf16.mxu0 %v1870_v32  ;;  %v361_v32 = vrot.slane %v2245_v52, %v2037_v35 }
  0x4a   :  { %1732 = vmatpush3.bf16.msra.mxu1 %v1869_v33  ;;  %v1925_v33 = vld [vmem:[%s2377_s1 + $0x3b8] sm:$0xff]  }
  0x4b   :  { %1733 = vmatprep.subr.bf16.mxu1 %v1871_v34  ;;  %v377_v34 = vcombine.high %v361_v32, %v361_v32 }
  0x4c   :  { %1712 = vmatpush3.bf16.msra.mxu0 %v1872_v36 }
  0x4d   :  { %1713 = vmatprep.subr.bf16.mxu0 %v1874_v37  ;;  %v1490_v37 = vld [vmem:[%s2379_s2] ss:$0 sm:$0xff] }
  0x4e   :  { %1734 = vmatpush3.bf16.msra.mxu1 %v1873_v38 }
  0x4f   :  { %1735 = vmatprep.subr.bf16.mxu1 %v1875_v39 }
  0x50   :  { %1714 = vmatpush3.bf16.msra.mxu0 %v1876_v40 }
  0x51   :  { %1715 = vmatprep.subr.bf16.mxu0 %v1878_v41 }
  0x52   :  { %1736 = vmatpush3.bf16.msra.mxu1 %v1877_v42 }
  0x53   :  { %1737 = vmatprep.subr.bf16.mxu1 %v1879_v43 }
  0x54   :  { %1716 = vmatpush3.bf16.msra.mxu0 %v1880_v44 }
  0x55   :  { %1717 = vmatprep.subr.bf16.mxu0 %v1882_v45 }
  0x56   :  { %1738 = vmatpush3.bf16.msra.mxu1 %v1881_v47 }
  0x57   :  { %1739 = vmatprep.subr.bf16.mxu1 %v1883_v48 }
  0x58   :  { %1718 = vmatpush3.bf16.msra.mxu0 %v1884_v49 }
  0x59   :  { %1719 = vmatprep.subr.bf16.mxu0 %v1886_v50 }
  0x5a   :  { %1740 = vmatpush3.bf16.msra.mxu1 %v1885_v51 }
  0x5b   :  { %1741 = vmatprep.subr.bf16.mxu1 %v1887_v53 }
  0x5c   :  { %1720 = vmatpush3.bf16.msra.mxu0 %v1888_v54 }
  0x5d   :  { %1721 = vmatprep.subr.bf16.mxu0 %v1890_v55 }
  0x5e   :  { %1742 = vmatpush3.bf16.msra.mxu1 %v1889_v56 }
  0x5f   :  { %1743 = vmatprep.subr.bf16.mxu1 %v1891_v58 }
  0x60   :  { %1722 = vmatpush3.bf16.msra.mxu0 %v1892_v59 }
  0x61   :  { %1751 = vmatprep.subr.bf16.mxu0 %v1894_v61 }
  0x62   :  { %1744 = vmatpush3.bf16.msra.mxu1 %v1893_v62 }
  0x63   :  { %1357 = vmatmul.mubr.bf16.vlgmr.msra.gmra.mrb[8].mxu0 %v354_v60  ;;  %1773 = vmatprep.subr.bf16.mxu1 %v1895_v0 }
  0x64   :  { %1752 = vmatpush3.bf16.msra.mxu0 %v1896_v1  ;;  %1436 = vmatprep.mubr.bf16.mxu0 %v375_v63 }
  0x65   :  { %1397 = vmatmul.mubr.bf16.vlgmr.msra.gmra.mrb[8].mxu1 %v376_v2  ;;  %1753 = vmatprep.subr.bf16.mxu0 %v1898_v3 }
  0x66   :  { %1774 = vmatpush3.bf16.msra.mxu1 %v1897_v4  ;;  %1476 = vmatprep.mubr.bf16.mxu1 %v379_v5 }
  0x67   :  { %1775 = vmatprep.subr.bf16.mxu1 %v1899_v6 }
  0x68   :  { %1754 = vmatpush3.bf16.msra.mxu0 %v1900_v7 }
  0x69   :  { %1755 = vmatprep.subr.bf16.mxu0 %v1902_v8 }
  0x6a   :  { %1776 = vmatpush3.bf16.msra.mxu1 %v1901_v9 }
  0x6b   :  { %1777 = vmatprep.subr.bf16.mxu1 %v1903_v10 }
  0x6c   :  { %1756 = vmatpush3.bf16.msra.mxu0 %v1904_v11 }
  0x6d   :  { %1757 = vmatprep.subr.bf16.mxu0 %v1906_v12 }
  0x6e   :  { %1778 = vmatpush3.bf16.msra.mxu1 %v1905_v13 }
  0x6f   :  { %1779 = vmatprep.subr.bf16.mxu1 %v1907_v14 }
  0x70   :  { %1758 = vmatpush3.bf16.msra.mxu0 %v1908_v15 }
  0x71   :  { %1759 = vmatprep.subr.bf16.mxu0 %v1910_v16 }
  0x72   :  { %1780 = vmatpush3.bf16.msra.mxu1 %v1909_v17 }
  0x73   :  { %1781 = vmatprep.subr.bf16.mxu1 %v1911_v18 }
  0x74   :  { %1760 = vmatpush3.bf16.msra.mxu0 %v1912_v19 }
  0x75   :  { %1761 = vmatprep.subr.bf16.mxu0 %v1914_v20 }
  0x76   :  { %1782 = vmatpush3.bf16.msra.mxu1 %v1913_v21 }
  0x77   :  { %1783 = vmatprep.subr.bf16.mxu1 %v1915_v22 }
  0x78   :  { %1762 = vmatpush3.bf16.msra.mxu0 %v1916_v23 }
  0x79   :  { %1763 = vmatprep.subr.bf16.mxu0 %v1918_v24 }
  0x7a   :  { %1784 = vmatpush3.bf16.msra.mxu1 %v1917_v25 }
  0x7b   :  { %1785 = vmatprep.subr.bf16.mxu1 %v1919_v26 }
  0x7c   :  { %1764 = vmatpush3.bf16.msra.mxu0 %v1920_v27 }
  0x7d   :  { %1765 = vmatprep.subr.bf16.mxu0 %v1922_v28 }
  0x7e   :  { %1786 = vmatpush3.bf16.msra.mxu1 %v1921_v29 }
  0x7f   :  { %1787 = vmatprep.subr.bf16.mxu1 %v1923_v30 }
  0x80   :  { %1766 = vmatpush3.bf16.msra.mxu0 %v1924_v31 }
  0x82   :  { %1788 = vmatpush3.bf16.msra.mxu1 %v1925_v33 }
  0x83   :  { %1437 = vmatmul.mubr.bf16.vlgmr.msra.gmra.mrb[12].mxu0 %v361_v32 }
  0x85   :  { %1477 = vmatmul.mubr.bf16.vlgmr.msra.gmra.mrb[12].mxu1 %v377_v34 }
  0xf6   :  { %v1635_v36 = vpop.f32.mrb[0].mxu0 }
  0xf7   :  { %v1636_v38 = vpop.f32.mrb[1].mxu0  ;;  %v1657_v39 = vpop.f32.mrb[0].mxu1 }
  0xf8   :  { %v1637_v40 = vadd.f32 %v1636_v38, %v1635_v36  ;;  %v1638_v35 = vpop.f32.mrb[2].mxu0  ;;  %v1658_v41 = vpop.f32.mrb[1].mxu1 }
  0xf9   :  { %v1639_v42 = vpop.f32.mrb[3].mxu0  ;;  %v1659_v44 = vadd.f32 %v1658_v41, %v1657_v39  ;;  %v1660_v45 = vpop.f32.mrb[2].mxu1 }
  0xfa   :  { %v1199_v43 = vadd.f32 %v1637_v40, %v1490_v37  ;;  %v1661_v46 = vpop.f32.mrb[3].mxu1 }
  0xfc   :  { %v1239_v47 = vadd.f32 %v1659_v44, %v1199_v43 }
 0x116   :  { %v1679_v48 = vpop.f32.mrb[4].mxu0 }
 0x117   :  { %v1680_v49 = vpop.f32.mrb[5].mxu0 }
 0x118   :  { %v1701_v50 = vpop.f32.mrb[4].mxu1  ;;  %v1681_v51 = vadd.f32 %v1680_v49, %v1679_v48  ;;  %v1682_v52 = vpop.f32.mrb[6].mxu0 }
 0x119   :  { %v1702_v53 = vpop.f32.mrb[5].mxu1  ;;  %v1683_v54 = vpop.f32.mrb[7].mxu0 }
 0x11a   :  { %v1279_v55 = vadd.f32 %v1681_v51, %v1239_v47  ;;  %v1703_v56 = vadd.f32 %v1702_v53, %v1701_v50  ;;  %v1704_v57 = vpop.f32.mrb[6].mxu1 }
 0x11b   :  { %v1705_v58 = vpop.f32.mrb[7].mxu1 }
 0x11c   :  { %v1319_v59 = vadd.f32 %v1703_v56, %v1279_v55 }
 0x136   :  { %v1723_v60 = vpop.f32.mrb[8].mxu0 }
 0x137   :  { %v1724_v61 = vpop.f32.mrb[9].mxu0 }
 0x138   :  { %v1745_v62 = vpop.f32.mrb[8].mxu1  ;;  %v1725_v63 = vadd.f32 %v1724_v61, %v1723_v60  ;;  %v1726_v0 = vpop.f32.mrb[10].mxu0 }
 0x139   :  { %v1746_v1 = vpop.f32.mrb[9].mxu1  ;;  %v1727_v2 = vpop.f32.mrb[11].mxu0 }
 0x13a   :  { %v1359_v3 = vadd.f32 %v1725_v63, %v1319_v59  ;;  %v1747_v4 = vadd.f32 %v1746_v1, %v1745_v62  ;;  %v1748_v5 = vpop.f32.mrb[10].mxu1 }
 0x13b   :  { %v1749_v6 = vpop.f32.mrb[11].mxu1 }
 0x13c   :  { %v1399_v7 = vadd.f32 %v1747_v4, %v1359_v3 }
 0x156   :  { %v1767_v8 = vpop.f32.mrb[12].mxu0 }
 0x157   :  { %v1768_v9 = vpop.f32.mrb[13].mxu0 }
 0x158   :  { %v1789_v10 = vpop.f32.mrb[12].mxu1  ;;  %v1769_v11 = vadd.f32 %v1768_v9, %v1767_v8  ;;  %v1770_v12 = vpop.f32.mrb[14].mxu0 }
 0x159   :  { %v1790_v13 = vpop.f32.mrb[13].mxu1  ;;  %v1771_v14 = vpop.f32.mrb[15].mxu0 }
 0x15a   :  { %v1439_v15 = vadd.f32 %v1769_v11, %v1399_v7  ;;  %v1791_v16 = vadd.f32 %v1790_v13, %v1789_v10  ;;  %v1792_v17 = vpop.f32.mrb[14].mxu1 }
 0x15b   :  { %v1793_v18 = vpop.f32.mrb[15].mxu1 }
 0x15c   :  { %v1479_v19 = vadd.f32 %v1791_v16, %v1439_v15 }
 0x15e   :  { %v1484_v20 = vpack.c.bf16 %v1479_v19, %v1479_v19 }
 0x160   :  { %1485 = vst [vmem:[%s2380_s3] sm:$0x1] %v1484_v20 }

// kernel: autoencoder_forward.12
= control target key start
LH: loop header
LB: loop body
LE: loop exit
PB: predicated region body
PF: predicated region fallthrough
CT: control target
= control target key end

     0   :  { %v1472_v3 = vmov 0   ;;  %s1949_s1 = inlined_call_operand.vmem [shape: bf16[128,2048], index: 1, kind: input, shape index: {}]   ;;  %s1950_s0 = inlined_call_operand.vmem [shape: bf16[2,128], index: 0, kind: input, shape index: {}]   ;;  %s1951_s2 = inlined_call_operand.vmem [shape: f32[1,2048], index: 2, kind: input, shape index: {}]   ;;  %s1952_s3 = inlined_call_operand.vmem [shape: bf16[2,2048], index: 3, kind: output, shape index: {}]  }
   0x1   :  { %v16_v0 = vld [vmem:[%s1949_s1] sm:$0xff]  ;;  %v17_v2 = vld [vmem:[%s1949_s1 + $0x8] sm:$0xff]  ;;  %900 = vmatprep.mubr.bf16.mxu0 %v1472_v3  ;;  %941 = vmatprep.mubr.bf16.mxu1 %v1472_v3  ;;  %v18_v63 = vld [vmem:[%s1949_s1 + $0x10] sm:$0xff] }
   0x2   :  { %v24_v1 = vld [vmem:[%s1949_s1 + $0x40] sm:$0xff]  ;;  %v25_v5 = vld [vmem:[%s1949_s1 + $0x48] sm:$0xff] }
   0x3   :  { %v1335_v4 = vcombine.high %v16_v0, %v24_v1  ;;  %v1334_v6 = vcombine.low %v16_v0, %v24_v1  ;;  %v32_v7 = vld [vmem:[%s1949_s1 + $0x80] sm:$0xff]  ;;  %v1337_v9 = vcombine.high %v17_v2, %v25_v5  ;;  %v1336_v10 = vcombine.low %v17_v2, %v25_v5  ;;  %v33_v12 = vld [vmem:[%s1949_s1 + $0x88] sm:$0xff]  ;;  %v26_v0 = vld [vmem:[%s1949_s1 + $0x50] sm:$0xff] }
   0x4   :  { %v40_v8 = vld [vmem:[%s1949_s1 + $0xc0] sm:$0xff]  ;;  %v41_v13 = vld [vmem:[%s1949_s1 + $0xc8] sm:$0xff]  ;;  %v19_v1 = vld [vmem:[%s1949_s1 + $0x18] sm:$0xff] }
   0x5   :  { %v1351_v11 = vcombine.high %v32_v7, %v40_v8  ;;  %v48_v14 = vld [vmem:[%s1949_s1 + $0x100] sm:$0xff]  ;;  %868 = vmatprep.subr.bf16.mxu0 %v1335_v4  ;;  %v1353_v15 = vcombine.high %v33_v12, %v41_v13  ;;  %v49_v17 = vld [vmem:[%s1949_s1 + $0x108] sm:$0xff]  ;;  %909 = vmatprep.subr.bf16.mxu1 %v1337_v9  ;;  %v1350_v19 = vcombine.low %v32_v7, %v40_v8  ;;  %v27_v2 = vld [vmem:[%s1949_s1 + $0x58] sm:$0xff] }
   0x6   :  { %v56_v16 = vld [vmem:[%s1949_s1 + $0x140] sm:$0xff]  ;;  %v57_v18 = vld [vmem:[%s1949_s1 + $0x148] sm:$0xff]  ;;  %869 = vmatpush1.bf16.msra.mxu0 %v1334_v6  ;;  %910 = vmatpush1.bf16.msra.mxu1 %v1336_v10  ;;  %v1352_v20 = vcombine.low %v33_v12, %v41_v13  ;;  %v1339_v6 = vcombine.high %v18_v63, %v26_v0  ;;  %v1341_v7 = vcombine.high %v19_v1, %v27_v2  ;;  %v34_v8 = vld [vmem:[%s1949_s1 + $0x90] sm:$0xff] }
   0x7   :  { %870 = vmatprep.subr.bf16.mxu0 %v1351_v11  ;;  %v1367_v21 = vcombine.high %v48_v14, %v56_v16  ;;  %911 = vmatprep.subr.bf16.mxu1 %v1353_v15  ;;  %v1369_v22 = vcombine.high %v49_v17, %v57_v18  ;;  %v64_v23 = vld [vmem:[%s1949_s1 + $0x180] sm:$0xff]  ;;  %v65_v25 = vld [vmem:[%s1949_s1 + $0x188] sm:$0xff]  ;;  %v1366_v27 = vcombine.low %v48_v14, %v56_v16  ;;  %v42_v9 = vld [vmem:[%s1949_s1 + $0xd0] sm:$0xff] }
   0x8   :  { %v72_v24 = vld [vmem:[%s1949_s1 + $0x1c0] sm:$0xff]  ;;  %v73_v26 = vld [vmem:[%s1949_s1 + $0x1c8] sm:$0xff]  ;;  %v1368_v28 = vcombine.low %v49_v17, %v57_v18  ;;  %v35_v10 = vld [vmem:[%s1949_s1 + $0x98] sm:$0xff]  ;;  %v1338_v13 = vcombine.low %v18_v63, %v26_v0  ;;  %v1340_v14 = vcombine.low %v19_v1, %v27_v2  ;;  %v1355_v15 = vcombine.high %v34_v8, %v42_v9 }
   0x9   :  { %v1383_v29 = vcombine.high %v64_v23, %v72_v24  ;;  %v1385_v30 = vcombine.high %v65_v25, %v73_v26  ;;  %v80_v31 = vld [vmem:[%s1949_s1 + $0x200] sm:$0xff]  ;;  %v81_v33 = vld [vmem:[%s1949_s1 + $0x208] sm:$0xff]  ;;  %v1382_v35 = vcombine.low %v64_v23, %v72_v24  ;;  %v1384_v36 = vcombine.low %v65_v25, %v73_v26  ;;  %v43_v11 = vld [vmem:[%s1949_s1 + $0xd8] sm:$0xff] }
   0xa   :  { %871 = vmatpush1.bf16.msra.mxu0 %v1350_v19  ;;  %912 = vmatpush1.bf16.msra.mxu1 %v1352_v20  ;;  %v88_v32 = vld [vmem:[%s1949_s1 + $0x240] sm:$0xff]  ;;  %v89_v34 = vld [vmem:[%s1949_s1 + $0x248] sm:$0xff]  ;;  %v1357_v16 = vcombine.high %v35_v10, %v43_v11  ;;  %v50_v17 = vld [vmem:[%s1949_s1 + $0x110] sm:$0xff] }
   0xb   :  { %872 = vmatprep.subr.bf16.mxu0 %v1367_v21  ;;  %913 = vmatprep.subr.bf16.mxu1 %v1369_v22  ;;  %v1399_v37 = vcombine.high %v80_v31, %v88_v32  ;;  %v1401_v38 = vcombine.high %v81_v33, %v89_v34  ;;  %v96_v39 = vld [vmem:[%s1949_s1 + $0x280] sm:$0xff]  ;;  %v97_v41 = vld [vmem:[%s1949_s1 + $0x288] sm:$0xff]  ;;  %v1398_v43 = vcombine.low %v80_v31, %v88_v32  ;;  %v58_v18 = vld [vmem:[%s1949_s1 + $0x150] sm:$0xff] }
   0xc   :  { %v104_v40 = vld [vmem:[%s1949_s1 + $0x2c0] sm:$0xff]  ;;  %v105_v42 = vld [vmem:[%s1949_s1 + $0x2c8] sm:$0xff]  ;;  %v1400_v44 = vcombine.low %v81_v33, %v89_v34  ;;  %v51_v19 = vld [vmem:[%s1949_s1 + $0x118] sm:$0xff]  ;;  %v1354_v21 = vcombine.low %v34_v8, %v42_v9  ;;  %v1356_v22 = vcombine.low %v35_v10, %v43_v11  ;;  %v1371_v23 = vcombine.high %v50_v17, %v58_v18 }
   0xd   :  { %v1415_v45 = vcombine.high %v96_v39, %v104_v40  ;;  %v1417_v46 = vcombine.high %v97_v41, %v105_v42  ;;  %v112_v47 = vld [vmem:[%s1949_s1 + $0x300] sm:$0xff]  ;;  %v113_v49 = vld [vmem:[%s1949_s1 + $0x308] sm:$0xff]  ;;  %v1414_v51 = vcombine.low %v96_v39, %v104_v40  ;;  %v1416_v52 = vcombine.low %v97_v41, %v105_v42  ;;  %v59_v20 = vld [vmem:[%s1949_s1 + $0x158] sm:$0xff] }
   0xe   :  { %873 = vmatpush1.bf16.msra.mxu0 %v1366_v27  ;;  %914 = vmatpush1.bf16.msra.mxu1 %v1368_v28  ;;  %v120_v48 = vld [vmem:[%s1949_s1 + $0x340] sm:$0xff]  ;;  %v121_v50 = vld [vmem:[%s1949_s1 + $0x348] sm:$0xff]  ;;  %v1373_v24 = vcombine.high %v51_v19, %v59_v20  ;;  %v66_v25 = vld [vmem:[%s1949_s1 + $0x190] sm:$0xff] }
   0xf   :  { %874 = vmatprep.subr.bf16.mxu0 %v1383_v29  ;;  %915 = vmatprep.subr.bf16.mxu1 %v1385_v30  ;;  %v1431_v53 = vcombine.high %v112_v47, %v120_v48  ;;  %v1433_v54 = vcombine.high %v113_v49, %v121_v50  ;;  %v128_v55 = vld [vmem:[%s1949_s1 + $0x380] sm:$0xff]  ;;  %v129_v57 = vld [vmem:[%s1949_s1 + $0x388] sm:$0xff]  ;;  %v1430_v59 = vcombine.low %v112_v47, %v120_v48  ;;  %v74_v26 = vld [vmem:[%s1949_s1 + $0x1d0] sm:$0xff] }
  0x10   :  { %v136_v56 = vld [vmem:[%s1949_s1 + $0x3c0] sm:$0xff]  ;;  %v137_v58 = vld [vmem:[%s1949_s1 + $0x3c8] sm:$0xff]  ;;  %v1432_v60 = vcombine.low %v113_v49, %v121_v50  ;;  %v67_v27 = vld [vmem:[%s1949_s1 + $0x198] sm:$0xff]  ;;  %v1370_v29 = vcombine.low %v50_v17, %v58_v18  ;;  %v1372_v30 = vcombine.low %v51_v19, %v59_v20  ;;  %v1387_v31 = vcombine.high %v66_v25, %v74_v26 }
  0x11   :  { %v1447_v61 = vcombine.high %v128_v55, %v136_v56  ;;  %v1449_v62 = vcombine.high %v129_v57, %v137_v58  ;;  %v1446_v4 = vcombine.low %v128_v55, %v136_v56  ;;  %v1448_v5 = vcombine.low %v129_v57, %v137_v58  ;;  %v1619_v12 = vld [vmem:[%s1950_s0] sm:$0x1]  ;;  %v75_v28 = vld [vmem:[%s1949_s1 + $0x1d8] sm:$0xff]  ;;  %v82_v33 = vld [vmem:[%s1949_s1 + $0x210] sm:$0xff] }
  0x12   :  { %875 = vmatpush1.bf16.msra.mxu0 %v1382_v35  ;;  %916 = vmatpush1.bf16.msra.mxu1 %v1384_v36  ;;  %v1389_v32 = vcombine.high %v67_v27, %v75_v28  ;;  %v90_v34 = vld [vmem:[%s1949_s1 + $0x250] sm:$0xff]  ;;  %v83_v35 = vld [vmem:[%s1949_s1 + $0x218] sm:$0xff]  ;;  %v20_v1 = vld [vmem:[%s1949_s1 + $0x20] sm:$0xff] }
  0x13   :  { %876 = vmatprep.subr.bf16.mxu0 %v1399_v37  ;;  %917 = vmatprep.subr.bf16.mxu1 %v1401_v38  ;;  %v91_v36 = vld [vmem:[%s1949_s1 + $0x258] sm:$0xff]  ;;  %v1386_v37 = vcombine.low %v66_v25, %v74_v26  ;;  %v1388_v38 = vcombine.low %v67_v27, %v75_v28  ;;  %v1403_v39 = vcombine.high %v82_v33, %v90_v34  ;;  %v98_v41 = vld [vmem:[%s1949_s1 + $0x290] sm:$0xff]  ;;  %v28_v2 = vld [vmem:[%s1949_s1 + $0x60] sm:$0xff] }
  0x14   :  { %v1405_v40 = vcombine.high %v83_v35, %v91_v36  ;;  %v106_v42 = vld [vmem:[%s1949_s1 + $0x2d0] sm:$0xff]  ;;  %v1343_v8 = vcombine.high %v20_v1, %v28_v2  ;;  %v36_v10 = vld [vmem:[%s1949_s1 + $0xa0] sm:$0xff] }
  0x15   :  { %v1419_v47 = vcombine.high %v98_v41, %v106_v42  ;;  %v114_v49 = vld [vmem:[%s1949_s1 + $0x310] sm:$0xff]  ;;  %v44_v11 = vld [vmem:[%s1949_s1 + $0xe0] sm:$0xff] }
  0x16   :  { %877 = vmatpush1.bf16.msra.mxu0 %v1398_v43  ;;  %918 = vmatpush1.bf16.msra.mxu1 %v1400_v44  ;;  %v99_v43 = vld [vmem:[%s1949_s1 + $0x298] sm:$0xff]  ;;  %v122_v50 = vld [vmem:[%s1949_s1 + $0x350] sm:$0xff]  ;;  %v1359_v17 = vcombine.high %v36_v10, %v44_v11  ;;  %v52_v19 = vld [vmem:[%s1949_s1 + $0x120] sm:$0xff] }
  0x17   :  { %878 = vmatprep.subr.bf16.mxu0 %v1415_v45  ;;  %919 = vmatprep.subr.bf16.mxu1 %v1417_v46  ;;  %v107_v44 = vld [vmem:[%s1949_s1 + $0x2d8] sm:$0xff]  ;;  %v1402_v45 = vcombine.low %v82_v33, %v90_v34  ;;  %v1404_v46 = vcombine.low %v83_v35, %v91_v36  ;;  %v1435_v55 = vcombine.high %v114_v49, %v122_v50  ;;  %v130_v57 = vld [vmem:[%s1949_s1 + $0x390] sm:$0xff]  ;;  %v60_v20 = vld [vmem:[%s1949_s1 + $0x160] sm:$0xff] }
  0x18   :  { %v1421_v48 = vcombine.high %v99_v43, %v107_v44  ;;  %v138_v58 = vld [vmem:[%s1949_s1 + $0x3d0] sm:$0xff]  ;;  %v1375_v25 = vcombine.high %v52_v19, %v60_v20  ;;  %v68_v27 = vld [vmem:[%s1949_s1 + $0x1a0] sm:$0xff] }
  0x19   :  { %v1451_v63 = vcombine.high %v130_v57, %v138_v58  ;;  %v76_v28 = vld [vmem:[%s1949_s1 + $0x1e0] sm:$0xff] }
  0x1a   :  { %879 = vmatpush1.bf16.msra.mxu0 %v1414_v51  ;;  %920 = vmatpush1.bf16.msra.mxu1 %v1416_v52  ;;  %v115_v51 = vld [vmem:[%s1949_s1 + $0x318] sm:$0xff]  ;;  %v1391_v33 = vcombine.high %v68_v27, %v76_v28  ;;  %v84_v35 = vld [vmem:[%s1949_s1 + $0x220] sm:$0xff] }
  0x1b   :  { %880 = vmatprep.subr.bf16.mxu0 %v1431_v53  ;;  %921 = vmatprep.subr.bf16.mxu1 %v1433_v54  ;;  %v123_v52 = vld [vmem:[%s1949_s1 + $0x358] sm:$0xff]  ;;  %v1418_v53 = vcombine.low %v98_v41, %v106_v42  ;;  %v1420_v54 = vcombine.low %v99_v43, %v107_v44  ;;  %v92_v36 = vld [vmem:[%s1949_s1 + $0x260] sm:$0xff] }
  0x1c   :  { %v1437_v56 = vcombine.high %v115_v51, %v123_v52  ;;  %v1407_v41 = vcombine.high %v84_v35, %v92_v36  ;;  %v100_v43 = vld [vmem:[%s1949_s1 + $0x2a0] sm:$0xff] }
  0x1d   :  { %v108_v44 = vld [vmem:[%s1949_s1 + $0x2e0] sm:$0xff] }
  0x1e   :  { %881 = vmatpush1.bf16.msra.mxu0 %v1430_v59  ;;  %922 = vmatpush1.bf16.msra.mxu1 %v1432_v60  ;;  %v131_v59 = vld [vmem:[%s1949_s1 + $0x398] sm:$0xff] }
  0x1f   :  { %882 = vmatprep.subr.bf16.mxu0 %v1447_v61  ;;  %923 = vmatprep.subr.bf16.mxu1 %v1449_v62  ;;  %v139_v60 = vld [vmem:[%s1949_s1 + $0x3d8] sm:$0xff]  ;;  %v1434_v61 = vcombine.low %v114_v49, %v122_v50  ;;  %v1436_v62 = vcombine.low %v115_v51, %v123_v52  ;;  %v1423_v49 = vcombine.high %v100_v43, %v108_v44  ;;  %v116_v51 = vld [vmem:[%s1949_s1 + $0x320] sm:$0xff] }
  0x20   :  { %v1453_v0 = vcombine.high %v131_v59, %v139_v60  ;;  %v124_v52 = vld [vmem:[%s1949_s1 + $0x360] sm:$0xff] }
  0x22   :  { %883 = vmatpush1.bf16.msra.mxu0 %v1446_v4  ;;  %924 = vmatpush1.bf16.msra.mxu1 %v1448_v5  ;;  %v21_v4 = vld [vmem:[%s1949_s1 + $0x28] sm:$0xff] }
  0x23   :  { %950 = vmatprep.subr.bf16.mxu0 %v1339_v6  ;;  %991 = vmatprep.subr.bf16.mxu1 %v1341_v7  ;;  %v29_v5 = vld [vmem:[%s1949_s1 + $0x68] sm:$0xff]  ;;  %v1450_v6 = vcombine.low %v130_v57, %v138_v58  ;;  %v1452_v7 = vcombine.low %v131_v59, %v139_v60  ;;  %v1439_v57 = vcombine.high %v116_v51, %v124_v52  ;;  %v132_v59 = vld [vmem:[%s1949_s1 + $0x3a0] sm:$0xff] }
  0x24   :  { %v1345_v9 = vcombine.high %v21_v4, %v29_v5  ;;  %v140_v60 = vld [vmem:[%s1949_s1 + $0x3e0] sm:$0xff] }
  0x25   :  { %901 = vmatmul.mubr.bf16.vlgmr.msra.gmra.mrb[0].mxu0 %v1619_v12  ;;  %942 = vmatmul.mubr.bf16.vlgmr.msra.gmra.mrb[0].mxu1 %v1619_v12 }
  0x26   :  { %951 = vmatpush1.bf16.msra.mxu0 %v1338_v13  ;;  %992 = vmatpush1.bf16.msra.mxu1 %v1340_v14  ;;  %v37_v13 = vld [vmem:[%s1949_s1 + $0xa8] sm:$0xff] }
  0x27   :  { %952 = vmatprep.subr.bf16.mxu0 %v1355_v15  ;;  %993 = vmatprep.subr.bf16.mxu1 %v1357_v16  ;;  %v45_v14 = vld [vmem:[%s1949_s1 + $0xe8] sm:$0xff]  ;;  %v1342_v15 = vcombine.low %v20_v1, %v28_v2  ;;  %v1344_v16 = vcombine.low %v21_v4, %v29_v5  ;;  %v1455_v1 = vcombine.high %v132_v59, %v140_v60  ;;  %v22_v4 = vld [vmem:[%s1949_s1 + $0x30] sm:$0xff] }
  0x28   :  { %982 = vmatprep.mubr.bf16.mxu0 %v1472_v3  ;;  %1023 = vmatprep.mubr.bf16.mxu1 %v1472_v3  ;;  %v1361_v18 = vcombine.high %v37_v13, %v45_v14  ;;  %v30_v5 = vld [vmem:[%s1949_s1 + $0x70] sm:$0xff] }
  0x2a   :  { %953 = vmatpush1.bf16.msra.mxu0 %v1354_v21  ;;  %994 = vmatpush1.bf16.msra.mxu1 %v1356_v22  ;;  %v53_v21 = vld [vmem:[%s1949_s1 + $0x128] sm:$0xff] }
  0x2b   :  { %954 = vmatprep.subr.bf16.mxu0 %v1371_v23  ;;  %995 = vmatprep.subr.bf16.mxu1 %v1373_v24  ;;  %v61_v22 = vld [vmem:[%s1949_s1 + $0x168] sm:$0xff]  ;;  %v1358_v23 = vcombine.low %v36_v10, %v44_v11  ;;  %v1360_v24 = vcombine.low %v37_v13, %v45_v14  ;;  %v1347_v10 = vcombine.high %v22_v4, %v30_v5  ;;  %v38_v13 = vld [vmem:[%s1949_s1 + $0xb0] sm:$0xff] }
  0x2c   :  { %v1377_v26 = vcombine.high %v53_v21, %v61_v22  ;;  %v46_v14 = vld [vmem:[%s1949_s1 + $0xf0] sm:$0xff] }
  0x2e   :  { %955 = vmatpush1.bf16.msra.mxu0 %v1370_v29  ;;  %996 = vmatpush1.bf16.msra.mxu1 %v1372_v30  ;;  %v69_v29 = vld [vmem:[%s1949_s1 + $0x1a8] sm:$0xff] }
  0x2f   :  { %956 = vmatprep.subr.bf16.mxu0 %v1387_v31  ;;  %997 = vmatprep.subr.bf16.mxu1 %v1389_v32  ;;  %v77_v30 = vld [vmem:[%s1949_s1 + $0x1e8] sm:$0xff]  ;;  %v1374_v31 = vcombine.low %v52_v19, %v60_v20  ;;  %v1376_v32 = vcombine.low %v53_v21, %v61_v22  ;;  %v1363_v19 = vcombine.high %v38_v13, %v46_v14  ;;  %v54_v21 = vld [vmem:[%s1949_s1 + $0x130] sm:$0xff] }
  0x30   :  { %v1393_v34 = vcombine.high %v69_v29, %v77_v30  ;;  %v62_v22 = vld [vmem:[%s1949_s1 + $0x170] sm:$0xff] }
  0x32   :  { %957 = vmatpush1.bf16.msra.mxu0 %v1386_v37  ;;  %998 = vmatpush1.bf16.msra.mxu1 %v1388_v38  ;;  %v85_v37 = vld [vmem:[%s1949_s1 + $0x228] sm:$0xff] }
  0x33   :  { %958 = vmatprep.subr.bf16.mxu0 %v1403_v39  ;;  %999 = vmatprep.subr.bf16.mxu1 %v1405_v40  ;;  %v93_v38 = vld [vmem:[%s1949_s1 + $0x268] sm:$0xff]  ;;  %v1390_v39 = vcombine.low %v68_v27, %v76_v28  ;;  %v1392_v40 = vcombine.low %v69_v29, %v77_v30  ;;  %v1379_v27 = vcombine.high %v54_v21, %v62_v22  ;;  %v70_v29 = vld [vmem:[%s1949_s1 + $0x1b0] sm:$0xff] }
  0x34   :  { %v1409_v42 = vcombine.high %v85_v37, %v93_v38  ;;  %v78_v30 = vld [vmem:[%s1949_s1 + $0x1f0] sm:$0xff] }
  0x36   :  { %959 = vmatpush1.bf16.msra.mxu0 %v1402_v45  ;;  %1000 = vmatpush1.bf16.msra.mxu1 %v1404_v46  ;;  %v101_v45 = vld [vmem:[%s1949_s1 + $0x2a8] sm:$0xff] }
  0x37   :  { %960 = vmatprep.subr.bf16.mxu0 %v1419_v47  ;;  %1001 = vmatprep.subr.bf16.mxu1 %v1421_v48  ;;  %v109_v46 = vld [vmem:[%s1949_s1 + $0x2e8] sm:$0xff]  ;;  %v1406_v47 = vcombine.low %v84_v35, %v92_v36  ;;  %v1408_v48 = vcombine.low %v85_v37, %v93_v38  ;;  %v1395_v35 = vcombine.high %v70_v29, %v78_v30  ;;  %v86_v37 = vld [vmem:[%s1949_s1 + $0x230] sm:$0xff] }
  0x38   :  { %v1425_v50 = vcombine.high %v101_v45, %v109_v46  ;;  %v94_v38 = vld [vmem:[%s1949_s1 + $0x270] sm:$0xff] }
  0x3a   :  { %961 = vmatpush1.bf16.msra.mxu0 %v1418_v53  ;;  %1002 = vmatpush1.bf16.msra.mxu1 %v1420_v54  ;;  %v117_v53 = vld [vmem:[%s1949_s1 + $0x328] sm:$0xff] }
  0x3b   :  { %962 = vmatprep.subr.bf16.mxu0 %v1435_v55  ;;  %1003 = vmatprep.subr.bf16.mxu1 %v1437_v56  ;;  %v125_v54 = vld [vmem:[%s1949_s1 + $0x368] sm:$0xff]  ;;  %v1422_v55 = vcombine.low %v100_v43, %v108_v44  ;;  %v1424_v56 = vcombine.low %v101_v45, %v109_v46  ;;  %v102_v44 = vld [vmem:[%s1949_s1 + $0x2b0] sm:$0xff]  ;;  %v103_v46 = vld [vmem:[%s1949_s1 + $0x2b8] sm:$0xff] }
  0x3c   :  { %v1441_v58 = vcombine.high %v117_v53, %v125_v54  ;;  %v110_v45 = vld [vmem:[%s1949_s1 + $0x2f0] sm:$0xff] }
  0x3e   :  { %963 = vmatpush1.bf16.msra.mxu0 %v1434_v61  ;;  %1004 = vmatpush1.bf16.msra.mxu1 %v1436_v62  ;;  %v133_v61 = vld [vmem:[%s1949_s1 + $0x3a8] sm:$0xff] }
  0x3f   :  { %964 = vmatprep.subr.bf16.mxu0 %v1451_v63  ;;  %1005 = vmatprep.subr.bf16.mxu1 %v1453_v0  ;;  %v141_v62 = vld [vmem:[%s1949_s1 + $0x3e8] sm:$0xff]  ;;  %v1438_v63 = vcombine.low %v116_v51, %v124_v52  ;;  %v1440_v0 = vcombine.low %v117_v53, %v125_v54  ;;  %v118_v52 = vld [vmem:[%s1949_s1 + $0x330] sm:$0xff]  ;;  %v119_v54 = vld [vmem:[%s1949_s1 + $0x338] sm:$0xff] }
  0x40   :  { %v1457_v2 = vcombine.high %v133_v61, %v141_v62  ;;  %v126_v53 = vld [vmem:[%s1949_s1 + $0x370] sm:$0xff] }
  0x42   :  { %965 = vmatpush1.bf16.msra.mxu0 %v1450_v6  ;;  %1006 = vmatpush1.bf16.msra.mxu1 %v1452_v7  ;;  %v23_v6 = vld [vmem:[%s1949_s1 + $0x38] sm:$0xff] }
  0x43   :  { %1032 = vmatprep.subr.bf16.mxu0 %v1343_v8  ;;  %1073 = vmatprep.subr.bf16.mxu1 %v1345_v9  ;;  %v31_v7 = vld [vmem:[%s1949_s1 + $0x78] sm:$0xff]  ;;  %v1454_v8 = vcombine.low %v132_v59, %v140_v60  ;;  %v1456_v9 = vcombine.low %v133_v61, %v141_v62  ;;  %v134_v60 = vld [vmem:[%s1949_s1 + $0x3b0] sm:$0xff] }
  0x44   :  { %v1349_v11 = vcombine.high %v23_v6, %v31_v7  ;;  %v142_v61 = vld [vmem:[%s1949_s1 + $0x3f0] sm:$0xff]  ;;  %v135_v62 = vld [vmem:[%s1949_s1 + $0x3b8] sm:$0xff] }
  0x45   :  { %983 = vmatmul.mubr.bf16.vlgmr.msra.gmra.mrb[4].mxu0 %v1619_v12  ;;  %1024 = vmatmul.mubr.bf16.vlgmr.msra.gmra.mrb[4].mxu1 %v1619_v12 }
  0x46   :  { %1033 = vmatpush1.bf16.msra.mxu0 %v1342_v15  ;;  %1074 = vmatpush1.bf16.msra.mxu1 %v1344_v16  ;;  %v39_v15 = vld [vmem:[%s1949_s1 + $0xb8] sm:$0xff] }
  0x47   :  { %1034 = vmatprep.subr.bf16.mxu0 %v1359_v17  ;;  %1075 = vmatprep.subr.bf16.mxu1 %v1361_v18  ;;  %v47_v16 = vld [vmem:[%s1949_s1 + $0xf8] sm:$0xff]  ;;  %v1346_v17 = vcombine.low %v22_v4, %v30_v5  ;;  %v1348_v18 = vcombine.low %v23_v6, %v31_v7  ;;  %v1458_v5 = vcombine.low %v134_v60, %v142_v61  ;;  %v148_v7 = vlaneseq }
  0x48   :  { %1064 = vmatprep.mubr.bf16.mxu0 %v1472_v3  ;;  %1105 = vmatprep.mubr.bf16.mxu1 %v1472_v3  ;;  %v1365_v20 = vcombine.high %v39_v15, %v47_v16 }
  0x4a   :  { %1035 = vmatpush1.bf16.msra.mxu0 %v1358_v23  ;;  %1076 = vmatpush1.bf16.msra.mxu1 %v1360_v24  ;;  %v55_v23 = vld [vmem:[%s1949_s1 + $0x138] sm:$0xff] }
  0x4b   :  { %1036 = vmatprep.subr.bf16.mxu0 %v1375_v25  ;;  %1077 = vmatprep.subr.bf16.mxu1 %v1377_v26  ;;  %v63_v24 = vld [vmem:[%s1949_s1 + $0x178] sm:$0xff]  ;;  %v1362_v25 = vcombine.low %v38_v13, %v46_v14  ;;  %v1364_v26 = vcombine.low %v39_v15, %v47_v16 }
  0x4c   :  { %v1381_v28 = vcombine.high %v55_v23, %v63_v24 }
  0x4e   :  { %1037 = vmatpush1.bf16.msra.mxu0 %v1374_v31  ;;  %1078 = vmatpush1.bf16.msra.mxu1 %v1376_v32  ;;  %v71_v31 = vld [vmem:[%s1949_s1 + $0x1b8] sm:$0xff] }
  0x4f   :  { %1038 = vmatprep.subr.bf16.mxu0 %v1391_v33  ;;  %1079 = vmatprep.subr.bf16.mxu1 %v1393_v34  ;;  %v79_v32 = vld [vmem:[%s1949_s1 + $0x1f8] sm:$0xff]  ;;  %v1378_v33 = vcombine.low %v54_v21, %v62_v22  ;;  %v1380_v34 = vcombine.low %v55_v23, %v63_v24 }
  0x50   :  { %v1397_v36 = vcombine.high %v71_v31, %v79_v32 }
  0x52   :  { %1039 = vmatpush1.bf16.msra.mxu0 %v1390_v39  ;;  %1080 = vmatpush1.bf16.msra.mxu1 %v1392_v40  ;;  %v95_v39 = vld [vmem:[%s1949_s1 + $0x278] sm:$0xff]  ;;  %v1394_v40 = vcombine.low %v70_v29, %v78_v30 }
  0x53   :  { %1040 = vmatprep.subr.bf16.mxu0 %v1407_v41  ;;  %1081 = vmatprep.subr.bf16.mxu1 %v1409_v42  ;;  %v1396_v41 = vcombine.low %v71_v31, %v79_v32  ;;  %v1411_v42 = vcombine.high %v86_v37, %v94_v38 }
  0x56   :  { %1041 = vmatpush1.bf16.msra.mxu0 %v1406_v47  ;;  %1082 = vmatpush1.bf16.msra.mxu1 %v1408_v48  ;;  %v111_v47 = vld [vmem:[%s1949_s1 + $0x2f8] sm:$0xff]  ;;  %v1410_v48 = vcombine.low %v86_v37, %v94_v38 }
  0x57   :  { %1042 = vmatprep.subr.bf16.mxu0 %v1423_v49  ;;  %1083 = vmatprep.subr.bf16.mxu1 %v1425_v50  ;;  %v1427_v50 = vcombine.high %v102_v44, %v110_v45  ;;  %v1429_v51 = vcombine.high %v103_v46, %v111_v47 }
  0x5a   :  { %1043 = vmatpush1.bf16.msra.mxu0 %v1422_v55  ;;  %1084 = vmatpush1.bf16.msra.mxu1 %v1424_v56  ;;  %v127_v55 = vld [vmem:[%s1949_s1 + $0x378] sm:$0xff]  ;;  %v1426_v56 = vcombine.low %v102_v44, %v110_v45 }
  0x5b   :  { %1044 = vmatprep.subr.bf16.mxu0 %v1439_v57  ;;  %1085 = vmatprep.subr.bf16.mxu1 %v1441_v58  ;;  %v1428_v57 = vcombine.low %v103_v46, %v111_v47  ;;  %v1443_v58 = vcombine.high %v118_v52, %v126_v53  ;;  %v1445_v59 = vcombine.high %v119_v54, %v127_v55 }
  0x5e   :  { %1045 = vmatpush1.bf16.msra.mxu0 %v1438_v63  ;;  %1086 = vmatpush1.bf16.msra.mxu1 %v1440_v0  ;;  %v143_v63 = vld [vmem:[%s1949_s1 + $0x3f8] sm:$0xff]  ;;  %v1442_v0 = vcombine.low %v118_v52, %v126_v53 }
  0x5f   :  { %1046 = vmatprep.subr.bf16.mxu0 %v1455_v1  ;;  %1087 = vmatprep.subr.bf16.mxu1 %v1457_v2  ;;  %v1444_v1 = vcombine.low %v119_v54, %v127_v55  ;;  %v1459_v2 = vcombine.high %v134_v60, %v142_v61  ;;  %v1461_v4 = vcombine.high %v135_v62, %v143_v63 }
  0x60   :  { %v1460_v6 = vcombine.low %v135_v62, %v143_v63 }
  0x62   :  { %1047 = vmatpush1.bf16.msra.mxu0 %v1454_v8  ;;  %1088 = vmatpush1.bf16.msra.mxu1 %v1456_v9  ;;  %v149_v8 = vshrl.u32 %v148_v7, 7 }
  0x63   :  { %1114 = vmatprep.subr.bf16.mxu0 %v1347_v10  ;;  %1155 = vmatprep.subr.bf16.mxu1 %v1349_v11  ;;  %v145_v10 = vld [vmem:[%s1951_s2 + $0x8] sm:$0xff] }
  0x64   :  { %v150_v9 = vsub.s32 0, %v149_v8  ;;  %v158_v13 = vsub.s32 2, %v149_v8  ;;  %v154_v14 = vsub.s32 1, %v149_v8  ;;  %v162_v15 = vsub.s32 3, %v149_v8 }
  0x65   :  { %1065 = vmatmul.mubr.bf16.vlgmr.msra.gmra.mrb[8].mxu0 %v1619_v12  ;;  %1106 = vmatmul.mubr.bf16.vlgmr.msra.gmra.mrb[8].mxu1 %v1619_v12  ;;  %v170_v21 = vsub.s32 5, %v149_v8  ;;  %v178_v22 = vsub.s32 7, %v149_v8 }
  0x66   :  { %1115 = vmatpush1.bf16.msra.mxu0 %v1346_v17  ;;  %1156 = vmatpush1.bf16.msra.mxu1 %v1348_v18  ;;  %v1902_v11 = vrot.slane %v145_v10, %v150_v9  ;;  %v1904_v16 = vrot.slane %v145_v10, %v158_v13  ;;  %v1906_v17 = vrot.slane %v145_v10, %v154_v14 }
  0x67   :  { %1116 = vmatprep.subr.bf16.mxu0 %v1363_v19  ;;  %1157 = vmatprep.subr.bf16.mxu1 %v1365_v20  ;;  %v1908_v18 = vrot.slane %v145_v10, %v162_v15  ;;  %v166_v19 = vsub.s32 4, %v149_v8  ;;  %v174_v20 = vsub.s32 6, %v149_v8  ;;  %v1914_v24 = vrot.slane %v145_v10, %v170_v21 }
  0x68   :  { %1146 = vmatprep.mubr.bf16.mxu0 %v1472_v3  ;;  %1187 = vmatprep.mubr.bf16.mxu1 %v1472_v3  ;;  %v87_v3 = vld [vmem:[%s1949_s1 + $0x238] sm:$0xff] }
  0x69   :  { %v1413_v43 = vcombine.high %v87_v3, %v95_v39  ;;  %v1412_v49 = vcombine.low %v87_v3, %v95_v39  ;;  %v1912_v23 = vrot.slane %v145_v10, %v174_v20 }
  0x6a   :  { %1117 = vmatpush1.bf16.msra.mxu0 %v1362_v25  ;;  %1158 = vmatpush1.bf16.msra.mxu1 %v1364_v26  ;;  %v1916_v25 = vrot.slane %v145_v10, %v178_v22  ;;  %v144_v26 = vld [vmem:[%s1951_s2] sm:$0xff] }
  0x6b   :  { %1118 = vmatprep.subr.bf16.mxu0 %v1379_v27  ;;  %1159 = vmatprep.subr.bf16.mxu1 %v1381_v28  ;;  %v1473_v27 = vmov 1966171168   ;;  %v151_v29 = vrot.slane %v144_v26, %v150_v9  ;;  %v159_v30 = vrot.slane %v144_v26, %v158_v13  ;;  %v155_v31 = vrot.slane %v144_v26, %v154_v14 }
  0x6c   :  { %v1233_v28 = vunpack.c.l.s4 %v1473_v27  ;;  %v175_v52 = vrot.slane %v144_v26, %v174_v20  ;;  %v171_v53 = vrot.slane %v144_v26, %v170_v21  ;;  %v179_v54 = vrot.slane %v144_v26, %v178_v22 }
  0x6e   :  { %1119 = vmatpush1.bf16.msra.mxu0 %v1378_v33  ;;  %1160 = vmatpush1.bf16.msra.mxu1 %v1380_v34  ;;  %v1234_v32 = vunpack.c.0.s8 %v1233_v28  ;;  %v163_v33 = vrot.slane %v144_v26, %v162_v15 }
  0x6f   :  { %1120 = vmatprep.subr.bf16.mxu0 %v1395_v35  ;;  %1161 = vmatprep.subr.bf16.mxu1 %v1397_v36 }
  0x70   :  { %v1921_v39 = vsub.s32 %v1234_v32, %v149_v8 }
  0x72   :  { %1121 = vmatpush1.bf16.msra.mxu0 %v1394_v40  ;;  %1162 = vmatpush1.bf16.msra.mxu1 %v1396_v41 }
  0x73   :  { %1122 = vmatprep.subr.bf16.mxu0 %v1411_v42  ;;  %1163 = vmatprep.subr.bf16.mxu1 %v1413_v43 }
  0x76   :  { %1123 = vmatpush1.bf16.msra.mxu0 %v1410_v48  ;;  %1164 = vmatpush1.bf16.msra.mxu1 %v1412_v49 }
  0x77   :  { %1124 = vmatprep.subr.bf16.mxu0 %v1427_v50  ;;  %1165 = vmatprep.subr.bf16.mxu1 %v1429_v51  ;;  %v167_v51 = vrot.slane %v144_v26, %v166_v19 }
  0x7a   :  { %1125 = vmatpush1.bf16.msra.mxu0 %v1426_v56  ;;  %1166 = vmatpush1.bf16.msra.mxu1 %v1428_v57 }
  0x7b   :  { %1126 = vmatprep.subr.bf16.mxu0 %v1443_v58  ;;  %1167 = vmatprep.subr.bf16.mxu1 %v1445_v59 }
  0x7e   :  { %1127 = vmatpush1.bf16.msra.mxu0 %v1442_v0  ;;  %1168 = vmatpush1.bf16.msra.mxu1 %v1444_v1 }
  0x7f   :  { %1128 = vmatprep.subr.bf16.mxu0 %v1459_v2  ;;  %1169 = vmatprep.subr.bf16.mxu1 %v1461_v4 }
  0x82   :  { %1129 = vmatpush1.bf16.msra.mxu0 %v1458_v5  ;;  %1170 = vmatpush1.bf16.msra.mxu1 %v1460_v6 }
  0x85   :  { %1147 = vmatmul.mubr.bf16.vlgmr.msra.gmra.mrb[12].mxu0 %v1619_v12  ;;  %1188 = vmatmul.mubr.bf16.vlgmr.msra.gmra.mrb[12].mxu1 %v1619_v12  ;;  %v1910_v12 = vrot.slane %v145_v10, %v166_v19 }
  0xf8   :  { %v902_v34 = vpop.f32.mrb[0].mxu0  ;;  %v943_v36 = vpop.f32.mrb[0].mxu1 }
  0xf9   :  { %v903_v35 = vadd.f32 %v902_v34, %v151_v29  ;;  %v904_v37 = vpop.f32.mrb[1].mxu0  ;;  %v944_v38 = vadd.f32 %v943_v36, %v159_v30  ;;  %v945_v40 = vpop.f32.mrb[1].mxu1 }
  0xfa   :  { %v905_v3 = vadd.f32 %v904_v37, %v155_v31  ;;  %v906_v41 = vpop.f32.mrb[2].mxu0  ;;  %v946_v42 = vadd.f32 %v945_v40, %v163_v33  ;;  %v947_v43 = vpop.f32.mrb[2].mxu1 }
  0xfb   :  { %v907_v44 = vpop.f32.mrb[3].mxu0  ;;  %v948_v46 = vpop.f32.mrb[3].mxu1 }
  0xfc   :  { %v1462_v45 = vpack.c.bf16 %v905_v3, %v903_v35  ;;  %v1463_v47 = vpack.c.bf16 %v946_v42, %v944_v38 }
  0xfe   :  { %v1238_v48 = vrot.slane %v1462_v45, %v1921_v39  ;;  %v1245_v49 = vrot.slane %v1463_v47, %v1921_v39 }
 0x100   :  { %v1260_v50 = vcombine.low %v1238_v48, %v1245_v49 }
 0x102   :  { %v1268_v9 = vrot.slane %v1260_v50, %v1921_v39 }
 0x118   :  { %v984_v55 = vpop.f32.mrb[4].mxu0  ;;  %v1025_v57 = vpop.f32.mrb[4].mxu1 }
 0x119   :  { %v985_v56 = vadd.f32 %v984_v55, %v167_v51  ;;  %v986_v58 = vpop.f32.mrb[5].mxu0  ;;  %v1026_v59 = vadd.f32 %v1025_v57, %v175_v52  ;;  %v1027_v61 = vpop.f32.mrb[5].mxu1 }
 0x11a   :  { %v987_v60 = vadd.f32 %v986_v58, %v171_v53  ;;  %v988_v62 = vpop.f32.mrb[6].mxu0  ;;  %v1028_v63 = vadd.f32 %v1027_v61, %v179_v54  ;;  %v1029_v0 = vpop.f32.mrb[6].mxu1 }
 0x11b   :  { %v989_v1 = vpop.f32.mrb[7].mxu0  ;;  %v1030_v4 = vpop.f32.mrb[7].mxu1 }
 0x11c   :  { %v1464_v2 = vpack.c.bf16 %v987_v60, %v985_v56  ;;  %v1465_v5 = vpack.c.bf16 %v1028_v63, %v1026_v59 }
 0x11e   :  { %v1252_v6 = vrot.slane %v1464_v2, %v1921_v39  ;;  %v1259_v7 = vrot.slane %v1465_v5, %v1921_v39 }
 0x120   :  { %v1261_v8 = vcombine.low %v1252_v6, %v1259_v7 }
 0x122   :  { %v1275_v10 = vrot.slane %v1261_v8, %v1921_v39 }
 0x124   :  { %v1276_v13 = vcombine.low %v1268_v9, %v1275_v10 }
 0x126   :  { %1328 = vst [vmem:[%s1952_s3] sm:$0xff] %v1276_v13 }
 0x138   :  { %v1066_v14 = vpop.f32.mrb[8].mxu0  ;;  %v1107_v19 = vpop.f32.mrb[8].mxu1 }
 0x139   :  { %v1067_v15 = vadd.f32 %v1066_v14, %v1902_v11  ;;  %v1068_v20 = vpop.f32.mrb[9].mxu0  ;;  %v1108_v21 = vadd.f32 %v1107_v19, %v1904_v16  ;;  %v1109_v26 = vpop.f32.mrb[9].mxu1 }
 0x13a   :  { %v1069_v22 = vadd.f32 %v1068_v20, %v1906_v17  ;;  %v1070_v27 = vpop.f32.mrb[10].mxu0  ;;  %v1110_v28 = vadd.f32 %v1109_v26, %v1908_v18  ;;  %v1111_v29 = vpop.f32.mrb[10].mxu1 }
 0x13b   :  { %v1071_v30 = vpop.f32.mrb[11].mxu0  ;;  %v1112_v32 = vpop.f32.mrb[11].mxu1 }
 0x13c   :  { %v1466_v31 = vpack.c.bf16 %v1069_v22, %v1067_v15  ;;  %v1467_v33 = vpack.c.bf16 %v1110_v28, %v1108_v21 }
 0x13e   :  { %v1287_v34 = vrot.slane %v1466_v31, %v1921_v39  ;;  %v1294_v35 = vrot.slane %v1467_v33, %v1921_v39 }
 0x140   :  { %v1309_v11 = vcombine.low %v1287_v34, %v1294_v35 }
 0x142   :  { %v1317_v49 = vrot.slane %v1309_v11, %v1921_v39 }
 0x158   :  { %v1148_v36 = vpop.f32.mrb[12].mxu0  ;;  %v1189_v16 = vpop.f32.mrb[12].mxu1 }
 0x159   :  { %v1149_v37 = vadd.f32 %v1148_v36, %v1910_v12  ;;  %v1150_v38 = vpop.f32.mrb[13].mxu0  ;;  %v1190_v17 = vadd.f32 %v1189_v16, %v1912_v23  ;;  %v1191_v18 = vpop.f32.mrb[13].mxu1 }
 0x15a   :  { %v1151_v3 = vadd.f32 %v1150_v38, %v1914_v24  ;;  %v1152_v40 = vpop.f32.mrb[14].mxu0  ;;  %v1192_v41 = vadd.f32 %v1191_v18, %v1916_v25  ;;  %v1193_v42 = vpop.f32.mrb[14].mxu1 }
 0x15b   :  { %v1153_v43 = vpop.f32.mrb[15].mxu0  ;;  %v1194_v45 = vpop.f32.mrb[15].mxu1 }
 0x15c   :  { %v1468_v44 = vpack.c.bf16 %v1151_v3, %v1149_v37  ;;  %v1469_v46 = vpack.c.bf16 %v1192_v41, %v1190_v17 }
 0x15e   :  { %v1301_v47 = vrot.slane %v1468_v44, %v1921_v39  ;;  %v1308_v48 = vrot.slane %v1469_v46, %v1921_v39 }
 0x160   :  { %v1310_v12 = vcombine.low %v1301_v47, %v1308_v48 }
 0x162   :  { %v1324_v23 = vrot.slane %v1310_v12, %v1921_v39 }
 0x164   :  { %v1325_v50 = vcombine.low %v1317_v49, %v1324_v23 }
 0x166   :  { %1329 = vst [vmem:[%s1952_s3 + $0x8] sm:$0xff] %v1325_v50 }

// kernel: autoencoder_forward.13
= control target key start
LH: loop header
LB: loop body
LE: loop exit
PB: predicated region body
PF: predicated region fallthrough
CT: control target
= control target key end

     0   :  { %s1059_s1 = inlined_call_operand.vmem [shape: bf16[512,256], index: 1, kind: input, shape index: {}]   ;;  %s1060_s0 = inlined_call_operand.vmem [shape: bf16[32,512], index: 0, kind: input, shape index: {}]   ;;  %s1061_s2 = inlined_call_operand.vmem [shape: f32[1,256], index: 2, kind: input, shape index: {}]   ;;  %s1062_s3 = inlined_call_operand.vmem [shape: bf16[32,256], index: 3, kind: output, shape index: {}]  }
   0x1   :  { %v700_v0 = vld [vmem:[%s1059_s1 + $0x4] ss:$8 sps:$4 sm:$0xff]   ;;  %v704_v2 = vld [vmem:[%s1059_s1] ss:$8 sps:$4 sm:$0xff]   ;;  %v706_v4 = vld [vmem:[%s1059_s1 + $0x14] ss:$8 sps:$4 sm:$0xff]  }
   0x2   :  { %v702_v1 = vld [vmem:[%s1059_s1 + $0x104] ss:$8 sps:$4 sm:$0xff]   ;;  %458 = vmatprep.subr.bf16.mxu1 %v700_v0  ;;  %v705_v3 = vld [vmem:[%s1059_s1 + $0x100] ss:$8 sps:$4 sm:$0xff]   ;;  %v708_v5 = vld [vmem:[%s1059_s1 + $0x114] ss:$8 sps:$4 sm:$0xff]  }
   0x3   :  { %511 = vmatprep.subr.bf16.mxu0 %v702_v1  ;;  %459 = vmatpush1.bf16.msra.mxu1 %v704_v2  ;;  %v710_v6 = vld [vmem:[%s1059_s1 + $0x10] ss:$8 sps:$4 sm:$0xff]   ;;  %v712_v8 = vld [vmem:[%s1059_s1 + $0x24] ss:$8 sps:$4 sm:$0xff]   ;;  %v716_v10 = vld [vmem:[%s1059_s1 + $0x20] ss:$8 sps:$4 sm:$0xff]  }
   0x4   :  { %512 = vmatpush1.bf16.msra.mxu0 %v705_v3  ;;  %460 = vmatprep.subr.bf16.mxu1 %v706_v4  ;;  %v711_v7 = vld [vmem:[%s1059_s1 + $0x110] ss:$8 sps:$4 sm:$0xff]   ;;  %v714_v9 = vld [vmem:[%s1059_s1 + $0x124] ss:$8 sps:$4 sm:$0xff]   ;;  %v717_v11 = vld [vmem:[%s1059_s1 + $0x120] ss:$8 sps:$4 sm:$0xff]  }
   0x5   :  { %513 = vmatprep.subr.bf16.mxu0 %v708_v5  ;;  %v718_v12 = vld [vmem:[%s1059_s1 + $0x34] ss:$8 sps:$4 sm:$0xff]   ;;  %v722_v14 = vld [vmem:[%s1059_s1 + $0x30] ss:$8 sps:$4 sm:$0xff]   ;;  %v724_v16 = vld [vmem:[%s1059_s1 + $0x44] ss:$8 sps:$4 sm:$0xff]  }
   0x6   :  { %v720_v13 = vld [vmem:[%s1059_s1 + $0x134] ss:$8 sps:$4 sm:$0xff]   ;;  %v723_v15 = vld [vmem:[%s1059_s1 + $0x130] ss:$8 sps:$4 sm:$0xff]   ;;  %v726_v17 = vld [vmem:[%s1059_s1 + $0x144] ss:$8 sps:$4 sm:$0xff]  }
   0x7   :  { %461 = vmatpush1.bf16.msra.mxu1 %v710_v6  ;;  %v728_v18 = vld [vmem:[%s1059_s1 + $0x40] ss:$8 sps:$4 sm:$0xff]   ;;  %v730_v20 = vld [vmem:[%s1059_s1 + $0x54] ss:$8 sps:$4 sm:$0xff]   ;;  %v734_v22 = vld [vmem:[%s1059_s1 + $0x50] ss:$8 sps:$4 sm:$0xff]  }
   0x8   :  { %514 = vmatpush1.bf16.msra.mxu0 %v711_v7  ;;  %462 = vmatprep.subr.bf16.mxu1 %v712_v8  ;;  %v729_v19 = vld [vmem:[%s1059_s1 + $0x140] ss:$8 sps:$4 sm:$0xff]   ;;  %v732_v21 = vld [vmem:[%s1059_s1 + $0x154] ss:$8 sps:$4 sm:$0xff]   ;;  %v735_v23 = vld [vmem:[%s1059_s1 + $0x150] ss:$8 sps:$4 sm:$0xff]   ;;  %v88_v8 = vlaneseq }
   0x9   :  { %515 = vmatprep.subr.bf16.mxu0 %v714_v9  ;;  %v736_v24 = vld [vmem:[%s1059_s1 + $0x64] ss:$8 sps:$4 sm:$0xff]   ;;  %v740_v26 = vld [vmem:[%s1059_s1 + $0x60] ss:$8 sps:$4 sm:$0xff]   ;;  %v742_v28 = vld [vmem:[%s1059_s1 + $0x74] ss:$8 sps:$4 sm:$0xff]  }
   0xa   :  { %v738_v25 = vld [vmem:[%s1059_s1 + $0x164] ss:$8 sps:$4 sm:$0xff]   ;;  %v741_v27 = vld [vmem:[%s1059_s1 + $0x160] ss:$8 sps:$4 sm:$0xff]   ;;  %v744_v29 = vld [vmem:[%s1059_s1 + $0x174] ss:$8 sps:$4 sm:$0xff]  }
   0xb   :  { %463 = vmatpush1.bf16.msra.mxu1 %v716_v10  ;;  %v746_v30 = vld [vmem:[%s1059_s1 + $0x70] ss:$8 sps:$4 sm:$0xff]   ;;  %v748_v32 = vld [vmem:[%s1059_s1 + $0x84] ss:$8 sps:$4 sm:$0xff]   ;;  %v752_v34 = vld [vmem:[%s1059_s1 + $0x80] ss:$8 sps:$4 sm:$0xff]  }
   0xc   :  { %516 = vmatpush1.bf16.msra.mxu0 %v717_v11  ;;  %464 = vmatprep.subr.bf16.mxu1 %v718_v12  ;;  %v747_v31 = vld [vmem:[%s1059_s1 + $0x170] ss:$8 sps:$4 sm:$0xff]   ;;  %v750_v33 = vld [vmem:[%s1059_s1 + $0x184] ss:$8 sps:$4 sm:$0xff]   ;;  %v753_v35 = vld [vmem:[%s1059_s1 + $0x180] ss:$8 sps:$4 sm:$0xff]  }
   0xd   :  { %517 = vmatprep.subr.bf16.mxu0 %v720_v13  ;;  %v754_v36 = vld [vmem:[%s1059_s1 + $0x94] ss:$8 sps:$4 sm:$0xff]   ;;  %v758_v38 = vld [vmem:[%s1059_s1 + $0x90] ss:$8 sps:$4 sm:$0xff]   ;;  %v760_v40 = vld [vmem:[%s1059_s1 + $0xa4] ss:$8 sps:$4 sm:$0xff]  }
   0xe   :  { %v756_v37 = vld [vmem:[%s1059_s1 + $0x194] ss:$8 sps:$4 sm:$0xff]   ;;  %v759_v39 = vld [vmem:[%s1059_s1 + $0x190] ss:$8 sps:$4 sm:$0xff]   ;;  %v762_v41 = vld [vmem:[%s1059_s1 + $0x1a4] ss:$8 sps:$4 sm:$0xff]  }
   0xf   :  { %465 = vmatpush1.bf16.msra.mxu1 %v722_v14  ;;  %v764_v42 = vld [vmem:[%s1059_s1 + $0xa0] ss:$8 sps:$4 sm:$0xff]   ;;  %v766_v44 = vld [vmem:[%s1059_s1 + $0xb4] ss:$8 sps:$4 sm:$0xff]   ;;  %v770_v46 = vld [vmem:[%s1059_s1 + $0xb0] ss:$8 sps:$4 sm:$0xff]  }
  0x10   :  { %518 = vmatpush1.bf16.msra.mxu0 %v723_v15  ;;  %466 = vmatprep.subr.bf16.mxu1 %v724_v16  ;;  %v765_v43 = vld [vmem:[%s1059_s1 + $0x1a0] ss:$8 sps:$4 sm:$0xff]   ;;  %v768_v45 = vld [vmem:[%s1059_s1 + $0x1b4] ss:$8 sps:$4 sm:$0xff]   ;;  %v771_v47 = vld [vmem:[%s1059_s1 + $0x1b0] ss:$8 sps:$4 sm:$0xff]  }
  0x11   :  { %519 = vmatprep.subr.bf16.mxu0 %v726_v17  ;;  %v772_v48 = vld [vmem:[%s1059_s1 + $0xc4] ss:$8 sps:$4 sm:$0xff]   ;;  %v776_v52 = vld [vmem:[%s1059_s1 + $0xc0] ss:$8 sps:$4 sm:$0xff]   ;;  %v778_v54 = vld [vmem:[%s1059_s1 + $0xd4] ss:$8 sps:$4 sm:$0xff]  }
  0x12   :  { %v798_v49 = vld [vmem:[%s1060_s0 + $0x4] ss:$16 sps:$4 sm:$0xff]   ;;  %v801_v51 = vld [vmem:[%s1060_s0 + $0xc] ss:$16 sps:$4 sm:$0xff]   ;;  %v777_v53 = vld [vmem:[%s1059_s1 + $0x1c0] ss:$8 sps:$4 sm:$0xff]  }
  0x13   :  { %467 = vmatpush1.bf16.msra.mxu1 %v728_v18  ;;  %v774_v50 = vld [vmem:[%s1059_s1 + $0x1c4] ss:$8 sps:$4 sm:$0xff]   ;;  %490 = vmatprep.mubr.bf16.mxu1 %v798_v49  ;;  %v780_v55 = vld [vmem:[%s1059_s1 + $0x1d4] ss:$8 sps:$4 sm:$0xff]   ;;  %v782_v56 = vld [vmem:[%s1059_s1 + $0xd0] ss:$8 sps:$4 sm:$0xff]  }
  0x14   :  { %520 = vmatpush1.bf16.msra.mxu0 %v729_v19  ;;  %468 = vmatprep.subr.bf16.mxu1 %v730_v20  ;;  %v783_v57 = vld [vmem:[%s1059_s1 + $0x1d0] ss:$8 sps:$4 sm:$0xff]   ;;  %v784_v58 = vld [vmem:[%s1059_s1 + $0xe4] ss:$8 sps:$4 sm:$0xff]   ;;  %v788_v60 = vld [vmem:[%s1059_s1 + $0xe0] ss:$8 sps:$4 sm:$0xff]  }
  0x15   :  { %521 = vmatprep.subr.bf16.mxu0 %v732_v21  ;;  %543 = vmatprep.mubr.bf16.mxu0 %v801_v51  ;;  %v786_v59 = vld [vmem:[%s1059_s1 + $0x1e4] ss:$8 sps:$4 sm:$0xff]   ;;  %v789_v61 = vld [vmem:[%s1059_s1 + $0x1e0] ss:$8 sps:$4 sm:$0xff]   ;;  %v790_v62 = vld [vmem:[%s1059_s1 + $0xf4] ss:$8 sps:$4 sm:$0xff]  }
  0x16   :  { %v792_v63 = vld [vmem:[%s1059_s1 + $0x1f4] ss:$8 sps:$4 sm:$0xff]   ;;  %v794_v0 = vld [vmem:[%s1059_s1 + $0xf0] ss:$8 sps:$4 sm:$0xff]   ;;  %v89_v9 = vshrl.u32 %v88_v8, 7 }
  0x17   :  { %469 = vmatpush1.bf16.msra.mxu1 %v734_v22  ;;  %v795_v1 = vld [vmem:[%s1059_s1 + $0x1f0] ss:$8 sps:$4 sm:$0xff]   ;;  %v802_v4 = vld [vmem:[%s1060_s0 + $0x24] ss:$16 sps:$4 sm:$0xff]   ;;  %v804_v5 = vld [vmem:[%s1060_s0 + $0x2c] ss:$16 sps:$4 sm:$0xff]  }
  0x18   :  { %522 = vmatpush1.bf16.msra.mxu0 %v735_v23  ;;  %470 = vmatprep.subr.bf16.mxu1 %v736_v24  ;;  %v796_v2 = vld [vmem:[%s1060_s0] ss:$16 sps:$4 sm:$0xff]   ;;  %v799_v3 = vld [vmem:[%s1060_s0 + $0x8] ss:$16 sps:$4 sm:$0xff]   ;;  %v90_v10 = vsub.s32 0, %v89_v9  ;;  %v94_v12 = vsub.s32 1, %v89_v9 }
  0x19   :  { %523 = vmatprep.subr.bf16.mxu0 %v738_v25  ;;  %v806_v6 = vld [vmem:[%s1060_s0 + $0x20] ss:$16 sps:$4 sm:$0xff]   ;;  %v807_v7 = vld [vmem:[%s1060_s0 + $0x28] ss:$16 sps:$4 sm:$0xff]  }
  0x1a   :  { %v86_v11 = vld [vmem:[%s1061_s2] sm:$0x3] }
  0x1b   :  { %471 = vmatpush1.bf16.msra.mxu1 %v740_v26  ;;  %v91_v13 = vrot.slane %v86_v11, %v90_v10  ;;  %v95_v14 = vrot.slane %v86_v11, %v94_v12 }
  0x1c   :  { %524 = vmatpush1.bf16.msra.mxu0 %v741_v27  ;;  %472 = vmatprep.subr.bf16.mxu1 %v742_v28 }
  0x1d   :  { %525 = vmatprep.subr.bf16.mxu0 %v744_v29 }
  0x1f   :  { %473 = vmatpush1.bf16.msra.mxu1 %v746_v30 }
  0x20   :  { %526 = vmatpush1.bf16.msra.mxu0 %v747_v31  ;;  %474 = vmatprep.subr.bf16.mxu1 %v748_v32 }
  0x21   :  { %527 = vmatprep.subr.bf16.mxu0 %v750_v33 }
  0x23   :  { %475 = vmatpush1.bf16.msra.mxu1 %v752_v34 }
  0x24   :  { %528 = vmatpush1.bf16.msra.mxu0 %v753_v35  ;;  %476 = vmatprep.subr.bf16.mxu1 %v754_v36 }
  0x25   :  { %529 = vmatprep.subr.bf16.mxu0 %v756_v37 }
  0x27   :  { %477 = vmatpush1.bf16.msra.mxu1 %v758_v38 }
  0x28   :  { %530 = vmatpush1.bf16.msra.mxu0 %v759_v39  ;;  %478 = vmatprep.subr.bf16.mxu1 %v760_v40 }
  0x29   :  { %531 = vmatprep.subr.bf16.mxu0 %v762_v41 }
  0x2b   :  { %479 = vmatpush1.bf16.msra.mxu1 %v764_v42 }
  0x2c   :  { %532 = vmatpush1.bf16.msra.mxu0 %v765_v43  ;;  %480 = vmatprep.subr.bf16.mxu1 %v766_v44 }
  0x2d   :  { %533 = vmatprep.subr.bf16.mxu0 %v768_v45 }
  0x2f   :  { %481 = vmatpush1.bf16.msra.mxu1 %v770_v46 }
  0x30   :  { %534 = vmatpush1.bf16.msra.mxu0 %v771_v47  ;;  %482 = vmatprep.subr.bf16.mxu1 %v772_v48 }
  0x31   :  { %535 = vmatprep.subr.bf16.mxu0 %v774_v50 }
  0x33   :  { %483 = vmatpush1.bf16.msra.mxu1 %v776_v52 }
  0x34   :  { %536 = vmatpush1.bf16.msra.mxu0 %v777_v53  ;;  %484 = vmatprep.subr.bf16.mxu1 %v778_v54 }
  0x35   :  { %537 = vmatprep.subr.bf16.mxu0 %v780_v55 }
  0x37   :  { %485 = vmatpush1.bf16.msra.mxu1 %v782_v56 }
  0x38   :  { %538 = vmatpush1.bf16.msra.mxu0 %v783_v57  ;;  %486 = vmatprep.subr.bf16.mxu1 %v784_v58 }
  0x39   :  { %539 = vmatprep.subr.bf16.mxu0 %v786_v59 }
  0x3b   :  { %487 = vmatpush1.bf16.msra.mxu1 %v788_v60 }
  0x3c   :  { %540 = vmatpush1.bf16.msra.mxu0 %v789_v61  ;;  %488 = vmatprep.subr.bf16.mxu1 %v790_v62 }
  0x3d   :  { %541 = vmatprep.subr.bf16.mxu0 %v792_v63 }
  0x3f   :  { %489 = vmatpush1.bf16.msra.mxu1 %v794_v0 }
  0x40   :  { %542 = vmatpush1.bf16.msra.mxu0 %v795_v1 }
  0x42   :  { %491 = vmatmul.mubr.bf16.vlgmr.msra.gmra.mrb[0].mxu1 %v796_v2 }
  0x43   :  { %544 = vmatmul.mubr.bf16.vlgmr.msra.gmra.mrb[0].mxu0 %v799_v3  ;;  %500 = vmatprep.mubr.bf16.mxu1 %v802_v4 }
  0x44   :  { %553 = vmatprep.mubr.bf16.mxu0 %v804_v5 }
  0x4a   :  { %501 = vmatmul.mubr.bf16.gmra.mrb[4].mxu1 %v806_v6 }
  0x4b   :  { %554 = vmatmul.mubr.bf16.gmra.mrb[4].mxu0 %v807_v7 }
 0x115   :  { %v492_v15 = vpop.f32.mrb[0].mxu1 }
 0x116   :  { %v545_v16 = vpop.f32.mrb[0].mxu0  ;;  %v493_v17 = vadd.f32 %v492_v15, %v91_v13  ;;  %v494_v18 = vpop.f32.mrb[1].mxu1 }
 0x117   :  { %v547_v19 = vpop.f32.mrb[1].mxu0  ;;  %v495_v20 = vadd.f32 %v494_v18, %v95_v14  ;;  %v496_v21 = vpop.f32.mrb[2].mxu1 }
 0x118   :  { %v549_v22 = vpop.f32.mrb[2].mxu0  ;;  %v546_v23 = vadd.f32 %v545_v16, %v493_v17  ;;  %v497_v24 = vadd.f32 %v496_v21, %v91_v13  ;;  %v498_v25 = vpop.f32.mrb[3].mxu1 }
 0x119   :  { %v551_v26 = vpop.f32.mrb[3].mxu0  ;;  %v548_v27 = vadd.f32 %v547_v19, %v495_v20  ;;  %v499_v28 = vadd.f32 %v498_v25, %v95_v14 }
 0x11a   :  { %v564_v29 = vmax.f32 %v546_v23, 0.0  ;;  %v550_v30 = vadd.f32 %v549_v22, %v497_v24 }
 0x11b   :  { %v565_v31 = vmax.f32 %v548_v27, 0.0  ;;  %v552_v32 = vadd.f32 %v551_v26, %v499_v28 }
 0x11c   :  { %v566_v33 = vmax.f32 %v550_v30, 0.0 }
 0x11d   :  { %v680_v34 = vpack.c.bf16 %v565_v31, %v564_v29  ;;  %v567_v35 = vmax.f32 %v552_v32, 0.0  ;;  %v502_v36 = vpop.f32.mrb[4].mxu1 }
 0x11e   :  { %v555_v37 = vpop.f32.mrb[4].mxu0  ;;  %v503_v38 = vadd.f32 %v502_v36, %v91_v13  ;;  %v504_v39 = vpop.f32.mrb[5].mxu1 }
 0x11f   :  { %v557_v40 = vpop.f32.mrb[5].mxu0  ;;  %596 = vst [vmem:[%s1062_s3] sm:$0xff] %v680_v34  ;;  %v681_v41 = vpack.c.bf16 %v567_v35, %v566_v33  ;;  %v505_v42 = vadd.f32 %v504_v39, %v95_v14  ;;  %v506_v43 = vpop.f32.mrb[6].mxu1 }
 0x120   :  { %v559_v44 = vpop.f32.mrb[6].mxu0  ;;  %v556_v45 = vadd.f32 %v555_v37, %v503_v38  ;;  %v507_v46 = vadd.f32 %v506_v43, %v91_v13  ;;  %v508_v47 = vpop.f32.mrb[7].mxu1 }
 0x121   :  { %v561_v48 = vpop.f32.mrb[7].mxu0  ;;  %597 = vst [vmem:[%s1062_s3 + $0x8] sm:$0xff] %v681_v41  ;;  %v558_v49 = vadd.f32 %v557_v40, %v505_v42  ;;  %v509_v50 = vadd.f32 %v508_v47, %v95_v14 }
 0x122   :  { %v568_v51 = vmax.f32 %v556_v45, 0.0  ;;  %v560_v52 = vadd.f32 %v559_v44, %v507_v46 }
 0x123   :  { %v569_v53 = vmax.f32 %v558_v49, 0.0  ;;  %v562_v54 = vadd.f32 %v561_v48, %v509_v50 }
 0x124   :  { %v570_v55 = vmax.f32 %v560_v52, 0.0 }
 0x125   :  { %v682_v56 = vpack.c.bf16 %v569_v53, %v568_v51  ;;  %v571_v57 = vmax.f32 %v562_v54, 0.0 }
 0x127   :  { %598 = vst [vmem:[%s1062_s3 + $0x10] sm:$0xff] %v682_v56  ;;  %v683_v58 = vpack.c.bf16 %v571_v57, %v570_v55 }
 0x129   :  { %599 = vst [vmem:[%s1062_s3 + $0x18] sm:$0xff] %v683_v58 }

// kernel: autoencoder_forward.14
= control target key start
LH: loop header
LB: loop body
LE: loop exit
PB: predicated region body
PF: predicated region fallthrough
CT: control target
= control target key end

     0   :  { %s836_s1 = inlined_call_operand.vmem [shape: bf16[256,128], index: 1, kind: input, shape index: {}]   ;;  %s837_s0 = inlined_call_operand.vmem [shape: bf16[128,256], index: 0, kind: input, shape index: {}]   ;;  %s838_s2 = inlined_call_operand.vmem [shape: f32[1,128], index: 2, kind: input, shape index: {}]   ;;  %s839_s3 = inlined_call_operand.vmem [shape: bf16[128,128], index: 3, kind: output, shape index: {}]  }
   0x1   :  { %v635_v0 = vld [vmem:[%s836_s1 + $0x40] sm:$0xff]   ;;  %v637_v2 = vld [vmem:[%s836_s1 + $0x48] sm:$0xff]   ;;  %v639_v4 = vld [vmem:[%s836_s1 + $0x50] sm:$0xff]  }
   0x2   :  { %v636_v1 = vld [vmem:[%s836_s1] sm:$0xff]   ;;  %555 = vmatprep.subr.bf16.mxu0 %v635_v0  ;;  %619 = vmatprep.subr.bf16.mxu1 %v635_v0  ;;  %v638_v3 = vld [vmem:[%s836_s1 + $0x8] sm:$0xff]   ;;  %v640_v5 = vld [vmem:[%s836_s1 + $0x10] sm:$0xff]  }
   0x3   :  { %556 = vmatpush3.bf16.msra.mxu0 %v636_v1  ;;  %627 = vmatpush3.bf16.msra.mxu1 %v636_v1  ;;  %v641_v6 = vld [vmem:[%s836_s1 + $0x58] sm:$0xff]   ;;  %v643_v8 = vld [vmem:[%s836_s1 + $0x60] sm:$0xff]   ;;  %v645_v10 = vld [vmem:[%s836_s1 + $0x68] sm:$0xff]  }
   0x4   :  { %557 = vmatprep.subr.bf16.mxu0 %v637_v2  ;;  %620 = vmatprep.subr.bf16.mxu1 %v637_v2  ;;  %v642_v7 = vld [vmem:[%s836_s1 + $0x18] sm:$0xff]   ;;  %v644_v9 = vld [vmem:[%s836_s1 + $0x20] sm:$0xff]   ;;  %v646_v13 = vld [vmem:[%s836_s1 + $0x28] sm:$0xff]  }
   0x5   :  { %v653_v11 = vld [vmem:[%s837_s0 + $0x4] ss:$8 sps:$4 sm:$0xff]   ;;  %v647_v14 = vld [vmem:[%s836_s1 + $0x70] sm:$0xff]   ;;  %v649_v16 = vld [vmem:[%s836_s1 + $0x78] sm:$0xff]  }
   0x6   :  { %v656_v12 = vld [vmem:[%s837_s0 + $0x44] ss:$8 sps:$4 sm:$0xff]   ;;  %278 = vmatprep.mubr.bf16.mxu0 %v653_v11  ;;  %v648_v15 = vld [vmem:[%s836_s1 + $0x30] sm:$0xff]   ;;  %v650_v17 = vld [vmem:[%s836_s1 + $0x38] sm:$0xff]  }
   0x7   :  { %558 = vmatpush3.bf16.msra.mxu0 %v638_v3  ;;  %628 = vmatpush3.bf16.msra.mxu1 %v638_v3  ;;  %v651_v18 = vld [vmem:[%s837_s0] ss:$8 sps:$4 sm:$0xff]   ;;  %v657_v20 = vld [vmem:[%s837_s0 + $0x14] ss:$8 sps:$4 sm:$0xff]   ;;  %v661_v22 = vld [vmem:[%s837_s0 + $0x10] ss:$8 sps:$4 sm:$0xff]  }
   0x8   :  { %559 = vmatprep.subr.bf16.mxu0 %v639_v4  ;;  %621 = vmatprep.subr.bf16.mxu1 %v639_v4  ;;  %v654_v19 = vld [vmem:[%s837_s0 + $0x40] ss:$8 sps:$4 sm:$0xff]   ;;  %v659_v21 = vld [vmem:[%s837_s0 + $0x54] ss:$8 sps:$4 sm:$0xff]   ;;  %v662_v23 = vld [vmem:[%s837_s0 + $0x50] ss:$8 sps:$4 sm:$0xff]  }
   0x9   :  { %310 = vmatprep.mubr.bf16.mxu1 %v656_v12  ;;  %v663_v24 = vld [vmem:[%s837_s0 + $0x24] ss:$8 sps:$4 sm:$0xff]   ;;  %v667_v26 = vld [vmem:[%s837_s0 + $0x20] ss:$8 sps:$4 sm:$0xff]   ;;  %v669_v28 = vld [vmem:[%s837_s0 + $0x34] ss:$8 sps:$4 sm:$0xff]  }
   0xa   :  { %v665_v25 = vld [vmem:[%s837_s0 + $0x64] ss:$8 sps:$4 sm:$0xff]   ;;  %v668_v27 = vld [vmem:[%s837_s0 + $0x60] ss:$8 sps:$4 sm:$0xff]   ;;  %v671_v29 = vld [vmem:[%s837_s0 + $0x74] ss:$8 sps:$4 sm:$0xff]  }
   0xb   :  { %560 = vmatpush3.bf16.msra.mxu0 %v640_v5  ;;  %629 = vmatpush3.bf16.msra.mxu1 %v640_v5  ;;  %v673_v30 = vld [vmem:[%s837_s0 + $0x30] ss:$8 sps:$4 sm:$0xff]   ;;  %v794_v34 = vld [vmem:[%s838_s2] ss:$0 sm:$0xff] }
   0xc   :  { %561 = vmatprep.subr.bf16.mxu0 %v641_v6  ;;  %622 = vmatprep.subr.bf16.mxu1 %v641_v6  ;;  %v674_v31 = vld [vmem:[%s837_s0 + $0x70] ss:$8 sps:$4 sm:$0xff]  }
   0xf   :  { %562 = vmatpush3.bf16.msra.mxu0 %v642_v7  ;;  %630 = vmatpush3.bf16.msra.mxu1 %v642_v7 }
  0x10   :  { %563 = vmatprep.subr.bf16.mxu0 %v643_v8  ;;  %623 = vmatprep.subr.bf16.mxu1 %v643_v8 }
  0x13   :  { %564 = vmatpush3.bf16.msra.mxu0 %v644_v9  ;;  %631 = vmatpush3.bf16.msra.mxu1 %v644_v9 }
  0x14   :  { %565 = vmatprep.subr.bf16.mxu0 %v645_v10  ;;  %624 = vmatprep.subr.bf16.mxu1 %v645_v10 }
  0x17   :  { %566 = vmatpush3.bf16.msra.mxu0 %v646_v13  ;;  %632 = vmatpush3.bf16.msra.mxu1 %v646_v13 }
  0x18   :  { %567 = vmatprep.subr.bf16.mxu0 %v647_v14  ;;  %625 = vmatprep.subr.bf16.mxu1 %v647_v14 }
  0x1b   :  { %568 = vmatpush3.bf16.msra.mxu0 %v648_v15  ;;  %633 = vmatpush3.bf16.msra.mxu1 %v648_v15 }
  0x1c   :  { %569 = vmatprep.subr.bf16.mxu0 %v649_v16  ;;  %626 = vmatprep.subr.bf16.mxu1 %v649_v16 }
  0x1f   :  { %570 = vmatpush3.bf16.msra.mxu0 %v650_v17  ;;  %634 = vmatpush3.bf16.msra.mxu1 %v650_v17 }
  0x22   :  { %279 = vmatmul.mubr.bf16.vlgmr.msra.gmra.mrb[0].mxu0 %v651_v18  ;;  %311 = vmatmul.mubr.bf16.vlgmr.msra.gmra.mrb[0].mxu1 %v654_v19 }
  0x23   :  { %286 = vmatprep.mubr.bf16.mxu0 %v657_v20  ;;  %318 = vmatprep.mubr.bf16.mxu1 %v659_v21 }
  0x2a   :  { %287 = vmatmul.mubr.bf16.gmra.mrb[4].mxu0 %v661_v22  ;;  %319 = vmatmul.mubr.bf16.gmra.mrb[4].mxu1 %v662_v23 }
  0x2b   :  { %294 = vmatprep.mubr.bf16.mxu0 %v663_v24  ;;  %326 = vmatprep.mubr.bf16.mxu1 %v665_v25 }
  0x32   :  { %295 = vmatmul.mubr.bf16.gmra.mrb[8].mxu0 %v667_v26  ;;  %327 = vmatmul.mubr.bf16.gmra.mrb[8].mxu1 %v668_v27 }
  0x33   :  { %302 = vmatprep.mubr.bf16.mxu0 %v669_v28  ;;  %334 = vmatprep.mubr.bf16.mxu1 %v671_v29 }
  0x3a   :  { %303 = vmatmul.mubr.bf16.gmra.mrb[12].mxu0 %v673_v30  ;;  %335 = vmatmul.mubr.bf16.gmra.mrb[12].mxu1 %v674_v31 }
  0xf5   :  { %v571_v32 = vpop.f32.mrb[0].mxu0  ;;  %v595_v33 = vpop.f32.mrb[0].mxu1 }
  0xf6   :  { %v572_v35 = vpop.f32.mrb[1].mxu0  ;;  %v596_v36 = vpop.f32.mrb[1].mxu1 }
  0xf7   :  { %v573_v37 = vadd.f32 %v572_v35, %v571_v32  ;;  %v597_v38 = vadd.f32 %v596_v36, %v595_v33  ;;  %v574_v39 = vpop.f32.mrb[2].mxu0  ;;  %v598_v40 = vpop.f32.mrb[2].mxu1 }
  0xf8   :  { %v575_v41 = vpop.f32.mrb[3].mxu0  ;;  %v599_v42 = vpop.f32.mrb[3].mxu1 }
  0xf9   :  { %v281_v43 = vadd.f32 %v573_v37, %v794_v34  ;;  %v313_v44 = vadd.f32 %v597_v38, %v794_v34  ;;  %v576_v45 = vadd.f32 %v575_v41, %v574_v39  ;;  %v600_v46 = vadd.f32 %v599_v42, %v598_v40 }
  0xfb   :  { %v284_v47 = vadd.f32 %v576_v45, %v794_v34  ;;  %v316_v48 = vadd.f32 %v600_v46, %v794_v34  ;;  %v343_v49 = vmax.f32 %v281_v43, 0.0  ;;  %v351_v50 = vmax.f32 %v313_v44, 0.0 }
  0xfd   :  { %v344_v51 = vmax.f32 %v284_v47, 0.0  ;;  %v352_v52 = vmax.f32 %v316_v48, 0.0  ;;  %v577_v53 = vpop.f32.mrb[4].mxu0  ;;  %v601_v54 = vpop.f32.mrb[4].mxu1 }
  0xfe   :  { %v578_v55 = vpop.f32.mrb[5].mxu0  ;;  %v602_v56 = vpop.f32.mrb[5].mxu1 }
  0xff   :  { %v511_v57 = vpack.c.bf16 %v344_v51, %v343_v49  ;;  %v531_v58 = vpack.c.bf16 %v352_v52, %v351_v50  ;;  %v579_v59 = vadd.f32 %v578_v55, %v577_v53  ;;  %v603_v60 = vadd.f32 %v602_v56, %v601_v54  ;;  %v580_v61 = vpop.f32.mrb[6].mxu0  ;;  %v604_v62 = vpop.f32.mrb[6].mxu1 }
 0x100   :  { %v581_v63 = vpop.f32.mrb[7].mxu0  ;;  %v605_v0 = vpop.f32.mrb[7].mxu1 }
 0x101   :  { %512 = vst [vmem:[%s839_s3] sm:$0xff] %v511_v57   ;;  %551 = vst [vmem:[%s839_s3 + $0x20] sm:$0xff] %v531_v58   ;;  %v289_v1 = vadd.f32 %v579_v59, %v794_v34  ;;  %v321_v2 = vadd.f32 %v603_v60, %v794_v34  ;;  %v582_v3 = vadd.f32 %v581_v63, %v580_v61 }
 0x102   :  { %v606_v4 = vadd.f32 %v605_v0, %v604_v62 }
 0x103   :  { %v292_v5 = vadd.f32 %v582_v3, %v794_v34  ;;  %v345_v7 = vmax.f32 %v289_v1, 0.0  ;;  %v353_v8 = vmax.f32 %v321_v2, 0.0 }
 0x104   :  { %v324_v6 = vadd.f32 %v606_v4, %v794_v34 }
 0x105   :  { %v346_v9 = vmax.f32 %v292_v5, 0.0  ;;  %v583_v11 = vpop.f32.mrb[8].mxu0  ;;  %v607_v12 = vpop.f32.mrb[8].mxu1 }
 0x106   :  { %v354_v10 = vmax.f32 %v324_v6, 0.0  ;;  %v584_v13 = vpop.f32.mrb[9].mxu0  ;;  %v608_v14 = vpop.f32.mrb[9].mxu1 }
 0x107   :  { %v516_v15 = vpack.c.bf16 %v346_v9, %v345_v7  ;;  %v585_v17 = vadd.f32 %v584_v13, %v583_v11  ;;  %v609_v18 = vadd.f32 %v608_v14, %v607_v12  ;;  %v586_v19 = vpop.f32.mrb[10].mxu0  ;;  %v610_v20 = vpop.f32.mrb[10].mxu1 }
 0x108   :  { %v536_v16 = vpack.c.bf16 %v354_v10, %v353_v8  ;;  %v587_v21 = vpop.f32.mrb[11].mxu0  ;;  %v611_v22 = vpop.f32.mrb[11].mxu1 }
 0x109   :  { %548 = vst [vmem:[%s839_s3 + $0x8] sm:$0xff] %v516_v15   ;;  %v297_v23 = vadd.f32 %v585_v17, %v794_v34  ;;  %v329_v24 = vadd.f32 %v609_v18, %v794_v34  ;;  %v588_v25 = vadd.f32 %v587_v21, %v586_v19  ;;  %v612_v26 = vadd.f32 %v611_v22, %v610_v20 }
 0x10a   :  { %552 = vst [vmem:[%s839_s3 + $0x28] sm:$0xff] %v536_v16  }
 0x10b   :  { %v300_v27 = vadd.f32 %v588_v25, %v794_v34  ;;  %v332_v28 = vadd.f32 %v612_v26, %v794_v34  ;;  %v347_v29 = vmax.f32 %v297_v23, 0.0  ;;  %v355_v30 = vmax.f32 %v329_v24, 0.0 }
 0x10d   :  { %v348_v31 = vmax.f32 %v300_v27, 0.0  ;;  %v356_v32 = vmax.f32 %v332_v28, 0.0  ;;  %v589_v33 = vpop.f32.mrb[12].mxu0  ;;  %v613_v35 = vpop.f32.mrb[12].mxu1 }
 0x10e   :  { %v590_v36 = vpop.f32.mrb[13].mxu0  ;;  %v614_v37 = vpop.f32.mrb[13].mxu1 }
 0x10f   :  { %v521_v38 = vpack.c.bf16 %v348_v31, %v347_v29  ;;  %v541_v39 = vpack.c.bf16 %v356_v32, %v355_v30  ;;  %v591_v40 = vadd.f32 %v590_v36, %v589_v33  ;;  %v615_v41 = vadd.f32 %v614_v37, %v613_v35  ;;  %v592_v42 = vpop.f32.mrb[14].mxu0  ;;  %v616_v43 = vpop.f32.mrb[14].mxu1 }
 0x110   :  { %v593_v44 = vpop.f32.mrb[15].mxu0  ;;  %v617_v45 = vpop.f32.mrb[15].mxu1 }
 0x111   :  { %549 = vst [vmem:[%s839_s3 + $0x10] sm:$0xff] %v521_v38   ;;  %553 = vst [vmem:[%s839_s3 + $0x30] sm:$0xff] %v541_v39   ;;  %v305_v46 = vadd.f32 %v591_v40, %v794_v34  ;;  %v337_v47 = vadd.f32 %v615_v41, %v794_v34  ;;  %v594_v48 = vadd.f32 %v593_v44, %v592_v42 }
 0x112   :  { %v618_v49 = vadd.f32 %v617_v45, %v616_v43 }
 0x113   :  { %v308_v50 = vadd.f32 %v594_v48, %v794_v34  ;;  %v349_v52 = vmax.f32 %v305_v46, 0.0  ;;  %v357_v53 = vmax.f32 %v337_v47, 0.0 }
 0x114   :  { %v340_v51 = vadd.f32 %v618_v49, %v794_v34 }
 0x115   :  { %v350_v54 = vmax.f32 %v308_v50, 0.0 }
 0x116   :  { %v358_v55 = vmax.f32 %v340_v51, 0.0 }
 0x117   :  { %v526_v56 = vpack.c.bf16 %v350_v54, %v349_v52 }
 0x118   :  { %v546_v57 = vpack.c.bf16 %v358_v55, %v357_v53 }
 0x119   :  { %550 = vst [vmem:[%s839_s3 + $0x18] sm:$0xff] %v526_v56  }
 0x11a   :  { %554 = vst [vmem:[%s839_s3 + $0x38] sm:$0xff] %v546_v57  }

// kernel: autoencoder_forward.15
= control target key start
LH: loop header
LB: loop body
LE: loop exit
PB: predicated region body
PF: predicated region fallthrough
CT: control target
= control target key end

     0   :  { %s1000_s12 = smov 0   ;;  %s1166_s0 = inlined_call_operand.vmem [shape: bf16[512,128], index: 0, kind: input, shape index: {}]   ;;  %s1167_s1 = inlined_call_operand.vmem [shape: bf16[128,4], index: 1, kind: input, shape index: {}]   ;;  %s1168_s2 = inlined_call_operand.vmem [shape: f32[1,4], index: 2, kind: input, shape index: {}]   ;;  %s1169_s3 = inlined_call_operand.vmem [shape: f32[512,4], index: 3, kind: output, shape index: {}]  }
   0x1 LB: > { %s752_s13 = sadd.s32 4294967295, %s978_s12   ;;  %p756_p0 = scmp.ge.s32.totalorder %s978_s12, 1  ;;  %s978_s12 = sphi %s1000_s12, %s13_s12  }
   0x2   : > { %p138_p1 = scmp.lt.s32.totalorder %s978_s12, 3 }
   0x4   : > { %p139_p2 = pnand %p756_p0, %p138_p1 }
   0x5   : > { %v884_v0 = vld [vmem:[%s1167_s1] sm:$0xff] (!%p139_p2)   ;;  %s757_s16 = sshll.u32 (!%p139_p2), %s752_s13, 5  ;;  %v885_v1 = vld [vmem:[%s1167_s1 + $0x8] sm:$0xff] (!%p139_p2)   ;;  %v886_v2 = vld [vmem:[%s1167_s1 + $0x10] sm:$0xff] (!%p139_p2)   ;;  %vm663_vm0 = vcmask (!%p139_p2), 31744  }
   0x6   : > { %142 = sbr.rel (%p139_p2) target bundleno = 306 (0x132), region = 32  ;;  %p163_p3 = scmp.lt.s32.totalorder (!%p139_p2), %s757_s16, 63  ;;  %812 = vmatprep.subr.bf16.mxu0 (!%p139_p2), %v884_v0  ;;  %860 = vmatprep.subr.bf16.mxu1 (!%p139_p2), %v884_v0  ;;  %v887_v3 = vld [vmem:[%s1167_s1 + $0x18] sm:$0xff] (!%p139_p2)   ;;  %v888_v6 = vld [vmem:[%s1167_s1 + $0x20] sm:$0xff] (!%p139_p2)   ;;  %v889_v7 = vld [vmem:[%s1167_s1 + $0x28] sm:$0xff] (!%p139_p2)  }
   0x7   : > { %813 = vmatpush3.bf16.msra.mxu0 (!%p139_p2), %v884_v0  ;;  %868 = vmatpush3.bf16.msra.mxu1 (!%p139_p2), %v884_v0  ;;  %v890_v8 = vld [vmem:[%s1167_s1 + $0x30] sm:$0xff] (!%p139_p2)   ;;  %v891_v9 = vld [vmem:[%s1167_s1 + $0x38] sm:$0xff] (!%p139_p2)   ;;  %v1059_v24 = vld [vmem:[%s1168_s2] ss:$0 sm:$0xff] (!%p139_p2) }
   0x8   : > { %814 = vmatprep.subr.bf16.mxu0 (!%p139_p2), %v885_v1  ;;  %861 = vmatprep.subr.bf16.mxu1 (!%p139_p2), %v885_v1 }
   0xb   : > { %815 = vmatpush3.bf16.msra.mxu0 (!%p139_p2), %v885_v1  ;;  %869 = vmatpush3.bf16.msra.mxu1 (!%p139_p2), %v885_v1 }
   0xc   : > { %816 = vmatprep.subr.bf16.mxu0 (!%p139_p2), %v886_v2  ;;  %862 = vmatprep.subr.bf16.mxu1 (!%p139_p2), %v886_v2 }
   0xd   : > { %s1171_s16 = smov (!%p163_p3, %s757_s16), 63 }
   0xe   : > { %s758_s21 = sshll.u32 %s1171_s16, 2  ;;  %s760_s10 = sshll.u32 %s1171_s16, 3 }
   0xf   : > { %s1023_s24 = scalar_lea.vmem %s1166_s0, %s758_s21  ;;  %817 = vmatpush3.bf16.msra.mxu0 %v886_v2  ;;  %870 = vmatpush3.bf16.msra.mxu1 %v886_v2  ;;  %s1081_s14 = scalar_lea.vmem %s1169_s3, %s760_s10 }
  0x10   : > { %v892_v4 = vld [vmem:[%s1023_s24] sm:$0xff]   ;;  %818 = vmatprep.subr.bf16.mxu0 %v887_v3  ;;  %863 = vmatprep.subr.bf16.mxu1 %v887_v3  ;;  %v894_v10 = vld [vmem:[%s1023_s24 + $0x8] sm:$0xff]   ;;  %v896_v12 = vld [vmem:[%s1023_s24 + $0x10] sm:$0xff]  }
  0x11   : > { %v893_v5 = vld [vmem:[%s1023_s24 + $0x40] sm:$0xff]   ;;  %828 = vmatprep.mubr.bf16.mxu0 %v892_v4  ;;  %v895_v11 = vld [vmem:[%s1023_s24 + $0x48] sm:$0xff]   ;;  %v897_v13 = vld [vmem:[%s1023_s24 + $0x50] sm:$0xff]  }
  0x12   : > { %844 = vmatprep.mubr.bf16.mxu1 %v893_v5  ;;  %v898_v14 = vld [vmem:[%s1023_s24 + $0x18] sm:$0xff]   ;;  %v900_v16 = vld [vmem:[%s1023_s24 + $0x20] sm:$0xff]   ;;  %v902_v18 = vld [vmem:[%s1023_s24 + $0x28] sm:$0xff]  }
  0x13   : > { %819 = vmatpush3.bf16.msra.mxu0 %v887_v3  ;;  %871 = vmatpush3.bf16.msra.mxu1 %v887_v3  ;;  %v899_v15 = vld [vmem:[%s1023_s24 + $0x58] sm:$0xff]   ;;  %v901_v17 = vld [vmem:[%s1023_s24 + $0x60] sm:$0xff]   ;;  %v903_v19 = vld [vmem:[%s1023_s24 + $0x68] sm:$0xff]  }
  0x14   : > { %820 = vmatprep.subr.bf16.mxu0 %v888_v6  ;;  %864 = vmatprep.subr.bf16.mxu1 %v888_v6  ;;  %v904_v20 = vld [vmem:[%s1023_s24 + $0x30] sm:$0xff]   ;;  %v906_v22 = vld [vmem:[%s1023_s24 + $0x38] sm:$0xff]  }
  0x15   : > { %v905_v21 = vld [vmem:[%s1023_s24 + $0x70] sm:$0xff]   ;;  %v907_v23 = vld [vmem:[%s1023_s24 + $0x78] sm:$0xff]  }
  0x17   : > { %821 = vmatpush3.bf16.msra.mxu0 %v888_v6  ;;  %872 = vmatpush3.bf16.msra.mxu1 %v888_v6 }
  0x18   : > { %822 = vmatprep.subr.bf16.mxu0 %v889_v7  ;;  %865 = vmatprep.subr.bf16.mxu1 %v889_v7 }
  0x1b   : > { %823 = vmatpush3.bf16.msra.mxu0 %v889_v7  ;;  %873 = vmatpush3.bf16.msra.mxu1 %v889_v7 }
  0x1c   : > { %824 = vmatprep.subr.bf16.mxu0 %v890_v8  ;;  %866 = vmatprep.subr.bf16.mxu1 %v890_v8 }
  0x1f   : > { %825 = vmatpush3.bf16.msra.mxu0 %v890_v8  ;;  %874 = vmatpush3.bf16.msra.mxu1 %v890_v8 }
  0x20   : > { %826 = vmatprep.subr.bf16.mxu0 %v891_v9  ;;  %867 = vmatprep.subr.bf16.mxu1 %v891_v9 }
  0x23   : > { %827 = vmatpush3.bf16.msra.mxu0 %v891_v9  ;;  %875 = vmatpush3.bf16.msra.mxu1 %v891_v9 }
  0x26   : > { %829 = vmatmul.mubr.bf16.vlgmr.msra.gmra.mrb[0].mxu0 %v894_v10  ;;  %845 = vmatmul.mubr.bf16.vlgmr.msra.gmra.mrb[0].mxu1 %v895_v11 }
  0x27   : > { %832 = vmatprep.mubr.bf16.mxu0 %v896_v12  ;;  %848 = vmatprep.mubr.bf16.mxu1 %v897_v13 }
  0x2e   : > { %833 = vmatmul.mubr.bf16.gmra.mrb[4].mxu0 %v898_v14  ;;  %849 = vmatmul.mubr.bf16.gmra.mrb[4].mxu1 %v899_v15 }
  0x2f   : > { %836 = vmatprep.mubr.bf16.mxu0 %v900_v16  ;;  %852 = vmatprep.mubr.bf16.mxu1 %v901_v17 }
  0x36   : > { %837 = vmatmul.mubr.bf16.gmra.mrb[8].mxu0 %v902_v18  ;;  %853 = vmatmul.mubr.bf16.gmra.mrb[8].mxu1 %v903_v19 }
  0x37   : > { %840 = vmatprep.mubr.bf16.mxu0 %v904_v20  ;;  %856 = vmatprep.mubr.bf16.mxu1 %v905_v21 }
  0x3e   : > { %841 = vmatmul.mubr.bf16.gmra.mrb[12].mxu0 %v906_v22  ;;  %857 = vmatmul.mubr.bf16.gmra.mrb[12].mxu1 %v907_v23 }
  0xf9   : > { %v830_v25 = vpop.f32.mrb[0].mxu0  ;;  %v846_v26 = vpop.f32.mrb[0].mxu1 }
  0xfa   : > { %v417_v27 = vadd.f32 %v830_v25, %v1059_v24  ;;  %v481_v28 = vadd.f32 %v846_v26, %v1059_v24  ;;  %v408_v29 = vpop.f32.mrb[1].mxu0  ;;  %v472_v30 = vpop.f32.mrb[1].mxu1 }
  0xfb   : > { %v409_v31 = vadd.f32 %v1059_v24, %v408_v29  ;;  %v473_v32 = vadd.f32 %v1059_v24, %v472_v30  ;;  %v831_v33 = vpop.f32.mrb[2].mxu0  ;;  %v847_v34 = vpop.f32.mrb[2].mxu1 }
  0xfc   : > { %v537_v35 = vmul.f32 0.5, %v417_v27  ;;  %v553_v36 = vmul.f32 0.5, %v481_v28  ;;  %v420_v37 = vadd.f32 %v831_v33, %v1059_v24  ;;  %v484_v38 = vadd.f32 %v847_v34, %v1059_v24  ;;  %v411_v39 = vpop.f32.mrb[3].mxu0  ;;  %v475_v40 = vpop.f32.mrb[3].mxu1 }
  0xfd   : > { %v535_v41 = vmul.f32 0.5, %v409_v31  ;;  %v551_v42 = vmul.f32 0.5, %v473_v32  ;;  %v412_v43 = vadd.f32 %v1059_v24, %v411_v39  ;;  %v476_v44 = vadd.f32 %v1059_v24, %v475_v40 }
  0xfe   : > { %908 = vtanh.f32 %v537_v35  ;;  %v538_v45 = vmul.f32 0.5, %v420_v37  ;;  %v554_v46 = vmul.f32 0.5, %v484_v38 }
  0xff   : > { %910 = vtanh.f32 %v553_v36  ;;  %v536_v47 = vmul.f32 0.5, %v412_v43  ;;  %v552_v48 = vmul.f32 0.5, %v476_v44 }
 0x100   : > { %912 = vtanh.f32 %v535_v41 }
 0x101   : > { %914 = vtanh.f32 %v551_v42  ;;  %v834_v49 = vpop.f32.mrb[4].mxu0  ;;  %v850_v50 = vpop.f32.mrb[4].mxu1 }
 0x102   : > { %916 = vtanh.f32 %v538_v45  ;;  %v433_v51 = vadd.f32 %v834_v49, %v1059_v24  ;;  %v497_v52 = vadd.f32 %v850_v50, %v1059_v24  ;;  %v424_v53 = vpop.f32.mrb[5].mxu0  ;;  %v488_v54 = vpop.f32.mrb[5].mxu1 }
 0x103   : > { %918 = vtanh.f32 %v554_v46  ;;  %v425_v55 = vadd.f32 %v1059_v24, %v424_v53  ;;  %v489_v56 = vadd.f32 %v1059_v24, %v488_v54  ;;  %v835_v57 = vpop.f32.mrb[6].mxu0  ;;  %v851_v58 = vpop.f32.mrb[6].mxu1 }
 0x104   : > { %920 = vtanh.f32 %v536_v47  ;;  %v541_v59 = vmul.f32 0.5, %v433_v51  ;;  %v557_v60 = vmul.f32 0.5, %v497_v52  ;;  %v436_v61 = vadd.f32 %v835_v57, %v1059_v24  ;;  %v427_v62 = vpop.f32.mrb[7].mxu0  ;;  %v491_v63 = vpop.f32.mrb[7].mxu1 }
 0x105   : > { %922 = vtanh.f32 %v552_v48  ;;  %v539_v0 = vmul.f32 0.5, %v425_v55  ;;  %v555_v1 = vmul.f32 0.5, %v489_v56  ;;  %v500_v2 = vadd.f32 %v851_v58, %v1059_v24 }
 0x106   : > { %924 = vtanh.f32 %v541_v59  ;;  %v542_v3 = vmul.f32 0.5, %v436_v61  ;;  %v428_v4 = vadd.f32 %v1059_v24, %v427_v62  ;;  %v492_v5 = vadd.f32 %v1059_v24, %v491_v63 }
 0x107   : > { %926 = vtanh.f32 %v557_v60  ;;  %v558_v6 = vmul.f32 0.5, %v500_v2 }
 0x108   : > { %v909_v7 = vpop.eup %908  ;;  %928 = vtanh.f32 %v539_v0  ;;  %v540_v8 = vmul.f32 0.5, %v428_v4  ;;  %v556_v11 = vmul.f32 0.5, %v492_v5 }
 0x109   : > { %v911_v9 = vpop.eup %910  ;;  %v601_v10 = vadd.f32 1.0, %v909_v7  ;;  %930 = vtanh.f32 %v555_v1  ;;  %v838_v12 = vpop.f32.mrb[8].mxu0 }
 0x10a   : > { %v854_v13 = vpop.f32.mrb[8].mxu1  ;;  %v913_v14 = vpop.eup %912  ;;  %v617_v15 = vadd.f32 1.0, %v911_v9  ;;  %932 = vtanh.f32 %v542_v3  ;;  %v449_v16 = vadd.f32 %v838_v12, %v1059_v24 }
 0x10b   : > { %v513_v17 = vadd.f32 %v854_v13, %v1059_v24  ;;  %v440_v18 = vpop.f32.mrb[9].mxu0  ;;  %v504_v19 = vpop.f32.mrb[9].mxu1  ;;  %v633_v21 = vmul.f32 0.5, %v601_v10  ;;  %v599_v22 = vadd.f32 1.0, %v913_v14  ;;  %934 = vtanh.f32 %v558_v6 }
 0x10c   : > { %v915_v20 = vpop.eup %914  ;;  %v441_v23 = vadd.f32 %v1059_v24, %v440_v18  ;;  %v839_v25 = vpop.f32.mrb[10].mxu0  ;;  %v649_v28 = vmul.f32 0.5, %v617_v15  ;;  %936 = vtanh.f32 %v540_v8  ;;  %v545_v30 = vmul.f32 0.5, %v449_v16 }
 0x10d   : > { %v855_v26 = vpop.f32.mrb[10].mxu1  ;;  %v917_v27 = vpop.eup %916  ;;  %v615_v29 = vadd.f32 1.0, %v915_v20  ;;  %666 = vst.msk [vmem:[%s1081_s14 + $0x10] sm:$0xff] %vm663_vm0, %v633_v21  ;;  %v631_v34 = vmul.f32 0.5, %v599_v22  ;;  %938 = vtanh.f32 %v556_v11  ;;  %v561_v36 = vmul.f32 0.5, %v513_v17 }
 0x10e   : > { %v443_v31 = vpop.f32.mrb[11].mxu0  ;;  %v507_v32 = vpop.f32.mrb[11].mxu1  ;;  %v602_v35 = vadd.f32 1.0, %v917_v27  ;;  %682 = vst.msk [vmem:[%s1081_s14 + $0x90] sm:$0xff] %vm663_vm0, %v649_v28  ;;  %940 = vtanh.f32 %v545_v30  ;;  %v543_v40 = vmul.f32 0.5, %v441_v23  ;;  %v505_v44 = vadd.f32 %v1059_v24, %v504_v19 }
 0x10f   : > { %v919_v33 = vpop.eup %918  ;;  %v647_v38 = vmul.f32 0.5, %v615_v29  ;;  %664 = vst.msk [vmem:[%s1081_s14] sm:$0xff] %vm663_vm0, %v631_v34  ;;  %942 = vtanh.f32 %v561_v36  ;;  %v452_v48 = vadd.f32 %v839_v25, %v1059_v24  ;;  %v516_v53 = vadd.f32 %v855_v26, %v1059_v24 }
 0x110   : > { %v921_v37 = vpop.eup %920  ;;  %v618_v39 = vadd.f32 1.0, %v919_v33  ;;  %v634_v42 = vmul.f32 0.5, %v602_v35  ;;  %944 = vtanh.f32 %v543_v40  ;;  %v559_v52 = vmul.f32 0.5, %v505_v44 }
 0x111   : > { %v923_v41 = vpop.eup %922  ;;  %v600_v43 = vadd.f32 1.0, %v921_v37  ;;  %680 = vst.msk [vmem:[%s1081_s14 + $0x80] sm:$0xff] %vm663_vm0, %v647_v38  ;;  %v842_v54 = vpop.f32.mrb[12].mxu0  ;;  %v546_v59 = vmul.f32 0.5, %v452_v48  ;;  %v444_v60 = vadd.f32 %v1059_v24, %v443_v31  ;;  %v562_v2 = vmul.f32 0.5, %v516_v53 }
 0x112   : > { %v925_v45 = vpop.eup %924  ;;  %v650_v46 = vmul.f32 0.5, %v618_v39  ;;  %v616_v47 = vadd.f32 1.0, %v923_v41  ;;  %667 = vst.msk [vmem:[%s1081_s14 + $0x18] sm:$0xff] %vm663_vm0, %v634_v42  ;;  %v858_v55 = vpop.f32.mrb[12].mxu1  ;;  %946 = vtanh.f32 %v559_v52  ;;  %v508_v14 = vadd.f32 %v1059_v24, %v507_v32 }
 0x113   : > { %v927_v49 = vpop.eup %926  ;;  %v632_v50 = vmul.f32 0.5, %v600_v43  ;;  %v605_v51 = vadd.f32 1.0, %v925_v45  ;;  %v456_v61 = vpop.f32.mrb[13].mxu0  ;;  %948 = vtanh.f32 %v546_v59  ;;  %v544_v8 = vmul.f32 0.5, %v444_v60 }
 0x114   : > { %v929_v56 = vpop.eup %928  ;;  %683 = vst.msk [vmem:[%s1081_s14 + $0x98] sm:$0xff] %vm663_vm0, %v650_v46  ;;  %v648_v57 = vmul.f32 0.5, %v616_v47  ;;  %v621_v58 = vadd.f32 1.0, %v927_v49  ;;  %v520_v62 = vpop.f32.mrb[13].mxu1  ;;  %950 = vtanh.f32 %v562_v2  ;;  %v465_v18 = vadd.f32 %v842_v54, %v1059_v24 }
 0x115   : > { %v931_v63 = vpop.eup %930  ;;  %665 = vst.msk [vmem:[%s1081_s14 + $0x8] sm:$0xff] %vm663_vm0, %v632_v50  ;;  %v637_v0 = vmul.f32 0.5, %v605_v51  ;;  %v603_v1 = vadd.f32 1.0, %v929_v56  ;;  %v843_v3 = vpop.f32.mrb[14].mxu0  ;;  %952 = vtanh.f32 %v544_v8  ;;  %v560_v22 = vmul.f32 0.5, %v508_v14 }
 0x116   : > { %v859_v4 = vpop.f32.mrb[14].mxu1  ;;  %v933_v5 = vpop.eup %932  ;;  %681 = vst.msk [vmem:[%s1081_s14 + $0x88] sm:$0xff] %vm663_vm0, %v648_v57  ;;  %v653_v6 = vmul.f32 0.5, %v621_v58  ;;  %v619_v7 = vadd.f32 1.0, %v931_v63  ;;  %v529_v23 = vadd.f32 %v858_v55, %v1059_v24  ;;  %v549_v28 = vmul.f32 0.5, %v465_v18 }
 0x117   : > { %v459_v9 = vpop.f32.mrb[15].mxu0  ;;  %v523_v10 = vpop.f32.mrb[15].mxu1  ;;  %670 = vst.msk [vmem:[%s1081_s14 + $0x30] sm:$0xff] %vm663_vm0, %v637_v0  ;;  %v635_v12 = vmul.f32 0.5, %v603_v1  ;;  %v606_v13 = vadd.f32 1.0, %v933_v5  ;;  %v457_v29 = vadd.f32 %v1059_v24, %v456_v61  ;;  %954 = vtanh.f32 %v560_v22 }
 0x118   : > { %v935_v11 = vpop.eup %934  ;;  %686 = vst.msk [vmem:[%s1081_s14 + $0xb0] sm:$0xff] %vm663_vm0, %v653_v6  ;;  %v651_v16 = vmul.f32 0.5, %v619_v7  ;;  %v565_v33 = vmul.f32 0.5, %v529_v23  ;;  %956 = vtanh.f32 %v549_v28  ;;  %v521_v40 = vadd.f32 %v1059_v24, %v520_v62 }
 0x119   : > { %v937_v15 = vpop.eup %936  ;;  %v622_v17 = vadd.f32 1.0, %v935_v11  ;;  %668 = vst.msk [vmem:[%s1081_s14 + $0x20] sm:$0xff] %vm663_vm0, %v635_v12  ;;  %v638_v20 = vmul.f32 0.5, %v606_v13  ;;  %v547_v37 = vmul.f32 0.5, %v457_v29  ;;  %v468_v42 = vadd.f32 %v843_v3, %v1059_v24 }
 0x11a   : > { %v939_v19 = vpop.eup %938  ;;  %v604_v21 = vadd.f32 1.0, %v937_v15  ;;  %684 = vst.msk [vmem:[%s1081_s14 + $0xa0] sm:$0xff] %vm663_vm0, %v651_v16  ;;  %958 = vtanh.f32 %v565_v33  ;;  %v532_v43 = vadd.f32 %v859_v4, %v1059_v24  ;;  %v563_v46 = vmul.f32 0.5, %v521_v40 }
 0x11b   : > { %v941_v25 = vpop.eup %940  ;;  %v654_v26 = vmul.f32 0.5, %v622_v17  ;;  %v620_v27 = vadd.f32 1.0, %v939_v19  ;;  %671 = vst.msk [vmem:[%s1081_s14 + $0x38] sm:$0xff] %vm663_vm0, %v638_v20  ;;  %960 = vtanh.f32 %v547_v37  ;;  %v460_v47 = vadd.f32 %v1059_v24, %v459_v9 }
 0x11c   : > { %v943_v30 = vpop.eup %942  ;;  %v636_v31 = vmul.f32 0.5, %v604_v21  ;;  %v609_v32 = vadd.f32 1.0, %v941_v25  ;;  %v524_v48 = vadd.f32 %v1059_v24, %v523_v10  ;;  %v550_v51 = vmul.f32 0.5, %v468_v42 }
 0x11d   : > { %v945_v34 = vpop.eup %944  ;;  %687 = vst.msk [vmem:[%s1081_s14 + $0xb8] sm:$0xff] %vm663_vm0, %v654_v26  ;;  %v652_v35 = vmul.f32 0.5, %v620_v27  ;;  %v625_v36 = vadd.f32 1.0, %v943_v30  ;;  %v566_v52 = vmul.f32 0.5, %v532_v43  ;;  %962 = vtanh.f32 %v563_v46 }
 0x11e   : > { %669 = vst.msk [vmem:[%s1081_s14 + $0x28] sm:$0xff] %vm663_vm0, %v636_v31  ;;  %v641_v38 = vmul.f32 0.5, %v609_v32  ;;  %v607_v39 = vadd.f32 1.0, %v945_v34  ;;  %v947_v44 = vpop.eup %946  ;;  %v548_v55 = vmul.f32 0.5, %v460_v47  ;;  %v564_v56 = vmul.f32 0.5, %v524_v48 }
 0x11f   : > { %685 = vst.msk [vmem:[%s1081_s14 + $0xa8] sm:$0xff] %vm663_vm0, %v652_v35  ;;  %v657_v41 = vmul.f32 0.5, %v625_v36  ;;  %v949_v49 = vpop.eup %948  ;;  %v623_v50 = vadd.f32 1.0, %v947_v44  ;;  %964 = vtanh.f32 %v550_v51 }
 0x120   : > { %674 = vst.msk [vmem:[%s1081_s14 + $0x50] sm:$0xff] %vm663_vm0, %v641_v38  ;;  %v639_v45 = vmul.f32 0.5, %v607_v39  ;;  %v951_v53 = vpop.eup %950  ;;  %v610_v54 = vadd.f32 1.0, %v949_v49  ;;  %966 = vtanh.f32 %v566_v52 }
 0x121   : > { %690 = vst.msk [vmem:[%s1081_s14 + $0xd0] sm:$0xff] %vm663_vm0, %v657_v41  ;;  %v953_v57 = vpop.eup %952  ;;  %v655_v58 = vmul.f32 0.5, %v623_v50  ;;  %v626_v59 = vadd.f32 1.0, %v951_v53  ;;  %968 = vtanh.f32 %v548_v55 }
 0x122   : > { %672 = vst.msk [vmem:[%s1081_s14 + $0x40] sm:$0xff] %vm663_vm0, %v639_v45  ;;  %v642_v24 = vmul.f32 0.5, %v610_v54  ;;  %v608_v60 = vadd.f32 1.0, %v953_v57  ;;  %v955_v62 = vpop.eup %954  ;;  %970 = vtanh.f32 %v564_v56 }
 0x123   : > { %688 = vst.msk [vmem:[%s1081_s14 + $0xc0] sm:$0xff] %vm663_vm0, %v655_v58  ;;  %v658_v61 = vmul.f32 0.5, %v626_v59  ;;  %v957_v0 = vpop.eup %956  ;;  %v624_v1 = vadd.f32 1.0, %v955_v62 }
 0x124   : > { %675 = vst.msk [vmem:[%s1081_s14 + $0x58] sm:$0xff] %vm663_vm0, %v642_v24  ;;  %v640_v63 = vmul.f32 0.5, %v608_v60  ;;  %v959_v2 = vpop.eup %958  ;;  %v613_v3 = vadd.f32 1.0, %v957_v0 }
 0x125   : > { %691 = vst.msk [vmem:[%s1081_s14 + $0xd8] sm:$0xff] %vm663_vm0, %v658_v61  ;;  %v961_v4 = vpop.eup %960  ;;  %v656_v5 = vmul.f32 0.5, %v624_v1  ;;  %v629_v6 = vadd.f32 1.0, %v959_v2 }
 0x126   : > { %673 = vst.msk [vmem:[%s1081_s14 + $0x48] sm:$0xff] %vm663_vm0, %v640_v63  ;;  %v645_v7 = vmul.f32 0.5, %v613_v3  ;;  %v611_v8 = vadd.f32 1.0, %v961_v4 }
 0x127   : > { %689 = vst.msk [vmem:[%s1081_s14 + $0xc8] sm:$0xff] %vm663_vm0, %v656_v5  ;;  %v661_v9 = vmul.f32 0.5, %v629_v6  ;;  %v963_v10 = vpop.eup %962 }
 0x128   : > { %678 = vst.msk [vmem:[%s1081_s14 + $0x70] sm:$0xff] %vm663_vm0, %v645_v7  ;;  %v643_v11 = vmul.f32 0.5, %v611_v8  ;;  %v627_v13 = vadd.f32 1.0, %v963_v10 }
 0x129   : > { %v965_v12 = vpop.eup %964  ;;  %694 = vst.msk [vmem:[%s1081_s14 + $0xf0] sm:$0xff] %vm663_vm0, %v661_v9 }
 0x12a   : > { %v967_v14 = vpop.eup %966  ;;  %676 = vst.msk [vmem:[%s1081_s14 + $0x60] sm:$0xff] %vm663_vm0, %v643_v11  ;;  %v614_v15 = vadd.f32 1.0, %v965_v12  ;;  %v659_v17 = vmul.f32 0.5, %v627_v13 }
 0x12b   : > { %v969_v16 = vpop.eup %968  ;;  %v630_v18 = vadd.f32 1.0, %v967_v14 }
 0x12c   : > { %v971_v19 = vpop.eup %970  ;;  %v646_v20 = vmul.f32 0.5, %v614_v15  ;;  %v612_v21 = vadd.f32 1.0, %v969_v16  ;;  %692 = vst.msk [vmem:[%s1081_s14 + $0xe0] sm:$0xff] %vm663_vm0, %v659_v17 }
 0x12d   : > { %v662_v22 = vmul.f32 0.5, %v630_v18  ;;  %v628_v23 = vadd.f32 1.0, %v971_v19 }
 0x12e   : > { %679 = vst.msk [vmem:[%s1081_s14 + $0x78] sm:$0xff] %vm663_vm0, %v646_v20  ;;  %v644_v25 = vmul.f32 0.5, %v612_v21 }
 0x12f   : > { %695 = vst.msk [vmem:[%s1081_s14 + $0xf8] sm:$0xff] %vm663_vm0, %v662_v22  ;;  %v660_v26 = vmul.f32 0.5, %v628_v23 }
 0x130   : > { %677 = vst.msk [vmem:[%s1081_s14 + $0x68] sm:$0xff] %vm663_vm0, %v644_v25 }
 0x131   : > { %693 = vst.msk [vmem:[%s1081_s14 + $0xe8] sm:$0xff] %vm663_vm0, %v660_v26 }
 0x132 PF: > { %s13_s12 = sadd.s32 1, %s978_s12  }
 0x133   : > { %p10_p4 = scmp.ge.s32.totalorder %s13_s12, 4  }
 0x135   :  { %12 = sbr.rel (!%p10_p4) target bundleno = 1 (0x1), region = 62 }

</bundles_post_ra>
